<compile_context>
chip_gen: v7x
topology: tpu7x:2x2x1
jax: 0.10.0
libtpu: 0.0.40
codegen_flags: <defaults>
</compile_context>

<pallas_src>
import math
import functools

import jax
import jax.numpy as jnp
from jax.experimental import pallas as pl
from jax.experimental.pallas import tpu as pltpu

_VMEM_LIMIT = 64 * 1024 * 1024


# --------------------------------------------------------------------------
# Small helpers
# --------------------------------------------------------------------------
def _row_tile(rows):
    """Largest row tile (multiple of 8) that evenly divides `rows`, else full."""
    for cand in (512, 256, 128):
        if rows % cand == 0:
            return cand
    return rows


def _apply_act(y, act):
    if act == "relu":
        return jnp.maximum(y, 0.0)
    if act == "silu":
        return y * jax.nn.sigmoid(y)
    return y


def _softplus(x):
    # numerically stable softplus using only exp/log/abs/max (safe in Mosaic)
    return jnp.maximum(x, 0.0) + jnp.log(1.0 + jnp.exp(-jnp.abs(x)))


# --------------------------------------------------------------------------
# Pallas kernels
# --------------------------------------------------------------------------
def _linear_kernel_bias(x_ref, w_ref, b_ref, o_ref, *, act):
    y = jnp.dot(x_ref[...].astype(jnp.bfloat16), w_ref[...].astype(jnp.bfloat16),
                preferred_element_type=jnp.float32) + b_ref[...]
    o_ref[...] = _apply_act(y, act)


def _linear_kernel_nobias(x_ref, w_ref, o_ref, *, act):
    y = jnp.dot(x_ref[...].astype(jnp.bfloat16), w_ref[...].astype(jnp.bfloat16),
                preferred_element_type=jnp.float32)
    o_ref[...] = _apply_act(y, act)


def pallas_linear(x, w, b=None, act=None):
    """y = act(x @ w + b).  bf16 MXU matmul with f32 accumulation, fused
    bias/activation epilogue, row-tiled grid with parallel semantics."""
    lead = x.shape[:-1]
    K = x.shape[-1]
    Nout = w.shape[1]
    x2 = x.reshape(-1, K)
    rows = x2.shape[0]
    tm = _row_tile(rows)
    grid = (rows // tm,)
    cp = pltpu.CompilerParams(dimension_semantics=("parallel",),
                              vmem_limit_bytes=_VMEM_LIMIT)
    x_spec = pl.BlockSpec((tm, K), lambda i: (i, 0))
    w_spec = pl.BlockSpec((K, Nout), lambda i: (0, 0))
    o_spec = pl.BlockSpec((tm, Nout), lambda i: (i, 0))
    if b is None:
        out = pl.pallas_call(
            functools.partial(_linear_kernel_nobias, act=act),
            grid=grid, in_specs=[x_spec, w_spec], out_specs=o_spec,
            out_shape=jax.ShapeDtypeStruct((rows, Nout), jnp.float32),
            compiler_params=cp,
        )(x2, w)
    else:
        b_spec = pl.BlockSpec((1, Nout), lambda i: (0, 0))
        out = pl.pallas_call(
            functools.partial(_linear_kernel_bias, act=act),
            grid=grid, in_specs=[x_spec, w_spec, b_spec], out_specs=o_spec,
            out_shape=jax.ShapeDtypeStruct((rows, Nout), jnp.float32),
            compiler_params=cp,
        )(x2, w, b.reshape(1, Nout).astype(jnp.float32))
    return out.reshape(*lead, Nout)


def _dual_proj_add_ln_kernel(yf_ref, yr_ref, x_ref, wf_ref, wr_ref, g_ref, b_ref,
                             o_ref):
    """o = LayerNorm(x + yf @ wf + yr @ wr)  (fused out_proj of both Mamba
    directions + residual add + LayerNorm)."""
    acc = jnp.dot(yf_ref[...].astype(jnp.bfloat16), wf_ref[...].astype(jnp.bfloat16),
                  preferred_element_type=jnp.float32)
    acc = acc + jnp.dot(yr_ref[...].astype(jnp.bfloat16),
                        wr_ref[...].astype(jnp.bfloat16),
                        preferred_element_type=jnp.float32)
    x = x_ref[...] + acc
    mu = jnp.mean(x, axis=-1, keepdims=True)
    var = jnp.mean(jnp.square(x - mu), axis=-1, keepdims=True)
    o_ref[...] = (x - mu) * jax.lax.rsqrt(var + 1e-5) * g_ref[...] + b_ref[...]


def pallas_dual_proj_add_ln(y_f, y_r, x_res, w_f, w_r, g, b):
    lead = x_res.shape[:-1]
    d_in = y_f.shape[-1]
    d_model = x_res.shape[-1]
    yf2 = y_f.reshape(-1, d_in)
    yr2 = y_r.reshape(-1, d_in)
    x2 = x_res.reshape(-1, d_model)
    rows = x2.shape[0]
    tm = _row_tile(rows)
    cp = pltpu.CompilerParams(dimension_semantics=("parallel",),
                              vmem_limit_bytes=_VMEM_LIMIT)
    out = pl.pallas_call(
        _dual_proj_add_ln_kernel,
        grid=(rows // tm,),
        in_specs=[pl.BlockSpec((tm, d_in), lambda i: (i, 0)),
                  pl.BlockSpec((tm, d_in), lambda i: (i, 0)),
                  pl.BlockSpec((tm, d_model), lambda i: (i, 0)),
                  pl.BlockSpec((d_in, d_model), lambda i: (0, 0)),
                  pl.BlockSpec((d_in, d_model), lambda i: (0, 0)),
                  pl.BlockSpec((1, d_model), lambda i: (0, 0)),
                  pl.BlockSpec((1, d_model), lambda i: (0, 0))],
        out_specs=pl.BlockSpec((tm, d_model), lambda i: (i, 0)),
        out_shape=jax.ShapeDtypeStruct((rows, d_model), jnp.float32),
        compiler_params=cp,
    )(yf2, yr2, x2, w_f, w_r,
      g.reshape(1, d_model).astype(jnp.float32),
      b.reshape(1, d_model).astype(jnp.float32))
    return out.reshape(*lead, d_model)


def _proj_add_ln_kernel(y_ref, x_ref, w_ref, bw_ref, g_ref, b_ref, o_ref):
    """o = LayerNorm(x + y @ w + bw)  (fused FFN second linear + residual + LN)."""
    acc = jnp.dot(y_ref[...].astype(jnp.bfloat16), w_ref[...].astype(jnp.bfloat16),
                  preferred_element_type=jnp.float32) + bw_ref[...]
    x = x_ref[...] + acc
    mu = jnp.mean(x, axis=-1, keepdims=True)
    var = jnp.mean(jnp.square(x - mu), axis=-1, keepdims=True)
    o_ref[...] = (x - mu) * jax.lax.rsqrt(var + 1e-5) * g_ref[...] + b_ref[...]


def pallas_proj_add_ln(y, x_res, w, bw, g, b):
    lead = x_res.shape[:-1]
    d_in = y.shape[-1]
    d_model = x_res.shape[-1]
    y2 = y.reshape(-1, d_in)
    x2 = x_res.reshape(-1, d_model)
    rows = x2.shape[0]
    tm = _row_tile(rows)
    cp = pltpu.CompilerParams(dimension_semantics=("parallel",),
                              vmem_limit_bytes=_VMEM_LIMIT)
    out = pl.pallas_call(
        _proj_add_ln_kernel,
        grid=(rows // tm,),
        in_specs=[pl.BlockSpec((tm, d_in), lambda i: (i, 0)),
                  pl.BlockSpec((tm, d_model), lambda i: (i, 0)),
                  pl.BlockSpec((d_in, d_model), lambda i: (0, 0)),
                  pl.BlockSpec((1, d_model), lambda i: (0, 0)),
                  pl.BlockSpec((1, d_model), lambda i: (0, 0)),
                  pl.BlockSpec((1, d_model), lambda i: (0, 0))],
        out_specs=pl.BlockSpec((tm, d_model), lambda i: (i, 0)),
        out_shape=jax.ShapeDtypeStruct((rows, d_model), jnp.float32),
        compiler_params=cp,
    )(y2, x2, w,
      bw.reshape(1, d_model).astype(jnp.float32),
      g.reshape(1, d_model).astype(jnp.float32),
      b.reshape(1, d_model).astype(jnp.float32))
    return out.reshape(*lead, d_model)


def _ln_proj_kernel(x_ref, g_ref, b_ref, w_ref, bw_ref, o_ref):
    """o = LayerNorm(x) @ w + bw  (fused final encoder norm + projector)."""
    x = x_ref[...]
    mu = jnp.mean(x, axis=-1, keepdims=True)
    var = jnp.mean(jnp.square(x - mu), axis=-1, keepdims=True)
    xn = (x - mu) * jax.lax.rsqrt(var + 1e-5) * g_ref[...] + b_ref[...]
    o_ref[...] = jnp.dot(xn.astype(jnp.bfloat16), w_ref[...].astype(jnp.bfloat16),
                         preferred_element_type=jnp.float32) + bw_ref[...]


def pallas_ln_proj(x, g, b, w, bw):
    lead = x.shape[:-1]
    d_model = x.shape[-1]
    Nout = w.shape[1]
    x2 = x.reshape(-1, d_model)
    rows = x2.shape[0]
    tm = _row_tile(rows)
    cp = pltpu.CompilerParams(dimension_semantics=("parallel",),
                              vmem_limit_bytes=_VMEM_LIMIT)
    out = pl.pallas_call(
        _ln_proj_kernel,
        grid=(rows // tm,),
        in_specs=[pl.BlockSpec((tm, d_model), lambda i: (i, 0)),
                  pl.BlockSpec((1, d_model), lambda i: (0, 0)),
                  pl.BlockSpec((1, d_model), lambda i: (0, 0)),
                  pl.BlockSpec((d_model, Nout), lambda i: (0, 0)),
                  pl.BlockSpec((1, Nout), lambda i: (0, 0))],
        out_specs=pl.BlockSpec((tm, Nout), lambda i: (i, 0)),
        out_shape=jax.ShapeDtypeStruct((rows, Nout), jnp.float32),
        compiler_params=cp,
    )(x2,
      g.reshape(1, d_model).astype(jnp.float32),
      b.reshape(1, d_model).astype(jnp.float32),
      w,
      bw.reshape(1, Nout).astype(jnp.float32))
    return out.reshape(*lead, Nout)


def _make_scan_kernel(T, Bn, d_inner, d_state, reverse, unroll):
    """Batched Mamba selective scan, time-major, VPU/XLU only inside the loop
    (no degenerate MXU matmuls), softplus + SiLU gating fused, reverse
    direction handled by iterating backwards in-kernel."""

    def kernel(u_ref, dbc_ref, z_ref, at_ref, d_ref, y_ref):
        A_T = at_ref[...][None, :, :]        # (1, d_state, d_inner)
        Dv = d_ref[...]                      # (1, d_inner)

        def one_step(t, h):
            u_t = u_ref[t]                   # (B, d_inner)
            z_t = z_ref[t]                   # (B, d_inner)
            dbc = dbc_ref[t]                 # (B, d_inner + 2*d_state)
            delta = _softplus(dbc[:, :d_inner])
            B_t = dbc[:, d_inner:d_inner + d_state]
            C_t = dbc[:, d_inner + d_state:]
            dA = jnp.exp(delta[:, None, :] * A_T)                 # (B, ds, di)
            dBu = B_t[:, :, None] * (delta * u_t)[:, None, :]     # outer on VPU
            h = dA * h + dBu
            y_t = jnp.sum(C_t[:, :, None] * h, axis=1) + Dv * u_t  # XLU reduce
            y_ref[t] = y_t * (z_t * jax.nn.sigmoid(z_t))           # SiLU gate
            return h

        def chunk(c, h):
            base = c * unroll
            for j in range(unroll):          # manual unroll for LLO visibility
                idx = base + j
                t = (T - 1 - idx) if reverse else idx
                h = one_step(t, h)
            return h

        h0 = jnp.zeros((Bn, d_state, d_inner), jnp.float32)
        jax.lax.fori_loop(0, T // unroll, chunk, h0)

    return kernel


def pallas_selective_scan(u, dbc, z, A_T, D, reverse):
    """u, z: (T, B, d_inner); dbc: (T, B, d_inner + 2*d_state) holding
    [delta_pre | B | C]; A_T: (d_state, d_inner); D: (1, d_inner)."""
    T, Bn, d_inner = u.shape
    d_state = A_T.shape[0]
    unroll = 1
    for cand in (8, 4, 2):
        if T % cand == 0:
            unroll = cand
            break
    kernel = _make_scan_kernel(T, Bn, d_inner, d_state, reverse, unroll)
    return pl.pallas_call(
        kernel,
        out_shape=jax.ShapeDtypeStruct((T, Bn, d_inner), jnp.float32),
        compiler_params=pltpu.CompilerParams(vmem_limit_bytes=_VMEM_LIMIT),
    )(u.astype(jnp.float32), dbc.astype(jnp.float32), z.astype(jnp.float32),
      A_T.astype(jnp.float32), D.astype(jnp.float32))


# --------------------------------------------------------------------------
# Model pieces (glue in plain JAX; heavy compute routed through the kernels)
# --------------------------------------------------------------------------
def revin_norm(x, w, b, eps=1e-5):
    mean = jnp.mean(x, axis=1, keepdims=True)
    stdev = jnp.sqrt(jnp.var(x, axis=1, keepdims=True) + eps)
    return (x - mean) / stdev * w + b, mean, stdev


def revin_denorm(x, mean, stdev, w, b, eps=1e-5):
    x = (x - b) / (w + eps * eps)
    return x * stdev + mean


def series_decomp(x, kernel_size):
    """Autoformer moving-average decomposition via cumsum.  x: (B, L, N).
    TODO(synk): only odd kernel_size reproduces the PyTorch AvgPool1d alignment."""
    pad = (kernel_size - 1) // 2
    front = jnp.repeat(x[:, :1, :], pad, axis=1)
    end = jnp.repeat(x[:, -1:, :], pad, axis=1)
    xp = jnp.concatenate([front, x, end], axis=1)
    csum = jnp.cumsum(xp, axis=1)
    csum = jnp.concatenate([jnp.zeros_like(csum[:, :1]), csum], axis=1)
    trend = (csum[:, kernel_size:] - csum[:, :-kernel_size]) / kernel_size
    return x - trend, trend


def _depthwise_conv_silu(x, w, b, reverse):
    """Depthwise width-K conv along the leading (token) axis fused with SiLU.
    Forward branch is causal; the reverse branch uses the anti-causal form,
    which is exactly flip -> causal conv -> flip without materializing flips.
    x: (T, B, C); w: (C, K); b: (C,)."""
    T = x.shape[0]
    K = w.shape[1]
    out = b[None, None, :]
    if not reverse:
        xp = jnp.pad(x, ((K - 1, 0), (0, 0), (0, 0)))
        for k in range(K):
            out = out + xp[k:k + T] * w[:, k][None, None, :]
    else:
        xp = jnp.pad(x, ((0, K - 1), (0, 0), (0, 0)))
        for j in range(K):
            out = out + xp[j:j + T] * w[:, K - 1 - j][None, None, :]
    return jax.nn.silu(out)


def encoder_layer_forward(x, lp, cfg):
    """x: (N_tokens, B, d_model) variate-token-major layout."""
    d_inner = cfg["expand"] * cfg["d_model"]

    # fused in_proj of both scan directions: one (d_model -> 4*d_inner) matmul
    xz = pallas_linear(x, lp["in_proj_w"])
    x_f = xz[..., 0:d_inner]
    z_f = xz[..., d_inner:2 * d_inner]
    x_r = xz[..., 2 * d_inner:3 * d_inner]
    z_r = xz[..., 3 * d_inner:]

    def branch(xi, zi, bp, reverse):
        xc = _depthwise_conv_silu(xi, bp["conv_w"], bp["conv_b"], reverse)
        # fused x_proj + dt_proj: emits [delta_pre | B | C] in one matmul
        dbc = pallas_linear(xc, bp["xdbl_w"], bp["xdbl_b"])
        return pallas_selective_scan(xc, dbc, zi, bp["A_T"], bp["D"], reverse)

    y_f = branch(x_f, z_f, lp["f"], reverse=False)
    y_r = branch(x_r, z_r, lp["r"], reverse=True)

    # fused: out_proj (both directions) + residual add + LayerNorm
    x = pallas_dual_proj_add_ln(y_f, y_r, x, lp["f"]["out_proj_w"],
                                lp["r"]["out_proj_w"],
                                lp["norm1_g"], lp["norm1_b"])

    # FFN: first linear with fused activation, second fused with residual + LN
    if cfg["ffn_activation"] == "relu":
        h = pallas_linear(x, lp["ffn_w1"], lp["ffn_b1"], act="relu")
    else:
        h = jax.nn.gelu(pallas_linear(x, lp["ffn_w1"], lp["ffn_b1"]),
                        approximate=False)
    return pallas_proj_add_ln(h, x, lp["ffn_w2"], lp["ffn_b2"],
                              lp["norm2_g"], lp["norm2_b"])


def dstmamba_forward(params, history_data, cfg):
    x_in = history_data[..., 0]                             # (B, L, N)

    if cfg["use_norm"]:
        x_in, mean, stdev = revin_norm(x_in, params["revin_w"], params["revin_b"])
    else:
        mean = jnp.zeros_like(x_in[:, :1, :])
        stdev = jnp.ones_like(x_in[:, :1, :])

    x_sea, _ = series_decomp(x_in, cfg["std_kernel"])

    # DataEmbedding (inverted): Linear over the time axis, per variate token
    x_emb = pallas_linear(jnp.transpose(x_sea, (0, 2, 1)),
                          params["emb_w"], params["emb_b"])  # (B, N, embed_dim)

    # LoRA-style spatial adapter (ReLU fused into the lora matmul)
    adapter = pallas_linear(params["adapter"], params["lora_w"], act="relu")
    adaptation = jnp.einsum("bnD,nDd->bnd", x_emb, adapter)
    enc_in = jnp.concatenate([x_emb, adaptation], axis=-1)   # (B, N, d_model)

    # encoder in (N_tokens, B, d_model) layout; transpose once in, once out
    x = jnp.transpose(enc_in, (1, 0, 2))
    for lp in params["layers"]:
        x = encoder_layer_forward(x, lp, cfg)
    enc_proj = pallas_ln_proj(x, params["enc_norm_g"], params["enc_norm_b"],
                              params["proj_w"], params["proj_b"])  # (N, B, F)
    x_sea_out = jnp.transpose(enc_proj, (1, 2, 0))           # (B, F, N)

    # multi-scale trend branch (avg downsampling)
    # TODO(synk): 'max' / 'conv' ds_type variants not implemented (avg only).
    ms_list = [x_in]
    x_ms = jnp.transpose(x_in, (0, 2, 1))                    # (B, N, L)
    w = cfg["ds_window"]
    for _ in range(cfg["ds_layers"]):
        Bn, Nn, Ln = x_ms.shape
        x_samp = jnp.mean(
            x_ms[:, :, :(Ln // w) * w].reshape(Bn, Nn, Ln // w, w), axis=-1)
        ms_list.append(jnp.transpose(x_samp, (0, 2, 1)))
        x_ms = x_samp

    ms_trend_list = [series_decomp(xi, cfg["std_kernel"])[1] for xi in ms_list]

    # bottom-up multi-scale trend mixing (TimeMixer style)
    rev = [jnp.transpose(t, (0, 2, 1)) for t in ms_trend_list][::-1]
    out_low = rev[0]
    out_high = rev[1]
    out_list = [jnp.transpose(out_low, (0, 2, 1))]
    for i in range(len(rev) - 1):
        w1, b1, w2, b2 = params["mix_layers"][i]
        res = pallas_linear(out_low, w1, b1)
        res = jax.nn.gelu(res, approximate=False)
        res = pallas_linear(res, w2, b2)
        out_high = out_high + res
        out_low = out_high
        if i + 2 <= len(rev) - 1:
            out_high = rev[i + 2]
        out_list.append(jnp.transpose(out_low, (0, 2, 1)))
    out_list.reverse()
    ms_trend_list = out_list

    out_trend = []
    for l, trend in enumerate(ms_trend_list):
        t = jnp.transpose(trend, (0, 2, 1))
        o = pallas_linear(t, params["lm_w"][l], params["lm_b"][l])
        out_trend.append(jnp.transpose(o, (0, 2, 1)))
    x_tre_out = jnp.sum(jnp.stack(out_trend, axis=-1), axis=-1)

    pred = x_sea_out + params["tre_w"] * x_tre_out
    pred = revin_denorm(pred, mean, stdev, params["revin_w"], params["revin_b"])
    return pred[..., None]                                   # (B, F, N, 1)


# --------------------------------------------------------------------------
# Deterministic parameter initialization + one-time preprocessing
# --------------------------------------------------------------------------
def init_params(cfg, key):
    L = cfg["history_seq_len"]; F = cfg["future_seq_len"]; N = cfg["num_channels"]
    d_model = cfg["d_model"]; node_dim = cfg["node_dim"]
    embed_dim = d_model - node_dim
    rank = cfg["rank"]; d_state = cfg["d_state"]; d_conv = cfg["d_conv"]
    d_inner = cfg["expand"] * d_model; d_ff = cfg["d_ff"]
    dt_rank = cfg["dt_rank"]

    kit = iter(jax.random.split(key, 256))

    def w(shape, scale=0.1):
        return (scale * jax.random.normal(next(kit), shape)).astype(jnp.float32)

    def mamba_params():
        return dict(
            in_proj_w=w((d_model, 2 * d_inner)),
            conv_w=w((d_inner, d_conv)),
            conv_b=jnp.zeros((d_inner,), jnp.float32),
            x_proj_w=w((d_inner, dt_rank + 2 * d_state)),
            dt_proj_w=w((dt_rank, d_inner)),
            dt_proj_b=jnp.zeros((d_inner,), jnp.float32),
            A_log=jnp.log(jnp.broadcast_to(
                jnp.arange(1, d_state + 1, dtype=jnp.float32),
                (d_inner, d_state))),
            D=jnp.ones((d_inner,), jnp.float32),
            out_proj_w=w((d_inner, d_model)),
        )

    layers = []
    for _ in range(cfg["e_layers"]):
        layers.append(dict(
            ssm=mamba_params(), ssm_r=mamba_params(),
            norm1_g=jnp.ones((d_model,), jnp.float32),
            norm1_b=jnp.zeros((d_model,), jnp.float32),
            norm2_g=jnp.ones((d_model,), jnp.float32),
            norm2_b=jnp.zeros((d_model,), jnp.float32),
            ffn_w1=w((d_model, d_ff)), ffn_b1=jnp.zeros((d_ff,), jnp.float32),
            ffn_w2=w((d_ff, d_model)), ffn_b2=jnp.zeros((d_model,), jnp.float32),
        ))

    bound = math.sqrt(6.0 / (embed_dim + rank))
    adapter = jax.random.uniform(
        next(kit), (N, embed_dim, rank), minval=-bound, maxval=bound
    ).astype(jnp.float32)

    mix_layers = []
    for i in reversed(range(cfg["ds_layers"])):
        lin_in = L // (cfg["ds_window"] ** (i + 1))
        lin_out = L // (cfg["ds_window"] ** i)
        mix_layers.append((
            w((lin_in, lin_out)), jnp.zeros((lin_out,), jnp.float32),
            w((lin_out, lin_out)), jnp.zeros((lin_out,), jnp.float32),
        ))

    lm_w = [w((L // cfg["ds_window"] ** l, F)) for l in range(cfg["ds_layers"] + 1)]
    lm_b = [jnp.zeros((F,), jnp.float32) for _ in range(cfg["ds_layers"] + 1)]

    return dict(
        revin_w=jnp.ones((N,), jnp.float32), revin_b=jnp.zeros((N,), jnp.float32),
        emb_w=w((L, embed_dim)), emb_b=jnp.zeros((embed_dim,), jnp.float32),
        adapter=adapter, lora_w=w((rank, node_dim)),
        layers=layers,
        enc_norm_g=jnp.ones((d_model,), jnp.float32),
        enc_norm_b=jnp.zeros((d_model,), jnp.float32),
        proj_w=w((d_model, F)), proj_b=jnp.zeros((F,), jnp.float32),
        mix_layers=mix_layers, lm_w=lm_w, lm_b=lm_b,
        tre_w=jnp.full((N,), cfg["initial_tre_w"], jnp.float32),
    )


def prepare_params(params, cfg):
    """One-time preprocessing: fuse in_proj weights of both scan directions,
    fold dt_proj into x_proj, precompute A_T = -exp(A_log)^T, and pre-cast all
    matmul weights to bf16 (elementwise/LN params stay f32)."""
    d_state = cfg["d_state"]; dt_rank = cfg["dt_rank"]

    def prep_mamba(p):
        w_delta = p["x_proj_w"][:, :dt_rank] @ p["dt_proj_w"]      # (d_in, d_in)
        xdbl_w = jnp.concatenate([w_delta, p["x_proj_w"][:, dt_rank:]], axis=1)
        xdbl_b = jnp.concatenate(
            [p["dt_proj_b"], jnp.zeros((2 * d_state,), jnp.float32)])
        return dict(
            conv_w=p["conv_w"], conv_b=p["conv_b"],
            xdbl_w=xdbl_w.astype(jnp.bfloat16), xdbl_b=xdbl_b,
            A_T=jnp.transpose(-jnp.exp(p["A_log"])).astype(jnp.float32),
            D=p["D"].reshape(1, -1).astype(jnp.float32),
            out_proj_w=p["out_proj_w"].astype(jnp.bfloat16),
        )

    layers = []
    for lp in params["layers"]:
        layers.append(dict(
            in_proj_w=jnp.concatenate(
                [lp["ssm"]["in_proj_w"], lp["ssm_r"]["in_proj_w"]],
                axis=1).astype(jnp.bfloat16),
            f=prep_mamba(lp["ssm"]), r=prep_mamba(lp["ssm_r"]),
            norm1_g=lp["norm1_g"], norm1_b=lp["norm1_b"],
            norm2_g=lp["norm2_g"], norm2_b=lp["norm2_b"],
            ffn_w1=lp["ffn_w1"].astype(jnp.bfloat16), ffn_b1=lp["ffn_b1"],
            ffn_w2=lp["ffn_w2"].astype(jnp.bfloat16), ffn_b2=lp["ffn_b2"],
        ))

    mix_layers = [(w1.astype(jnp.bfloat16), b1, w2.astype(jnp.bfloat16), b2)
                  for (w1, b1, w2, b2) in params["mix_layers"]]

    return dict(
        revin_w=params["revin_w"], revin_b=params["revin_b"],
        emb_w=params["emb_w"].astype(jnp.bfloat16), emb_b=params["emb_b"],
        adapter=params["adapter"], lora_w=params["lora_w"].astype(jnp.bfloat16),
        layers=layers,
        enc_norm_g=params["enc_norm_g"], enc_norm_b=params["enc_norm_b"],
        proj_w=params["proj_w"].astype(jnp.bfloat16), proj_b=params["proj_b"],
        mix_layers=mix_layers,
        lm_w=[wl.astype(jnp.bfloat16) for wl in params["lm_w"]],
        lm_b=params["lm_b"],
        tre_w=params["tre_w"],
    )


# --------------------------------------------------------------------------
if __name__ == "__main__":
    cfg = dict(
        history_seq_len=16, future_seq_len=8, num_channels=4,
        d_model=32, node_dim=8, rank=4, e_layers=1,
        d_state=8, d_conv=2, expand=1, d_ff=32,
        std_kernel=5, ds_layers=1, ds_window=2, initial_tre_w=1.0,
        use_norm=True, ffn_activation="relu",
    )
    cfg["dt_rank"] = math.ceil(cfg["d_model"] / 16)

    key = jax.random.PRNGKey(0)
    pkey, dkey = jax.random.split(key)
    params = prepare_params(init_params(cfg, pkey), cfg)

    B = 2
    history_data = jax.random.normal(
        dkey, (B, cfg["history_seq_len"], cfg["num_channels"], 1), jnp.float32)

    fwd = jax.jit(lambda p, x: dstmamba_forward(p, x, cfg))
    out = jax.block_until_ready(fwd(params, history_data))
    assert out.shape == (B, cfg["future_seq_len"], cfg["num_channels"], 1)
    assert bool(jnp.all(jnp.isfinite(out)))
    print("KERNEL_OK")
</pallas_src>

<mosaic_0001>
module attributes {stable_mosaic.version = 11 : i64} {
  func.func @_linear_kernel_bias(%arg0: i32, %arg1: memref<8x16xf32, #tpu.memory_space<vmem>>, %arg2: memref<16x24xbf16, #tpu.memory_space<vmem>>, %arg3: memref<1x24xf32, #tpu.memory_space<vmem>>, %arg4: memref<8x24xf32, #tpu.memory_space<vmem>>) attributes {dimension_semantics = [#tpu.dimension_semantics<parallel>], iteration_bounds = array<i64: 1>, scalar_prefetch = 0 : i64, scratch_operands = 0 : i64, tpu.core_type = #tpu.core_type<tc>, window_params = [{transform_indices = @transform_0, window_bounds = array<i64: 8, 16>}, {pipeline_mode = #tpu.pipeline_mode<synchronous>, transform_indices = @transform_1, window_bounds = array<i64: 16, 24>}, {pipeline_mode = #tpu.pipeline_mode<synchronous>, transform_indices = @transform_2, window_bounds = array<i64: 1, 24>}, {transform_indices = @transform_3, window_bounds = array<i64: 8, 24>}]} {
    %c0 = arith.constant 0 : index
    %c0_0 = arith.constant 0 : index
    %0 = vector.load %arg1[%c0, %c0_0] : memref<8x16xf32, #tpu.memory_space<vmem>>, vector<8x16xf32>
    %1 = arith.truncf %0 : vector<8x16xf32> to vector<8x16xbf16>
    %c0_1 = arith.constant 0 : index
    %c0_2 = arith.constant 0 : index
    %2 = vector.load %arg2[%c0_1, %c0_2] : memref<16x24xbf16, #tpu.memory_space<vmem>>, vector<16x24xbf16>
    %cst = arith.constant dense<0.000000e+00> : vector<8x24xf32>
    %3 = tpu.matmul %1, %2, %cst {dimension_numbers = #tpu.dot_dimension_numbers<[1], [0], [0], [1], [0, 0, 1, 1], [], []>} : vector<8x16xbf16>, vector<16x24xbf16>, vector<8x24xf32> -> vector<8x24xf32>
    %c0_3 = arith.constant 0 : index
    %c0_4 = arith.constant 0 : index
    %4 = vector.load %arg3[%c0_3, %c0_4] : memref<1x24xf32, #tpu.memory_space<vmem>>, vector<1x24xf32>
    %5 = vector.broadcast %4 : vector<1x24xf32> to vector<8x24xf32>
    %6 = arith.addf %3, %5 : vector<8x24xf32>
    %c0_5 = arith.constant 0 : index
    %c0_6 = arith.constant 0 : index
    %7 = vector.load %arg4[%c0_5, %c0_6] : memref<8x24xf32, #tpu.memory_space<vmem>>, vector<8x24xf32>
    tpu.vector_store %arg4[%c0_5, %c0_6], %6 {strides = array<i32>} : memref<8x24xf32, #tpu.memory_space<vmem>>, vector<8x24xf32>,
    return
  }
  func.func @transform_0(%arg0: i32) -> (i32, i32) {
    %c0_i32 = arith.constant 0 : i32
    %c0_i32_0 = arith.constant 0 : i32
    return %arg0, %c0_i32 : i32, i32
  }
  func.func @transform_1(%arg0: i32) -> (i32, i32) {
    %c0_i32 = arith.constant 0 : i32
    %c0_i32_0 = arith.constant 0 : i32
    %c0_i32_1 = arith.constant 0 : i32
    return %c0_i32, %c0_i32_0 : i32, i32
  }
  func.func @transform_2(%arg0: i32) -> (i32, i32) {
    %c0_i32 = arith.constant 0 : i32
    %c0_i32_0 = arith.constant 0 : i32
    %c0_i32_1 = arith.constant 0 : i32
    return %c0_i32, %c0_i32_0 : i32, i32
  }
  func.func @transform_3(%arg0: i32) -> (i32, i32) {
    %c0_i32 = arith.constant 0 : i32
    %c0_i32_0 = arith.constant 0 : i32
    return %arg0, %c0_i32 : i32, i32
  }
}

module attributes {stable_mosaic.version = 11 : i64} {
  func.func @_linear_kernel_nobias(%arg0: i32, %arg1: memref<96x4xf32, #tpu.memory_space<vmem>>, %arg2: memref<4x8xbf16, #tpu.memory_space<vmem>>, %arg3: memref<96x8xf32, #tpu.memory_space<vmem>>) attributes {dimension_semantics = [#tpu.dimension_semantics<parallel>], iteration_bounds = array<i64: 1>, scalar_prefetch = 0 : i64, scratch_operands = 0 : i64, tpu.core_type = #tpu.core_type<tc>, window_params = [{transform_indices = @transform_0, window_bounds = array<i64: 96, 4>}, {pipeline_mode = #tpu.pipeline_mode<synchronous>, transform_indices = @transform_1, window_bounds = array<i64: 4, 8>}, {transform_indices = @transform_2, window_bounds = array<i64: 96, 8>}]} {
    %c0 = arith.constant 0 : index
    %c0_0 = arith.constant 0 : index
    %0 = vector.load %arg1[%c0, %c0_0] : memref<96x4xf32, #tpu.memory_space<vmem>>, vector<96x4xf32>
    %1 = arith.truncf %0 : vector<96x4xf32> to vector<96x4xbf16>
    %c0_1 = arith.constant 0 : index
    %c0_2 = arith.constant 0 : index
    %2 = vector.load %arg2[%c0_1, %c0_2] : memref<4x8xbf16, #tpu.memory_space<vmem>>, vector<4x8xbf16>
    %cst = arith.constant dense<0.000000e+00> : vector<96x8xf32>
    %3 = tpu.matmul %1, %2, %cst {dimension_numbers = #tpu.dot_dimension_numbers<[1], [0], [0], [1], [0, 0, 1, 1], [], []>} : vector<96x4xbf16>, vector<4x8xbf16>, vector<96x8xf32> -> vector<96x8xf32>
    %cst_3 = arith.constant 0.000000e+00 : f32
    %4 = vector.broadcast %cst_3 : f32 to vector<96x8xf32>
    %5 = arith.maximumf %3, %4 : vector<96x8xf32>
    %c0_4 = arith.constant 0 : index
    %c0_5 = arith.constant 0 : index
    %6 = vector.load %arg3[%c0_4, %c0_5] : memref<96x8xf32, #tpu.memory_space<vmem>>, vector<96x8xf32>
    tpu.vector_store %arg3[%c0_4, %c0_5], %5 {strides = array<i32>} : memref<96x8xf32, #tpu.memory_space<vmem>>, vector<96x8xf32>,
    return
  }
  func.func @transform_0(%arg0: i32) -> (i32, i32) {
    %c0_i32 = arith.constant 0 : i32
    %c0_i32_0 = arith.constant 0 : i32
    return %arg0, %c0_i32 : i32, i32
  }
  func.func @transform_1(%arg0: i32) -> (i32, i32) {
    %c0_i32 = arith.constant 0 : i32
    %c0_i32_0 = arith.constant 0 : i32
    %c0_i32_1 = arith.constant 0 : i32
    return %c0_i32, %c0_i32_0 : i32, i32
  }
  func.func @transform_2(%arg0: i32) -> (i32, i32) {
    %c0_i32 = arith.constant 0 : i32
    %c0_i32_0 = arith.constant 0 : i32
    return %arg0, %c0_i32 : i32, i32
  }
}

module attributes {stable_mosaic.version = 11 : i64} {
  func.func @_linear_kernel_nobias(%arg0: i32, %arg1: memref<8x32xf32, #tpu.memory_space<vmem>>, %arg2: memref<32x128xbf16, #tpu.memory_space<vmem>>, %arg3: memref<8x128xf32, #tpu.memory_space<vmem>>) attributes {dimension_semantics = [#tpu.dimension_semantics<parallel>], iteration_bounds = array<i64: 1>, scalar_prefetch = 0 : i64, scratch_operands = 0 : i64, tpu.core_type = #tpu.core_type<tc>, window_params = [{transform_indices = @transform_0, window_bounds = array<i64: 8, 32>}, {pipeline_mode = #tpu.pipeline_mode<synchronous>, transform_indices = @transform_1, window_bounds = array<i64: 32, 128>}, {transform_indices = @transform_2, window_bounds = array<i64: 8, 128>}]} {
    %c0 = arith.constant 0 : index
    %c0_0 = arith.constant 0 : index
    %0 = vector.load %arg1[%c0, %c0_0] : memref<8x32xf32, #tpu.memory_space<vmem>>, vector<8x32xf32>
    %1 = arith.truncf %0 : vector<8x32xf32> to vector<8x32xbf16>
    %c0_1 = arith.constant 0 : index
    %c0_2 = arith.constant 0 : index
    %2 = vector.load %arg2[%c0_1, %c0_2] : memref<32x128xbf16, #tpu.memory_space<vmem>>, vector<32x128xbf16>
    %cst = arith.constant dense<0.000000e+00> : vector<8x128xf32>
    %3 = tpu.matmul %1, %2, %cst {dimension_numbers = #tpu.dot_dimension_numbers<[1], [0], [0], [1], [0, 0, 1, 1], [], []>} : vector<8x32xbf16>, vector<32x128xbf16>, vector<8x128xf32> -> vector<8x128xf32>
    %c0_3 = arith.constant 0 : index
    %c0_4 = arith.constant 0 : index
    %4 = vector.load %arg3[%c0_3, %c0_4] : memref<8x128xf32, #tpu.memory_space<vmem>>, vector<8x128xf32>
    tpu.vector_store %arg3[%c0_3, %c0_4], %3 {strides = array<i32>} : memref<8x128xf32, #tpu.memory_space<vmem>>, vector<8x128xf32>,
    return
  }
  func.func @transform_0(%arg0: i32) -> (i32, i32) {
    %c0_i32 = arith.constant 0 : i32
    %c0_i32_0 = arith.constant 0 : i32
    return %arg0, %c0_i32 : i32, i32
  }
  func.func @transform_1(%arg0: i32) -> (i32, i32) {
    %c0_i32 = arith.constant 0 : i32
    %c0_i32_0 = arith.constant 0 : i32
    %c0_i32_1 = arith.constant 0 : i32
    return %c0_i32, %c0_i32_0 : i32, i32
  }
  func.func @transform_2(%arg0: i32) -> (i32, i32) {
    %c0_i32 = arith.constant 0 : i32
    %c0_i32_0 = arith.constant 0 : i32
    return %arg0, %c0_i32 : i32, i32
  }
}

module attributes {stable_mosaic.version = 11 : i64} {
  func.func @_linear_kernel_bias(%arg0: i32, %arg1: memref<8x32xf32, #tpu.memory_space<vmem>>, %arg2: memref<32x48xbf16, #tpu.memory_space<vmem>>, %arg3: memref<1x48xf32, #tpu.memory_space<vmem>>, %arg4: memref<8x48xf32, #tpu.memory_space<vmem>>) attributes {dimension_semantics = [#tpu.dimension_semantics<parallel>], iteration_bounds = array<i64: 1>, scalar_prefetch = 0 : i64, scratch_operands = 0 : i64, tpu.core_type = #tpu.core_type<tc>, window_params = [{transform_indices = @transform_0, window_bounds = array<i64: 8, 32>}, {pipeline_mode = #tpu.pipeline_mode<synchronous>, transform_indices = @transform_1, window_bounds = array<i64: 32, 48>}, {pipeline_mode = #tpu.pipeline_mode<synchronous>, transform_indices = @transform_2, window_bounds = array<i64: 1, 48>}, {transform_indices = @transform_3, window_bounds = array<i64: 8, 48>}]} {
    %c0 = arith.constant 0 : index
    %c0_0 = arith.constant 0 : index
    %0 = vector.load %arg1[%c0, %c0_0] : memref<8x32xf32, #tpu.memory_space<vmem>>, vector<8x32xf32>
    %1 = arith.truncf %0 : vector<8x32xf32> to vector<8x32xbf16>
    %c0_1 = arith.constant 0 : index
    %c0_2 = arith.constant 0 : index
    %2 = vector.load %arg2[%c0_1, %c0_2] : memref<32x48xbf16, #tpu.memory_space<vmem>>, vector<32x48xbf16>
    %cst = arith.constant dense<0.000000e+00> : vector<8x48xf32>
    %3 = tpu.matmul %1, %2, %cst {dimension_numbers = #tpu.dot_dimension_numbers<[1], [0], [0], [1], [0, 0, 1, 1], [], []>} : vector<8x32xbf16>, vector<32x48xbf16>, vector<8x48xf32> -> vector<8x48xf32>
    %c0_3 = arith.constant 0 : index
    %c0_4 = arith.constant 0 : index
    %4 = vector.load %arg3[%c0_3, %c0_4] : memref<1x48xf32, #tpu.memory_space<vmem>>, vector<1x48xf32>
    %5 = vector.broadcast %4 : vector<1x48xf32> to vector<8x48xf32>
    %6 = arith.addf %3, %5 : vector<8x48xf32>
    %c0_5 = arith.constant 0 : index
    %c0_6 = arith.constant 0 : index
    %7 = vector.load %arg4[%c0_5, %c0_6] : memref<8x48xf32, #tpu.memory_space<vmem>>, vector<8x48xf32>
    tpu.vector_store %arg4[%c0_5, %c0_6], %6 {strides = array<i32>} : memref<8x48xf32, #tpu.memory_space<vmem>>, vector<8x48xf32>,
    return
  }
  func.func @transform_0(%arg0: i32) -> (i32, i32) {
    %c0_i32 = arith.constant 0 : i32
    %c0_i32_0 = arith.constant 0 : i32
    return %arg0, %c0_i32 : i32, i32
  }
  func.func @transform_1(%arg0: i32) -> (i32, i32) {
    %c0_i32 = arith.constant 0 : i32
    %c0_i32_0 = arith.constant 0 : i32
    %c0_i32_1 = arith.constant 0 : i32
    return %c0_i32, %c0_i32_0 : i32, i32
  }
  func.func @transform_2(%arg0: i32) -> (i32, i32) {
    %c0_i32 = arith.constant 0 : i32
    %c0_i32_0 = arith.constant 0 : i32
    %c0_i32_1 = arith.constant 0 : i32
    return %c0_i32, %c0_i32_0 : i32, i32
  }
  func.func @transform_3(%arg0: i32) -> (i32, i32) {
    %c0_i32 = arith.constant 0 : i32
    %c0_i32_0 = arith.constant 0 : i32
    return %arg0, %c0_i32 : i32, i32
  }
}

module attributes {stable_mosaic.version = 11 : i64} {
  func.func @kernel(%arg0: memref<4x2x32xf32, #tpu.memory_space<vmem>>, %arg1: memref<4x2x48xf32, #tpu.memory_space<vmem>>, %arg2: memref<4x2x32xf32, #tpu.memory_space<vmem>>, %arg3: memref<8x32xf32, #tpu.memory_space<vmem>>, %arg4: memref<1x32xf32, #tpu.memory_space<vmem>>, %arg5: memref<4x2x32xf32, #tpu.memory_space<vmem>>) attributes {dimension_semantics = [], scalar_prefetch = 0 : i64, scratch_operands = 0 : i64, tpu.core_type = #tpu.core_type<tc>} {
    %c0 = arith.constant 0 : index
    %c0_0 = arith.constant 0 : index
    %0 = vector.load %arg3[%c0, %c0_0] : memref<8x32xf32, #tpu.memory_space<vmem>>, vector<8x32xf32>
    %1 = vector.shape_cast %0 : vector<8x32xf32> to vector<1x8x32xf32>
    %c0_1 = arith.constant 0 : index
    %c0_2 = arith.constant 0 : index
    %2 = vector.load %arg4[%c0_1, %c0_2] : memref<1x32xf32, #tpu.memory_space<vmem>>, vector<1x32xf32>
    %cst = arith.constant 0.000000e+00 : f32
    %3 = vector.broadcast %cst : f32 to vector<2x8x32xf32>
    %c0_i32 = arith.constant 0 : i32
    %c4_i32 = arith.constant 4 : i32
    %4 = arith.muli %c0_i32, %c4_i32 : i32
    %c0_i32_3 = arith.constant 0 : i32
    %5 = arith.addi %4, %c0_i32_3 : i32
    %6 = arith.index_cast %5 : i32 to index
    %c0_4 = arith.constant 0 : index
    %c0_5 = arith.constant 0 : index
    %7 = vector.load %arg0[%6, %c0_4, %c0_5] : memref<4x2x32xf32, #tpu.memory_space<vmem>>, vector<1x2x32xf32>
    %8 = vector.shape_cast %7 : vector<1x2x32xf32> to vector<2x32xf32>
    %9 = arith.index_cast %5 : i32 to index
    %c0_6 = arith.constant 0 : index
    %c0_7 = arith.constant 0 : index
    %10 = vector.load %arg2[%9, %c0_6, %c0_7] : memref<4x2x32xf32, #tpu.memory_space<vmem>>, vector<1x2x32xf32>
    %11 = vector.shape_cast %10 : vector<1x2x32xf32> to vector<2x32xf32>
    %12 = arith.index_cast %5 : i32 to index
    %c0_8 = arith.constant 0 : index
    %c0_9 = arith.constant 0 : index
    %13 = vector.load %arg1[%12, %c0_8, %c0_9] : memref<4x2x48xf32, #tpu.memory_space<vmem>>, vector<1x2x48xf32>
    %14 = vector.shape_cast %13 : vector<1x2x48xf32> to vector<2x48xf32>
    %15 = vector.extract_strided_slice %14 {offsets = [0, 0], sizes = [2, 32], strides = [1, 1]} : vector<2x48xf32> to vector<2x32xf32>
    %cst_10 = arith.constant 0.000000e+00 : f32
    %16 = vector.broadcast %cst_10 : f32 to vector<2x32xf32>
    %17 = arith.maximumf %15, %16 : vector<2x32xf32>
    %18 = math.absf %15 : vector<2x32xf32>
    %cst_11 = arith.constant 0.000000e+00 : f32
    %19 = vector.broadcast %cst_11 : f32 to vector<2x32xf32>
    %20 = arith.subf %19, %18 : vector<2x32xf32>
    %21 = math.exp %20 : vector<2x32xf32>
    %cst_12 = arith.constant 1.000000e+00 : f32
    %22 = vector.broadcast %cst_12 : f32 to vector<2x32xf32>
    %23 = arith.addf %22, %21 : vector<2x32xf32>
    %24 = math.log %23 : vector<2x32xf32>
    %25 = arith.addf %17, %24 : vector<2x32xf32>
    %26 = vector.extract_strided_slice %14 {offsets = [0, 32], sizes = [2, 8], strides = [1, 1]} : vector<2x48xf32> to vector<2x8xf32>
    %27 = vector.extract_strided_slice %14 {offsets = [0, 40], sizes = [2, 8], strides = [1, 1]} : vector<2x48xf32> to vector<2x8xf32>
    %28 = vector.shape_cast %25 : vector<2x32xf32> to vector<2x1x32xf32>
    %29 = vector.broadcast %28 : vector<2x1x32xf32> to vector<2x8x32xf32>
    %30 = vector.broadcast %1 : vector<1x8x32xf32> to vector<2x8x32xf32>
    %31 = arith.mulf %29, %30 : vector<2x8x32xf32>
    %32 = math.exp %31 : vector<2x8x32xf32>
    %33 = vector.shape_cast %26 : vector<2x8xf32> to vector<2x8x1xf32>
    %34 = arith.mulf %25, %8 : vector<2x32xf32>
    %35 = vector.shape_cast %34 : vector<2x32xf32> to vector<2x1x32xf32>
    %36 = vector.broadcast %33 : vector<2x8x1xf32> to vector<2x8x32xf32>
    %37 = vector.broadcast %35 : vector<2x1x32xf32> to vector<2x8x32xf32>
    %38 = arith.mulf %36, %37 : vector<2x8x32xf32>
    %39 = arith.mulf %32, %3 : vector<2x8x32xf32>
    %40 = arith.addf %39, %38 : vector<2x8x32xf32>
    %41 = vector.shape_cast %27 : vector<2x8xf32> to vector<2x8x1xf32>
    %42 = vector.broadcast %41 : vector<2x8x1xf32> to vector<2x8x32xf32>
    %43 = arith.mulf %42, %40 : vector<2x8x32xf32>
    %cst_13 = arith.constant dense<0.000000e+00> : vector<2x32xf32>
    %44 = vector.multi_reduction <add>, %43, %cst_13 [1] : vector<2x8x32xf32> to vector<2x32xf32>
    %45 = vector.broadcast %2 : vector<1x32xf32> to vector<2x32xf32>
    %46 = arith.mulf %45, %8 : vector<2x32xf32>
    %47 = arith.addf %44, %46 : vector<2x32xf32>
    %48 = arith.negf %11 : vector<2x32xf32>
    %49 = math.exp %48 : vector<2x32xf32>
    %cst_14 = arith.constant 1.000000e+00 : f32
    %50 = vector.broadcast %cst_14 : f32 to vector<2x32xf32>
    %51 = arith.addf %50, %49 : vector<2x32xf32>
    %52 = arith.divf %50, %51 : vector<2x32xf32>
    %53 = arith.mulf %11, %52 : vector<2x32xf32>
    %54 = arith.mulf %47, %53 : vector<2x32xf32>
    %55 = arith.index_cast %5 : i32 to index
    %c0_15 = arith.constant 0 : index
    %c0_16 = arith.constant 0 : index
    %56 = vector.load %arg5[%55, %c0_15, %c0_16] : memref<4x2x32xf32, #tpu.memory_space<vmem>>, vector<1x2x32xf32>
    %57 = vector.shape_cast %56 : vector<1x2x32xf32> to vector<2x32xf32>
    %58 = vector.shape_cast %54 : vector<2x32xf32> to vector<1x2x32xf32>
    tpu.vector_store %arg5[%55, %c0_15, %c0_16], %58 {strides = array<i32>} : memref<4x2x32xf32, #tpu.memory_space<vmem>>, vector<1x2x32xf32>,
    %c1_i32 = arith.constant 1 : i32
    %59 = arith.addi %4, %c1_i32 : i32
    %60 = arith.index_cast %59 : i32 to index
    %c0_17 = arith.constant 0 : index
    %c0_18 = arith.constant 0 : index
    %61 = vector.load %arg0[%60, %c0_17, %c0_18] : memref<4x2x32xf32, #tpu.memory_space<vmem>>, vector<1x2x32xf32>
    %62 = vector.shape_cast %61 : vector<1x2x32xf32> to vector<2x32xf32>
    %63 = arith.index_cast %59 : i32 to index
    %c0_19 = arith.constant 0 : index
    %c0_20 = arith.constant 0 : index
    %64 = vector.load %arg2[%63, %c0_19, %c0_20] : memref<4x2x32xf32, #tpu.memory_space<vmem>>, vector<1x2x32xf32>
    %65 = vector.shape_cast %64 : vector<1x2x32xf32> to vector<2x32xf32>
    %66 = arith.index_cast %59 : i32 to index
    %c0_21 = arith.constant 0 : index
    %c0_22 = arith.constant 0 : index
    %67 = vector.load %arg1[%66, %c0_21, %c0_22] : memref<4x2x48xf32, #tpu.memory_space<vmem>>, vector<1x2x48xf32>
    %68 = vector.shape_cast %67 : vector<1x2x48xf32> to vector<2x48xf32>
    %69 = vector.extract_strided_slice %68 {offsets = [0, 0], sizes = [2, 32], strides = [1, 1]} : vector<2x48xf32> to vector<2x32xf32>
    %cst_23 = arith.constant 0.000000e+00 : f32
    %70 = vector.broadcast %cst_23 : f32 to vector<2x32xf32>
    %71 = arith.maximumf %69, %70 : vector<2x32xf32>
    %72 = math.absf %69 : vector<2x32xf32>
    %cst_24 = arith.constant 0.000000e+00 : f32
    %73 = vector.broadcast %cst_24 : f32 to vector<2x32xf32>
    %74 = arith.subf %73, %72 : vector<2x32xf32>
    %75 = math.exp %74 : vector<2x32xf32>
    %cst_25 = arith.constant 1.000000e+00 : f32
    %76 = vector.broadcast %cst_25 : f32 to vector<2x32xf32>
    %77 = arith.addf %76, %75 : vector<2x32xf32>
    %78 = math.log %77 : vector<2x32xf32>
    %79 = arith.addf %71, %78 : vector<2x32xf32>
    %80 = vector.extract_strided_slice %68 {offsets = [0, 32], sizes = [2, 8], strides = [1, 1]} : vector<2x48xf32> to vector<2x8xf32>
    %81 = vector.extract_strided_slice %68 {offsets = [0, 40], sizes = [2, 8], strides = [1, 1]} : vector<2x48xf32> to vector<2x8xf32>
    %82 = vector.shape_cast %79 : vector<2x32xf32> to vector<2x1x32xf32>
    %83 = vector.broadcast %82 : vector<2x1x32xf32> to vector<2x8x32xf32>
    %84 = vector.broadcast %1 : vector<1x8x32xf32> to vector<2x8x32xf32>
    %85 = arith.mulf %83, %84 : vector<2x8x32xf32>
    %86 = math.exp %85 : vector<2x8x32xf32>
    %87 = vector.shape_cast %80 : vector<2x8xf32> to vector<2x8x1xf32>
    %88 = arith.mulf %79, %62 : vector<2x32xf32>
    %89 = vector.shape_cast %88 : vector<2x32xf32> to vector<2x1x32xf32>
    %90 = vector.broadcast %87 : vector<2x8x1xf32> to vector<2x8x32xf32>
    %91 = vector.broadcast %89 : vector<2x1x32xf32> to vector<2x8x32xf32>
    %92 = arith.mulf %90, %91 : vector<2x8x32xf32>
    %93 = arith.mulf %86, %40 : vector<2x8x32xf32>
    %94 = arith.addf %93, %92 : vector<2x8x32xf32>
    %95 = vector.shape_cast %81 : vector<2x8xf32> to vector<2x8x1xf32>
    %96 = vector.broadcast %95 : vector<2x8x1xf32> to vector<2x8x32xf32>
    %97 = arith.mulf %96, %94 : vector<2x8x32xf32>
    %cst_26 = arith.constant dense<0.000000e+00> : vector<2x32xf32>
    %98 = vector.multi_reduction <add>, %97, %cst_26 [1] : vector<2x8x32xf32> to vector<2x32xf32>
    %99 = vector.broadcast %2 : vector<1x32xf32> to vector<2x32xf32>
    %100 = arith.mulf %99, %62 : vector<2x32xf32>
    %101 = arith.addf %98, %100 : vector<2x32xf32>
    %102 = arith.negf %65 : vector<2x32xf32>
    %103 = math.exp %102 : vector<2x32xf32>
    %cst_27 = arith.constant 1.000000e+00 : f32
    %104 = vector.broadcast %cst_27 : f32 to vector<2x32xf32>
    %105 = arith.addf %104, %103 : vector<2x32xf32>
    %106 = arith.divf %104, %105 : vector<2x32xf32>
    %107 = arith.mulf %65, %106 : vector<2x32xf32>
    %108 = arith.mulf %101, %107 : vector<2x32xf32>
    %109 = arith.index_cast %59 : i32 to index
    %c0_28 = arith.constant 0 : index
    %c0_29 = arith.constant 0 : index
    %110 = vector.load %arg5[%109, %c0_28, %c0_29] : memref<4x2x32xf32, #tpu.memory_space<vmem>>, vector<1x2x32xf32>
    %111 = vector.shape_cast %110 : vector<1x2x32xf32> to vector<2x32xf32>
    %112 = vector.shape_cast %108 : vector<2x32xf32> to vector<1x2x32xf32>
    tpu.vector_store %arg5[%109, %c0_28, %c0_29], %112 {strides = array<i32>} : memref<4x2x32xf32, #tpu.memory_space<vmem>>, vector<1x2x32xf32>,
    %c2_i32 = arith.constant 2 : i32
    %113 = arith.addi %4, %c2_i32 : i32
    %114 = arith.index_cast %113 : i32 to index
    %c0_30 = arith.constant 0 : index
    %c0_31 = arith.constant 0 : index
    %115 = vector.load %arg0[%114, %c0_30, %c0_31] : memref<4x2x32xf32, #tpu.memory_space<vmem>>, vector<1x2x32xf32>
    %116 = vector.shape_cast %115 : vector<1x2x32xf32> to vector<2x32xf32>
    %117 = arith.index_cast %113 : i32 to index
    %c0_32 = arith.constant 0 : index
    %c0_33 = arith.constant 0 : index
    %118 = vector.load %arg2[%117, %c0_32, %c0_33] : memref<4x2x32xf32, #tpu.memory_space<vmem>>, vector<1x2x32xf32>
    %119 = vector.shape_cast %118 : vector<1x2x32xf32> to vector<2x32xf32>
    %120 = arith.index_cast %113 : i32 to index
    %c0_34 = arith.constant 0 : index
    %c0_35 = arith.constant 0 : index
    %121 = vector.load %arg1[%120, %c0_34, %c0_35] : memref<4x2x48xf32, #tpu.memory_space<vmem>>, vector<1x2x48xf32>
    %122 = vector.shape_cast %121 : vector<1x2x48xf32> to vector<2x48xf32>
    %123 = vector.extract_strided_slice %122 {offsets = [0, 0], sizes = [2, 32], strides = [1, 1]} : vector<2x48xf32> to vector<2x32xf32>
    %cst_36 = arith.constant 0.000000e+00 : f32
    %124 = vector.broadcast %cst_36 : f32 to vector<2x32xf32>
    %125 = arith.maximumf %123, %124 : vector<2x32xf32>
    %126 = math.absf %123 : vector<2x32xf32>
    %cst_37 = arith.constant 0.000000e+00 : f32
    %127 = vector.broadcast %cst_37 : f32 to vector<2x32xf32>
    %128 = arith.subf %127, %126 : vector<2x32xf32>
    %129 = math.exp %128 : vector<2x32xf32>
    %cst_38 = arith.constant 1.000000e+00 : f32
    %130 = vector.broadcast %cst_38 : f32 to vector<2x32xf32>
    %131 = arith.addf %130, %129 : vector<2x32xf32>
    %132 = math.log %131 : vector<2x32xf32>
    %133 = arith.addf %125, %132 : vector<2x32xf32>
    %134 = vector.extract_strided_slice %122 {offsets = [0, 32], sizes = [2, 8], strides = [1, 1]} : vector<2x48xf32> to vector<2x8xf32>
    %135 = vector.extract_strided_slice %122 {offsets = [0, 40], sizes = [2, 8], strides = [1, 1]} : vector<2x48xf32> to vector<2x8xf32>
    %136 = vector.shape_cast %133 : vector<2x32xf32> to vector<2x1x32xf32>
    %137 = vector.broadcast %136 : vector<2x1x32xf32> to vector<2x8x32xf32>
    %138 = vector.broadcast %1 : vector<1x8x32xf32> to vector<2x8x32xf32>
    %139 = arith.mulf %137, %138 : vector<2x8x32xf32>
    %140 = math.exp %139 : vector<2x8x32xf32>
    %141 = vector.shape_cast %134 : vector<2x8xf32> to vector<2x8x1xf32>
    %142 = arith.mulf %133, %116 : vector<2x32xf32>
    %143 = vector.shape_cast %142 : vector<2x32xf32> to vector<2x1x32xf32>
    %144 = vector.broadcast %141 : vector<2x8x1xf32> to vector<2x8x32xf32>
    %145 = vector.broadcast %143 : vector<2x1x32xf32> to vector<2x8x32xf32>
    %146 = arith.mulf %144, %145 : vector<2x8x32xf32>
    %147 = arith.mulf %140, %94 : vector<2x8x32xf32>
    %148 = arith.addf %147, %146 : vector<2x8x32xf32>
    %149 = vector.shape_cast %135 : vector<2x8xf32> to vector<2x8x1xf32>
    %150 = vector.broadcast %149 : vector<2x8x1xf32> to vector<2x8x32xf32>
    %151 = arith.mulf %150, %148 : vector<2x8x32xf32>
    %cst_39 = arith.constant dense<0.000000e+00> : vector<2x32xf32>
    %152 = vector.multi_reduction <add>, %151, %cst_39 [1] : vector<2x8x32xf32> to vector<2x32xf32>
    %153 = vector.broadcast %2 : vector<1x32xf32> to vector<2x32xf32>
    %154 = arith.mulf %153, %116 : vector<2x32xf32>
    %155 = arith.addf %152, %154 : vector<2x32xf32>
    %156 = arith.negf %119 : vector<2x32xf32>
    %157 = math.exp %156 : vector<2x32xf32>
    %cst_40 = arith.constant 1.000000e+00 : f32
    %158 = vector.broadcast %cst_40 : f32 to vector<2x32xf32>
    %159 = arith.addf %158, %157 : vector<2x32xf32>
    %160 = arith.divf %158, %159 : vector<2x32xf32>
    %161 = arith.mulf %119, %160 : vector<2x32xf32>
    %162 = arith.mulf %155, %161 : vector<2x32xf32>
    %163 = arith.index_cast %113 : i32 to index
    %c0_41 = arith.constant 0 : index
    %c0_42 = arith.constant 0 : index
    %164 = vector.load %arg5[%163, %c0_41, %c0_42] : memref<4x2x32xf32, #tpu.memory_space<vmem>>, vector<1x2x32xf32>
    %165 = vector.shape_cast %164 : vector<1x2x32xf32> to vector<2x32xf32>
    %166 = vector.shape_cast %162 : vector<2x32xf32> to vector<1x2x32xf32>
    tpu.vector_store %arg5[%163, %c0_41, %c0_42], %166 {strides = array<i32>} : memref<4x2x32xf32, #tpu.memory_space<vmem>>, vector<1x2x32xf32>,
    %c3_i32 = arith.constant 3 : i32
    %167 = arith.addi %4, %c3_i32 : i32
    %168 = arith.index_cast %167 : i32 to index
    %c0_43 = arith.constant 0 : index
    %c0_44 = arith.constant 0 : index
    %169 = vector.load %arg0[%168, %c0_43, %c0_44] : memref<4x2x32xf32, #tpu.memory_space<vmem>>, vector<1x2x32xf32>
    %170 = vector.shape_cast %169 : vector<1x2x32xf32> to vector<2x32xf32>
    %171 = arith.index_cast %167 : i32 to index
    %c0_45 = arith.constant 0 : index
    %c0_46 = arith.constant 0 : index
    %172 = vector.load %arg2[%171, %c0_45, %c0_46] : memref<4x2x32xf32, #tpu.memory_space<vmem>>, vector<1x2x32xf32>
    %173 = vector.shape_cast %172 : vector<1x2x32xf32> to vector<2x32xf32>
    %174 = arith.index_cast %167 : i32 to index
    %c0_47 = arith.constant 0 : index
    %c0_48 = arith.constant 0 : index
    %175 = vector.load %arg1[%174, %c0_47, %c0_48] : memref<4x2x48xf32, #tpu.memory_space<vmem>>, vector<1x2x48xf32>
    %176 = vector.shape_cast %175 : vector<1x2x48xf32> to vector<2x48xf32>
    %177 = vector.extract_strided_slice %176 {offsets = [0, 0], sizes = [2, 32], strides = [1, 1]} : vector<2x48xf32> to vector<2x32xf32>
    %cst_49 = arith.constant 0.000000e+00 : f32
    %178 = vector.broadcast %cst_49 : f32 to vector<2x32xf32>
    %179 = arith.maximumf %177, %178 : vector<2x32xf32>
    %180 = math.absf %177 : vector<2x32xf32>
    %cst_50 = arith.constant 0.000000e+00 : f32
    %181 = vector.broadcast %cst_50 : f32 to vector<2x32xf32>
    %182 = arith.subf %181, %180 : vector<2x32xf32>
    %183 = math.exp %182 : vector<2x32xf32>
    %cst_51 = arith.constant 1.000000e+00 : f32
    %184 = vector.broadcast %cst_51 : f32 to vector<2x32xf32>
    %185 = arith.addf %184, %183 : vector<2x32xf32>
    %186 = math.log %185 : vector<2x32xf32>
    %187 = arith.addf %179, %186 : vector<2x32xf32>
    %188 = vector.extract_strided_slice %176 {offsets = [0, 32], sizes = [2, 8], strides = [1, 1]} : vector<2x48xf32> to vector<2x8xf32>
    %189 = vector.extract_strided_slice %176 {offsets = [0, 40], sizes = [2, 8], strides = [1, 1]} : vector<2x48xf32> to vector<2x8xf32>
    %190 = vector.shape_cast %187 : vector<2x32xf32> to vector<2x1x32xf32>
    %191 = vector.broadcast %190 : vector<2x1x32xf32> to vector<2x8x32xf32>
    %192 = vector.broadcast %1 : vector<1x8x32xf32> to vector<2x8x32xf32>
    %193 = arith.mulf %191, %192 : vector<2x8x32xf32>
    %194 = math.exp %193 : vector<2x8x32xf32>
    %195 = vector.shape_cast %188 : vector<2x8xf32> to vector<2x8x1xf32>
    %196 = arith.mulf %187, %170 : vector<2x32xf32>
    %197 = vector.shape_cast %196 : vector<2x32xf32> to vector<2x1x32xf32>
    %198 = vector.broadcast %195 : vector<2x8x1xf32> to vector<2x8x32xf32>
    %199 = vector.broadcast %197 : vector<2x1x32xf32> to vector<2x8x32xf32>
    %200 = arith.mulf %198, %199 : vector<2x8x32xf32>
    %201 = arith.mulf %194, %148 : vector<2x8x32xf32>
    %202 = arith.addf %201, %200 : vector<2x8x32xf32>
    %203 = vector.shape_cast %189 : vector<2x8xf32> to vector<2x8x1xf32>
    %204 = vector.broadcast %203 : vector<2x8x1xf32> to vector<2x8x32xf32>
    %205 = arith.mulf %204, %202 : vector<2x8x32xf32>
    %cst_52 = arith.constant dense<0.000000e+00> : vector<2x32xf32>
    %206 = vector.multi_reduction <add>, %205, %cst_52 [1] : vector<2x8x32xf32> to vector<2x32xf32>
    %207 = vector.broadcast %2 : vector<1x32xf32> to vector<2x32xf32>
    %208 = arith.mulf %207, %170 : vector<2x32xf32>
    %209 = arith.addf %206, %208 : vector<2x32xf32>
    %210 = arith.negf %173 : vector<2x32xf32>
    %211 = math.exp %210 : vector<2x32xf32>
    %cst_53 = arith.constant 1.000000e+00 : f32
    %212 = vector.broadcast %cst_53 : f32 to vector<2x32xf32>
    %213 = arith.addf %212, %211 : vector<2x32xf32>
    %214 = arith.divf %212, %213 : vector<2x32xf32>
    %215 = arith.mulf %173, %214 : vector<2x32xf32>
    %216 = arith.mulf %209, %215 : vector<2x32xf32>
    %217 = arith.index_cast %167 : i32 to index
    %c0_54 = arith.constant 0 : index
    %c0_55 = arith.constant 0 : index
    %218 = vector.load %arg5[%217, %c0_54, %c0_55] : memref<4x2x32xf32, #tpu.memory_space<vmem>>, vector<1x2x32xf32>
    %219 = vector.shape_cast %218 : vector<1x2x32xf32> to vector<2x32xf32>
    %220 = vector.shape_cast %216 : vector<2x32xf32> to vector<1x2x32xf32>
    tpu.vector_store %arg5[%217, %c0_54, %c0_55], %220 {strides = array<i32>} : memref<4x2x32xf32, #tpu.memory_space<vmem>>, vector<1x2x32xf32>,
    %c1_i32_56 = arith.constant 1 : i32
    return
  }
}

module attributes {stable_mosaic.version = 11 : i64} {
  func.func @kernel(%arg0: memref<4x2x32xf32, #tpu.memory_space<vmem>>, %arg1: memref<4x2x48xf32, #tpu.memory_space<vmem>>, %arg2: memref<4x2x32xf32, #tpu.memory_space<vmem>>, %arg3: memref<8x32xf32, #tpu.memory_space<vmem>>, %arg4: memref<1x32xf32, #tpu.memory_space<vmem>>, %arg5: memref<4x2x32xf32, #tpu.memory_space<vmem>>) attributes {dimension_semantics = [], scalar_prefetch = 0 : i64, scratch_operands = 0 : i64, tpu.core_type = #tpu.core_type<tc>} {
    %c0 = arith.constant 0 : index
    %c0_0 = arith.constant 0 : index
    %0 = vector.load %arg3[%c0, %c0_0] : memref<8x32xf32, #tpu.memory_space<vmem>>, vector<8x32xf32>
    %1 = vector.shape_cast %0 : vector<8x32xf32> to vector<1x8x32xf32>
    %c0_1 = arith.constant 0 : index
    %c0_2 = arith.constant 0 : index
    %2 = vector.load %arg4[%c0_1, %c0_2] : memref<1x32xf32, #tpu.memory_space<vmem>>, vector<1x32xf32>
    %cst = arith.constant 0.000000e+00 : f32
    %3 = vector.broadcast %cst : f32 to vector<2x8x32xf32>
    %c0_i32 = arith.constant 0 : i32
    %c4_i32 = arith.constant 4 : i32
    %4 = arith.muli %c0_i32, %c4_i32 : i32
    %c0_i32_3 = arith.constant 0 : i32
    %5 = arith.addi %4, %c0_i32_3 : i32
    %c3_i32 = arith.constant 3 : i32
    %6 = arith.subi %c3_i32, %5 : i32
    %7 = arith.index_cast %6 : i32 to index
    %c0_4 = arith.constant 0 : index
    %c0_5 = arith.constant 0 : index
    %8 = vector.load %arg0[%7, %c0_4, %c0_5] : memref<4x2x32xf32, #tpu.memory_space<vmem>>, vector<1x2x32xf32>
    %9 = vector.shape_cast %8 : vector<1x2x32xf32> to vector<2x32xf32>
    %10 = arith.index_cast %6 : i32 to index
    %c0_6 = arith.constant 0 : index
    %c0_7 = arith.constant 0 : index
    %11 = vector.load %arg2[%10, %c0_6, %c0_7] : memref<4x2x32xf32, #tpu.memory_space<vmem>>, vector<1x2x32xf32>
    %12 = vector.shape_cast %11 : vector<1x2x32xf32> to vector<2x32xf32>
    %13 = arith.index_cast %6 : i32 to index
    %c0_8 = arith.constant 0 : index
    %c0_9 = arith.constant 0 : index
    %14 = vector.load %arg1[%13, %c0_8, %c0_9] : memref<4x2x48xf32, #tpu.memory_space<vmem>>, vector<1x2x48xf32>
    %15 = vector.shape_cast %14 : vector<1x2x48xf32> to vector<2x48xf32>
    %16 = vector.extract_strided_slice %15 {offsets = [0, 0], sizes = [2, 32], strides = [1, 1]} : vector<2x48xf32> to vector<2x32xf32>
    %cst_10 = arith.constant 0.000000e+00 : f32
    %17 = vector.broadcast %cst_10 : f32 to vector<2x32xf32>
    %18 = arith.maximumf %16, %17 : vector<2x32xf32>
    %19 = math.absf %16 : vector<2x32xf32>
    %cst_11 = arith.constant 0.000000e+00 : f32
    %20 = vector.broadcast %cst_11 : f32 to vector<2x32xf32>
    %21 = arith.subf %20, %19 : vector<2x32xf32>
    %22 = math.exp %21 : vector<2x32xf32>
    %cst_12 = arith.constant 1.000000e+00 : f32
    %23 = vector.broadcast %cst_12 : f32 to vector<2x32xf32>
    %24 = arith.addf %23, %22 : vector<2x32xf32>
    %25 = math.log %24 : vector<2x32xf32>
    %26 = arith.addf %18, %25 : vector<2x32xf32>
    %27 = vector.extract_strided_slice %15 {offsets = [0, 32], sizes = [2, 8], strides = [1, 1]} : vector<2x48xf32> to vector<2x8xf32>
    %28 = vector.extract_strided_slice %15 {offsets = [0, 40], sizes = [2, 8], strides = [1, 1]} : vector<2x48xf32> to vector<2x8xf32>
    %29 = vector.shape_cast %26 : vector<2x32xf32> to vector<2x1x32xf32>
    %30 = vector.broadcast %29 : vector<2x1x32xf32> to vector<2x8x32xf32>
    %31 = vector.broadcast %1 : vector<1x8x32xf32> to vector<2x8x32xf32>
    %32 = arith.mulf %30, %31 : vector<2x8x32xf32>
    %33 = math.exp %32 : vector<2x8x32xf32>
    %34 = vector.shape_cast %27 : vector<2x8xf32> to vector<2x8x1xf32>
    %35 = arith.mulf %26, %9 : vector<2x32xf32>
    %36 = vector.shape_cast %35 : vector<2x32xf32> to vector<2x1x32xf32>
    %37 = vector.broadcast %34 : vector<2x8x1xf32> to vector<2x8x32xf32>
    %38 = vector.broadcast %36 : vector<2x1x32xf32> to vector<2x8x32xf32>
    %39 = arith.mulf %37, %38 : vector<2x8x32xf32>
    %40 = arith.mulf %33, %3 : vector<2x8x32xf32>
    %41 = arith.addf %40, %39 : vector<2x8x32xf32>
    %42 = vector.shape_cast %28 : vector<2x8xf32> to vector<2x8x1xf32>
    %43 = vector.broadcast %42 : vector<2x8x1xf32> to vector<2x8x32xf32>
    %44 = arith.mulf %43, %41 : vector<2x8x32xf32>
    %cst_13 = arith.constant dense<0.000000e+00> : vector<2x32xf32>
    %45 = vector.multi_reduction <add>, %44, %cst_13 [1] : vector<2x8x32xf32> to vector<2x32xf32>
    %46 = vector.broadcast %2 : vector<1x32xf32> to vector<2x32xf32>
    %47 = arith.mulf %46, %9 : vector<2x32xf32>
    %48 = arith.addf %45, %47 : vector<2x32xf32>
    %49 = arith.negf %12 : vector<2x32xf32>
    %50 = math.exp %49 : vector<2x32xf32>
    %cst_14 = arith.constant 1.000000e+00 : f32
    %51 = vector.broadcast %cst_14 : f32 to vector<2x32xf32>
    %52 = arith.addf %51, %50 : vector<2x32xf32>
    %53 = arith.divf %51, %52 : vector<2x32xf32>
    %54 = arith.mulf %12, %53 : vector<2x32xf32>
    %55 = arith.mulf %48, %54 : vector<2x32xf32>
    %56 = arith.index_cast %6 : i32 to index
    %c0_15 = arith.constant 0 : index
    %c0_16 = arith.constant 0 : index
    %57 = vector.load %arg5[%56, %c0_15, %c0_16] : memref<4x2x32xf32, #tpu.memory_space<vmem>>, vector<1x2x32xf32>
    %58 = vector.shape_cast %57 : vector<1x2x32xf32> to vector<2x32xf32>
    %59 = vector.shape_cast %55 : vector<2x32xf32> to vector<1x2x32xf32>
    tpu.vector_store %arg5[%56, %c0_15, %c0_16], %59 {strides = array<i32>} : memref<4x2x32xf32, #tpu.memory_space<vmem>>, vector<1x2x32xf32>,
    %c1_i32 = arith.constant 1 : i32
    %60 = arith.addi %4, %c1_i32 : i32
    %c3_i32_17 = arith.constant 3 : i32
    %61 = arith.subi %c3_i32_17, %60 : i32
    %62 = arith.index_cast %61 : i32 to index
    %c0_18 = arith.constant 0 : index
    %c0_19 = arith.constant 0 : index
    %63 = vector.load %arg0[%62, %c0_18, %c0_19] : memref<4x2x32xf32, #tpu.memory_space<vmem>>, vector<1x2x32xf32>
    %64 = vector.shape_cast %63 : vector<1x2x32xf32> to vector<2x32xf32>
    %65 = arith.index_cast %61 : i32 to index
    %c0_20 = arith.constant 0 : index
    %c0_21 = arith.constant 0 : index
    %66 = vector.load %arg2[%65, %c0_20, %c0_21] : memref<4x2x32xf32, #tpu.memory_space<vmem>>, vector<1x2x32xf32>
    %67 = vector.shape_cast %66 : vector<1x2x32xf32> to vector<2x32xf32>
    %68 = arith.index_cast %61 : i32 to index
    %c0_22 = arith.constant 0 : index
    %c0_23 = arith.constant 0 : index
    %69 = vector.load %arg1[%68, %c0_22, %c0_23] : memref<4x2x48xf32, #tpu.memory_space<vmem>>, vector<1x2x48xf32>
    %70 = vector.shape_cast %69 : vector<1x2x48xf32> to vector<2x48xf32>
    %71 = vector.extract_strided_slice %70 {offsets = [0, 0], sizes = [2, 32], strides = [1, 1]} : vector<2x48xf32> to vector<2x32xf32>
    %cst_24 = arith.constant 0.000000e+00 : f32
    %72 = vector.broadcast %cst_24 : f32 to vector<2x32xf32>
    %73 = arith.maximumf %71, %72 : vector<2x32xf32>
    %74 = math.absf %71 : vector<2x32xf32>
    %cst_25 = arith.constant 0.000000e+00 : f32
    %75 = vector.broadcast %cst_25 : f32 to vector<2x32xf32>
    %76 = arith.subf %75, %74 : vector<2x32xf32>
    %77 = math.exp %76 : vector<2x32xf32>
    %cst_26 = arith.constant 1.000000e+00 : f32
    %78 = vector.broadcast %cst_26 : f32 to vector<2x32xf32>
    %79 = arith.addf %78, %77 : vector<2x32xf32>
    %80 = math.log %79 : vector<2x32xf32>
    %81 = arith.addf %73, %80 : vector<2x32xf32>
    %82 = vector.extract_strided_slice %70 {offsets = [0, 32], sizes = [2, 8], strides = [1, 1]} : vector<2x48xf32> to vector<2x8xf32>
    %83 = vector.extract_strided_slice %70 {offsets = [0, 40], sizes = [2, 8], strides = [1, 1]} : vector<2x48xf32> to vector<2x8xf32>
    %84 = vector.shape_cast %81 : vector<2x32xf32> to vector<2x1x32xf32>
    %85 = vector.broadcast %84 : vector<2x1x32xf32> to vector<2x8x32xf32>
    %86 = vector.broadcast %1 : vector<1x8x32xf32> to vector<2x8x32xf32>
    %87 = arith.mulf %85, %86 : vector<2x8x32xf32>
    %88 = math.exp %87 : vector<2x8x32xf32>
    %89 = vector.shape_cast %82 : vector<2x8xf32> to vector<2x8x1xf32>
    %90 = arith.mulf %81, %64 : vector<2x32xf32>
    %91 = vector.shape_cast %90 : vector<2x32xf32> to vector<2x1x32xf32>
    %92 = vector.broadcast %89 : vector<2x8x1xf32> to vector<2x8x32xf32>
    %93 = vector.broadcast %91 : vector<2x1x32xf32> to vector<2x8x32xf32>
    %94 = arith.mulf %92, %93 : vector<2x8x32xf32>
    %95 = arith.mulf %88, %41 : vector<2x8x32xf32>
    %96 = arith.addf %95, %94 : vector<2x8x32xf32>
    %97 = vector.shape_cast %83 : vector<2x8xf32> to vector<2x8x1xf32>
    %98 = vector.broadcast %97 : vector<2x8x1xf32> to vector<2x8x32xf32>
    %99 = arith.mulf %98, %96 : vector<2x8x32xf32>
    %cst_27 = arith.constant dense<0.000000e+00> : vector<2x32xf32>
    %100 = vector.multi_reduction <add>, %99, %cst_27 [1] : vector<2x8x32xf32> to vector<2x32xf32>
    %101 = vector.broadcast %2 : vector<1x32xf32> to vector<2x32xf32>
    %102 = arith.mulf %101, %64 : vector<2x32xf32>
    %103 = arith.addf %100, %102 : vector<2x32xf32>
    %104 = arith.negf %67 : vector<2x32xf32>
    %105 = math.exp %104 : vector<2x32xf32>
    %cst_28 = arith.constant 1.000000e+00 : f32
    %106 = vector.broadcast %cst_28 : f32 to vector<2x32xf32>
    %107 = arith.addf %106, %105 : vector<2x32xf32>
    %108 = arith.divf %106, %107 : vector<2x32xf32>
    %109 = arith.mulf %67, %108 : vector<2x32xf32>
    %110 = arith.mulf %103, %109 : vector<2x32xf32>
    %111 = arith.index_cast %61 : i32 to index
    %c0_29 = arith.constant 0 : index
    %c0_30 = arith.constant 0 : index
    %112 = vector.load %arg5[%111, %c0_29, %c0_30] : memref<4x2x32xf32, #tpu.memory_space<vmem>>, vector<1x2x32xf32>
    %113 = vector.shape_cast %112 : vector<1x2x32xf32> to vector<2x32xf32>
    %114 = vector.shape_cast %110 : vector<2x32xf32> to vector<1x2x32xf32>
    tpu.vector_store %arg5[%111, %c0_29, %c0_30], %114 {strides = array<i32>} : memref<4x2x32xf32, #tpu.memory_space<vmem>>, vector<1x2x32xf32>,
    %c2_i32 = arith.constant 2 : i32
    %115 = arith.addi %4, %c2_i32 : i32
    %c3_i32_31 = arith.constant 3 : i32
    %116 = arith.subi %c3_i32_31, %115 : i32
    %117 = arith.index_cast %116 : i32 to index
    %c0_32 = arith.constant 0 : index
    %c0_33 = arith.constant 0 : index
    %118 = vector.load %arg0[%117, %c0_32, %c0_33] : memref<4x2x32xf32, #tpu.memory_space<vmem>>, vector<1x2x32xf32>
    %119 = vector.shape_cast %118 : vector<1x2x32xf32> to vector<2x32xf32>
    %120 = arith.index_cast %116 : i32 to index
    %c0_34 = arith.constant 0 : index
    %c0_35 = arith.constant 0 : index
    %121 = vector.load %arg2[%120, %c0_34, %c0_35] : memref<4x2x32xf32, #tpu.memory_space<vmem>>, vector<1x2x32xf32>
    %122 = vector.shape_cast %121 : vector<1x2x32xf32> to vector<2x32xf32>
    %123 = arith.index_cast %116 : i32 to index
    %c0_36 = arith.constant 0 : index
    %c0_37 = arith.constant 0 : index
    %124 = vector.load %arg1[%123, %c0_36, %c0_37] : memref<4x2x48xf32, #tpu.memory_space<vmem>>, vector<1x2x48xf32>
    %125 = vector.shape_cast %124 : vector<1x2x48xf32> to vector<2x48xf32>
    %126 = vector.extract_strided_slice %125 {offsets = [0, 0], sizes = [2, 32], strides = [1, 1]} : vector<2x48xf32> to vector<2x32xf32>
    %cst_38 = arith.constant 0.000000e+00 : f32
    %127 = vector.broadcast %cst_38 : f32 to vector<2x32xf32>
    %128 = arith.maximumf %126, %127 : vector<2x32xf32>
    %129 = math.absf %126 : vector<2x32xf32>
    %cst_39 = arith.constant 0.000000e+00 : f32
    %130 = vector.broadcast %cst_39 : f32 to vector<2x32xf32>
    %131 = arith.subf %130, %129 : vector<2x32xf32>
    %132 = math.exp %131 : vector<2x32xf32>
    %cst_40 = arith.constant 1.000000e+00 : f32
    %133 = vector.broadcast %cst_40 : f32 to vector<2x32xf32>
    %134 = arith.addf %133, %132 : vector<2x32xf32>
    %135 = math.log %134 : vector<2x32xf32>
    %136 = arith.addf %128, %135 : vector<2x32xf32>
    %137 = vector.extract_strided_slice %125 {offsets = [0, 32], sizes = [2, 8], strides = [1, 1]} : vector<2x48xf32> to vector<2x8xf32>
    %138 = vector.extract_strided_slice %125 {offsets = [0, 40], sizes = [2, 8], strides = [1, 1]} : vector<2x48xf32> to vector<2x8xf32>
    %139 = vector.shape_cast %136 : vector<2x32xf32> to vector<2x1x32xf32>
    %140 = vector.broadcast %139 : vector<2x1x32xf32> to vector<2x8x32xf32>
    %141 = vector.broadcast %1 : vector<1x8x32xf32> to vector<2x8x32xf32>
    %142 = arith.mulf %140, %141 : vector<2x8x32xf32>
    %143 = math.exp %142 : vector<2x8x32xf32>
    %144 = vector.shape_cast %137 : vector<2x8xf32> to vector<2x8x1xf32>
    %145 = arith.mulf %136, %119 : vector<2x32xf32>
    %146 = vector.shape_cast %145 : vector<2x32xf32> to vector<2x1x32xf32>
    %147 = vector.broadcast %144 : vector<2x8x1xf32> to vector<2x8x32xf32>
    %148 = vector.broadcast %146 : vector<2x1x32xf32> to vector<2x8x32xf32>
    %149 = arith.mulf %147, %148 : vector<2x8x32xf32>
    %150 = arith.mulf %143, %96 : vector<2x8x32xf32>
    %151 = arith.addf %150, %149 : vector<2x8x32xf32>
    %152 = vector.shape_cast %138 : vector<2x8xf32> to vector<2x8x1xf32>
    %153 = vector.broadcast %152 : vector<2x8x1xf32> to vector<2x8x32xf32>
    %154 = arith.mulf %153, %151 : vector<2x8x32xf32>
    %cst_41 = arith.constant dense<0.000000e+00> : vector<2x32xf32>
    %155 = vector.multi_reduction <add>, %154, %cst_41 [1] : vector<2x8x32xf32> to vector<2x32xf32>
    %156 = vector.broadcast %2 : vector<1x32xf32> to vector<2x32xf32>
    %157 = arith.mulf %156, %119 : vector<2x32xf32>
    %158 = arith.addf %155, %157 : vector<2x32xf32>
    %159 = arith.negf %122 : vector<2x32xf32>
    %160 = math.exp %159 : vector<2x32xf32>
    %cst_42 = arith.constant 1.000000e+00 : f32
    %161 = vector.broadcast %cst_42 : f32 to vector<2x32xf32>
    %162 = arith.addf %161, %160 : vector<2x32xf32>
    %163 = arith.divf %161, %162 : vector<2x32xf32>
    %164 = arith.mulf %122, %163 : vector<2x32xf32>
    %165 = arith.mulf %158, %164 : vector<2x32xf32>
    %166 = arith.index_cast %116 : i32 to index
    %c0_43 = arith.constant 0 : index
    %c0_44 = arith.constant 0 : index
    %167 = vector.load %arg5[%166, %c0_43, %c0_44] : memref<4x2x32xf32, #tpu.memory_space<vmem>>, vector<1x2x32xf32>
    %168 = vector.shape_cast %167 : vector<1x2x32xf32> to vector<2x32xf32>
    %169 = vector.shape_cast %165 : vector<2x32xf32> to vector<1x2x32xf32>
    tpu.vector_store %arg5[%166, %c0_43, %c0_44], %169 {strides = array<i32>} : memref<4x2x32xf32, #tpu.memory_space<vmem>>, vector<1x2x32xf32>,
    %c3_i32_45 = arith.constant 3 : i32
    %170 = arith.addi %4, %c3_i32_45 : i32
    %c3_i32_46 = arith.constant 3 : i32
    %171 = arith.subi %c3_i32_46, %170 : i32
    %172 = arith.index_cast %171 : i32 to index
    %c0_47 = arith.constant 0 : index
    %c0_48 = arith.constant 0 : index
    %173 = vector.load %arg0[%172, %c0_47, %c0_48] : memref<4x2x32xf32, #tpu.memory_space<vmem>>, vector<1x2x32xf32>
    %174 = vector.shape_cast %173 : vector<1x2x32xf32> to vector<2x32xf32>
    %175 = arith.index_cast %171 : i32 to index
    %c0_49 = arith.constant 0 : index
    %c0_50 = arith.constant 0 : index
    %176 = vector.load %arg2[%175, %c0_49, %c0_50] : memref<4x2x32xf32, #tpu.memory_space<vmem>>, vector<1x2x32xf32>
    %177 = vector.shape_cast %176 : vector<1x2x32xf32> to vector<2x32xf32>
    %178 = arith.index_cast %171 : i32 to index
    %c0_51 = arith.constant 0 : index
    %c0_52 = arith.constant 0 : index
    %179 = vector.load %arg1[%178, %c0_51, %c0_52] : memref<4x2x48xf32, #tpu.memory_space<vmem>>, vector<1x2x48xf32>
    %180 = vector.shape_cast %179 : vector<1x2x48xf32> to vector<2x48xf32>
    %181 = vector.extract_strided_slice %180 {offsets = [0, 0], sizes = [2, 32], strides = [1, 1]} : vector<2x48xf32> to vector<2x32xf32>
    %cst_53 = arith.constant 0.000000e+00 : f32
    %182 = vector.broadcast %cst_53 : f32 to vector<2x32xf32>
    %183 = arith.maximumf %181, %182 : vector<2x32xf32>
    %184 = math.absf %181 : vector<2x32xf32>
    %cst_54 = arith.constant 0.000000e+00 : f32
    %185 = vector.broadcast %cst_54 : f32 to vector<2x32xf32>
    %186 = arith.subf %185, %184 : vector<2x32xf32>
    %187 = math.exp %186 : vector<2x32xf32>
    %cst_55 = arith.constant 1.000000e+00 : f32
    %188 = vector.broadcast %cst_55 : f32 to vector<2x32xf32>
    %189 = arith.addf %188, %187 : vector<2x32xf32>
    %190 = math.log %189 : vector<2x32xf32>
    %191 = arith.addf %183, %190 : vector<2x32xf32>
    %192 = vector.extract_strided_slice %180 {offsets = [0, 32], sizes = [2, 8], strides = [1, 1]} : vector<2x48xf32> to vector<2x8xf32>
    %193 = vector.extract_strided_slice %180 {offsets = [0, 40], sizes = [2, 8], strides = [1, 1]} : vector<2x48xf32> to vector<2x8xf32>
    %194 = vector.shape_cast %191 : vector<2x32xf32> to vector<2x1x32xf32>
    %195 = vector.broadcast %194 : vector<2x1x32xf32> to vector<2x8x32xf32>
    %196 = vector.broadcast %1 : vector<1x8x32xf32> to vector<2x8x32xf32>
    %197 = arith.mulf %195, %196 : vector<2x8x32xf32>
    %198 = math.exp %197 : vector<2x8x32xf32>
    %199 = vector.shape_cast %192 : vector<2x8xf32> to vector<2x8x1xf32>
    %200 = arith.mulf %191, %174 : vector<2x32xf32>
    %201 = vector.shape_cast %200 : vector<2x32xf32> to vector<2x1x32xf32>
    %202 = vector.broadcast %199 : vector<2x8x1xf32> to vector<2x8x32xf32>
    %203 = vector.broadcast %201 : vector<2x1x32xf32> to vector<2x8x32xf32>
    %204 = arith.mulf %202, %203 : vector<2x8x32xf32>
    %205 = arith.mulf %198, %151 : vector<2x8x32xf32>
    %206 = arith.addf %205, %204 : vector<2x8x32xf32>
    %207 = vector.shape_cast %193 : vector<2x8xf32> to vector<2x8x1xf32>
    %208 = vector.broadcast %207 : vector<2x8x1xf32> to vector<2x8x32xf32>
    %209 = arith.mulf %208, %206 : vector<2x8x32xf32>
    %cst_56 = arith.constant dense<0.000000e+00> : vector<2x32xf32>
    %210 = vector.multi_reduction <add>, %209, %cst_56 [1] : vector<2x8x32xf32> to vector<2x32xf32>
    %211 = vector.broadcast %2 : vector<1x32xf32> to vector<2x32xf32>
    %212 = arith.mulf %211, %174 : vector<2x32xf32>
    %213 = arith.addf %210, %212 : vector<2x32xf32>
    %214 = arith.negf %177 : vector<2x32xf32>
    %215 = math.exp %214 : vector<2x32xf32>
    %cst_57 = arith.constant 1.000000e+00 : f32
    %216 = vector.broadcast %cst_57 : f32 to vector<2x32xf32>
    %217 = arith.addf %216, %215 : vector<2x32xf32>
    %218 = arith.divf %216, %217 : vector<2x32xf32>
    %219 = arith.mulf %177, %218 : vector<2x32xf32>
    %220 = arith.mulf %213, %219 : vector<2x32xf32>
    %221 = arith.index_cast %171 : i32 to index
    %c0_58 = arith.constant 0 : index
    %c0_59 = arith.constant 0 : index
    %222 = vector.load %arg5[%221, %c0_58, %c0_59] : memref<4x2x32xf32, #tpu.memory_space<vmem>>, vector<1x2x32xf32>
    %223 = vector.shape_cast %222 : vector<1x2x32xf32> to vector<2x32xf32>
    %224 = vector.shape_cast %220 : vector<2x32xf32> to vector<1x2x32xf32>
    tpu.vector_store %arg5[%221, %c0_58, %c0_59], %224 {strides = array<i32>} : memref<4x2x32xf32, #tpu.memory_space<vmem>>, vector<1x2x32xf32>,
    %c1_i32_60 = arith.constant 1 : i32
    return
  }
}

module attributes {stable_mosaic.version = 11 : i64} {
  func.func @_dual_proj_add_ln_kernel(%arg0: i32, %arg1: memref<8x32xf32, #tpu.memory_space<vmem>>, %arg2: memref<8x32xf32, #tpu.memory_space<vmem>>, %arg3: memref<8x32xf32, #tpu.memory_space<vmem>>, %arg4: memref<32x32xbf16, #tpu.memory_space<vmem>>, %arg5: memref<32x32xbf16, #tpu.memory_space<vmem>>, %arg6: memref<1x32xf32, #tpu.memory_space<vmem>>, %arg7: memref<1x32xf32, #tpu.memory_space<vmem>>, %arg8: memref<8x32xf32, #tpu.memory_space<vmem>>) attributes {dimension_semantics = [#tpu.dimension_semantics<parallel>], iteration_bounds = array<i64: 1>, scalar_prefetch = 0 : i64, scratch_operands = 0 : i64, tpu.core_type = #tpu.core_type<tc>, window_params = [{transform_indices = @transform_0, window_bounds = array<i64: 8, 32>}, {transform_indices = @transform_1, window_bounds = array<i64: 8, 32>}, {transform_indices = @transform_2, window_bounds = array<i64: 8, 32>}, {pipeline_mode = #tpu.pipeline_mode<synchronous>, transform_indices = @transform_3, window_bounds = array<i64: 32, 32>}, {pipeline_mode = #tpu.pipeline_mode<synchronous>, transform_indices = @transform_4, window_bounds = array<i64: 32, 32>}, {pipeline_mode = #tpu.pipeline_mode<synchronous>, transform_indices = @transform_5, window_bounds = array<i64: 1, 32>}, {pipeline_mode = #tpu.pipeline_mode<synchronous>, transform_indices = @transform_6, window_bounds = array<i64: 1, 32>}, {transform_indices = @transform_7, window_bounds = array<i64: 8, 32>}]} {
    %c0 = arith.constant 0 : index
    %c0_0 = arith.constant 0 : index
    %0 = vector.load %arg1[%c0, %c0_0] : memref<8x32xf32, #tpu.memory_space<vmem>>, vector<8x32xf32>
    %1 = arith.truncf %0 : vector<8x32xf32> to vector<8x32xbf16>
    %c0_1 = arith.constant 0 : index
    %c0_2 = arith.constant 0 : index
    %2 = vector.load %arg4[%c0_1, %c0_2] : memref<32x32xbf16, #tpu.memory_space<vmem>>, vector<32x32xbf16>
    %cst = arith.constant dense<0.000000e+00> : vector<8x32xf32>
    %3 = tpu.matmul %1, %2, %cst {dimension_numbers = #tpu.dot_dimension_numbers<[1], [0], [0], [1], [0, 0, 1, 1], [], []>} : vector<8x32xbf16>, vector<32x32xbf16>, vector<8x32xf32> -> vector<8x32xf32>
    %c0_3 = arith.constant 0 : index
    %c0_4 = arith.constant 0 : index
    %4 = vector.load %arg2[%c0_3, %c0_4] : memref<8x32xf32, #tpu.memory_space<vmem>>, vector<8x32xf32>
    %5 = arith.truncf %4 : vector<8x32xf32> to vector<8x32xbf16>
    %c0_5 = arith.constant 0 : index
    %c0_6 = arith.constant 0 : index
    %6 = vector.load %arg5[%c0_5, %c0_6] : memref<32x32xbf16, #tpu.memory_space<vmem>>, vector<32x32xbf16>
    %cst_7 = arith.constant dense<0.000000e+00> : vector<8x32xf32>
    %7 = tpu.matmul %5, %6, %cst_7 {dimension_numbers = #tpu.dot_dimension_numbers<[1], [0], [0], [1], [0, 0, 1, 1], [], []>} : vector<8x32xbf16>, vector<32x32xbf16>, vector<8x32xf32> -> vector<8x32xf32>
    %8 = arith.addf %3, %7 : vector<8x32xf32>
    %c0_8 = arith.constant 0 : index
    %c0_9 = arith.constant 0 : index
    %9 = vector.load %arg3[%c0_8, %c0_9] : memref<8x32xf32, #tpu.memory_space<vmem>>, vector<8x32xf32>
    %10 = arith.addf %9, %8 : vector<8x32xf32>
    %cst_10 = arith.constant dense<0.000000e+00> : vector<8xf32>
    %11 = vector.multi_reduction <add>, %10, %cst_10 [1] : vector<8x32xf32> to vector<8xf32>
    %12 = vector.shape_cast %11 : vector<8xf32> to vector<8x1xf32>
    %cst_11 = arith.constant 3.200000e+01 : f32
    %13 = vector.broadcast %cst_11 : f32 to vector<8x1xf32>
    %14 = arith.divf %12, %13 : vector<8x1xf32>
    %15 = vector.broadcast %14 : vector<8x1xf32> to vector<8x32xf32>
    %16 = arith.subf %10, %15 : vector<8x32xf32>
    %17 = arith.mulf %16, %16 : vector<8x32xf32>
    %cst_12 = arith.constant dense<0.000000e+00> : vector<8xf32>
    %18 = vector.multi_reduction <add>, %17, %cst_12 [1] : vector<8x32xf32> to vector<8xf32>
    %19 = vector.shape_cast %18 : vector<8xf32> to vector<8x1xf32>
    %cst_13 = arith.constant 3.200000e+01 : f32
    %20 = vector.broadcast %cst_13 : f32 to vector<8x1xf32>
    %21 = arith.divf %19, %20 : vector<8x1xf32>
    %22 = vector.broadcast %14 : vector<8x1xf32> to vector<8x32xf32>
    %23 = arith.subf %10, %22 : vector<8x32xf32>
    %cst_14 = arith.constant 9.99999974E-6 : f32
    %24 = vector.broadcast %cst_14 : f32 to vector<8x1xf32>
    %25 = arith.addf %21, %24 : vector<8x1xf32>
    %26 = math.rsqrt %25 : vector<8x1xf32>
    %27 = vector.broadcast %26 : vector<8x1xf32> to vector<8x32xf32>
    %28 = arith.mulf %23, %27 : vector<8x32xf32>
    %c0_15 = arith.constant 0 : index
    %c0_16 = arith.constant 0 : index
    %29 = vector.load %arg6[%c0_15, %c0_16] : memref<1x32xf32, #tpu.memory_space<vmem>>, vector<1x32xf32>
    %30 = vector.broadcast %29 : vector<1x32xf32> to vector<8x32xf32>
    %31 = arith.mulf %28, %30 : vector<8x32xf32>
    %c0_17 = arith.constant 0 : index
    %c0_18 = arith.constant 0 : index
    %32 = vector.load %arg7[%c0_17, %c0_18] : memref<1x32xf32, #tpu.memory_space<vmem>>, vector<1x32xf32>
    %33 = vector.broadcast %32 : vector<1x32xf32> to vector<8x32xf32>
    %34 = arith.addf %31, %33 : vector<8x32xf32>
    %c0_19 = arith.constant 0 : index
    %c0_20 = arith.constant 0 : index
    %35 = vector.load %arg8[%c0_19, %c0_20] : memref<8x32xf32, #tpu.memory_space<vmem>>, vector<8x32xf32>
    tpu.vector_store %arg8[%c0_19, %c0_20], %34 {strides = array<i32>} : memref<8x32xf32, #tpu.memory_space<vmem>>, vector<8x32xf32>,
    return
  }
  func.func @transform_0(%arg0: i32) -> (i32, i32) {
    %c0_i32 = arith.constant 0 : i32
    %c0_i32_0 = arith.constant 0 : i32
    return %arg0, %c0_i32 : i32, i32
  }
  func.func @transform_1(%arg0: i32) -> (i32, i32) {
    %c0_i32 = arith.constant 0 : i32
    %c0_i32_0 = arith.constant 0 : i32
    return %arg0, %c0_i32 : i32, i32
  }
  func.func @transform_2(%arg0: i32) -> (i32, i32) {
    %c0_i32 = arith.constant 0 : i32
    %c0_i32_0 = arith.constant 0 : i32
    return %arg0, %c0_i32 : i32, i32
  }
  func.func @transform_3(%arg0: i32) -> (i32, i32) {
    %c0_i32 = arith.constant 0 : i32
    %c0_i32_0 = arith.constant 0 : i32
    %c0_i32_1 = arith.constant 0 : i32
    return %c0_i32, %c0_i32_0 : i32, i32
  }
  func.func @transform_4(%arg0: i32) -> (i32, i32) {
    %c0_i32 = arith.constant 0 : i32
    %c0_i32_0 = arith.constant 0 : i32
    %c0_i32_1 = arith.constant 0 : i32
    return %c0_i32, %c0_i32_0 : i32, i32
  }
  func.func @transform_5(%arg0: i32) -> (i32, i32) {
    %c0_i32 = arith.constant 0 : i32
    %c0_i32_0 = arith.constant 0 : i32
    %c0_i32_1 = arith.constant 0 : i32
    return %c0_i32, %c0_i32_0 : i32, i32
  }
  func.func @transform_6(%arg0: i32) -> (i32, i32) {
    %c0_i32 = arith.constant 0 : i32
    %c0_i32_0 = arith.constant 0 : i32
    %c0_i32_1 = arith.constant 0 : i32
    return %c0_i32, %c0_i32_0 : i32, i32
  }
  func.func @transform_7(%arg0: i32) -> (i32, i32) {
    %c0_i32 = arith.constant 0 : i32
    %c0_i32_0 = arith.constant 0 : i32
    return %arg0, %c0_i32 : i32, i32
  }
}

module attributes {stable_mosaic.version = 11 : i64} {
  func.func @_linear_kernel_bias(%arg0: i32, %arg1: memref<8x32xf32, #tpu.memory_space<vmem>>, %arg2: memref<32x32xbf16, #tpu.memory_space<vmem>>, %arg3: memref<1x32xf32, #tpu.memory_space<vmem>>, %arg4: memref<8x32xf32, #tpu.memory_space<vmem>>) attributes {dimension_semantics = [#tpu.dimension_semantics<parallel>], iteration_bounds = array<i64: 1>, scalar_prefetch = 0 : i64, scratch_operands = 0 : i64, tpu.core_type = #tpu.core_type<tc>, window_params = [{transform_indices = @transform_0, window_bounds = array<i64: 8, 32>}, {pipeline_mode = #tpu.pipeline_mode<synchronous>, transform_indices = @transform_1, window_bounds = array<i64: 32, 32>}, {pipeline_mode = #tpu.pipeline_mode<synchronous>, transform_indices = @transform_2, window_bounds = array<i64: 1, 32>}, {transform_indices = @transform_3, window_bounds = array<i64: 8, 32>}]} {
    %c0 = arith.constant 0 : index
    %c0_0 = arith.constant 0 : index
    %0 = vector.load %arg1[%c0, %c0_0] : memref<8x32xf32, #tpu.memory_space<vmem>>, vector<8x32xf32>
    %1 = arith.truncf %0 : vector<8x32xf32> to vector<8x32xbf16>
    %c0_1 = arith.constant 0 : index
    %c0_2 = arith.constant 0 : index
    %2 = vector.load %arg2[%c0_1, %c0_2] : memref<32x32xbf16, #tpu.memory_space<vmem>>, vector<32x32xbf16>
    %cst = arith.constant dense<0.000000e+00> : vector<8x32xf32>
    %3 = tpu.matmul %1, %2, %cst {dimension_numbers = #tpu.dot_dimension_numbers<[1], [0], [0], [1], [0, 0, 1, 1], [], []>} : vector<8x32xbf16>, vector<32x32xbf16>, vector<8x32xf32> -> vector<8x32xf32>
    %c0_3 = arith.constant 0 : index
    %c0_4 = arith.constant 0 : index
    %4 = vector.load %arg3[%c0_3, %c0_4] : memref<1x32xf32, #tpu.memory_space<vmem>>, vector<1x32xf32>
    %5 = vector.broadcast %4 : vector<1x32xf32> to vector<8x32xf32>
    %6 = arith.addf %3, %5 : vector<8x32xf32>
    %cst_5 = arith.constant 0.000000e+00 : f32
    %7 = vector.broadcast %cst_5 : f32 to vector<8x32xf32>
    %8 = arith.maximumf %6, %7 : vector<8x32xf32>
    %c0_6 = arith.constant 0 : index
    %c0_7 = arith.constant 0 : index
    %9 = vector.load %arg4[%c0_6, %c0_7] : memref<8x32xf32, #tpu.memory_space<vmem>>, vector<8x32xf32>
    tpu.vector_store %arg4[%c0_6, %c0_7], %8 {strides = array<i32>} : memref<8x32xf32, #tpu.memory_space<vmem>>, vector<8x32xf32>,
    return
  }
  func.func @transform_0(%arg0: i32) -> (i32, i32) {
    %c0_i32 = arith.constant 0 : i32
    %c0_i32_0 = arith.constant 0 : i32
    return %arg0, %c0_i32 : i32, i32
  }
  func.func @transform_1(%arg0: i32) -> (i32, i32) {
    %c0_i32 = arith.constant 0 : i32
    %c0_i32_0 = arith.constant 0 : i32
    %c0_i32_1 = arith.constant 0 : i32
    return %c0_i32, %c0_i32_0 : i32, i32
  }
  func.func @transform_2(%arg0: i32) -> (i32, i32) {
    %c0_i32 = arith.constant 0 : i32
    %c0_i32_0 = arith.constant 0 : i32
    %c0_i32_1 = arith.constant 0 : i32
    return %c0_i32, %c0_i32_0 : i32, i32
  }
  func.func @transform_3(%arg0: i32) -> (i32, i32) {
    %c0_i32 = arith.constant 0 : i32
    %c0_i32_0 = arith.constant 0 : i32
    return %arg0, %c0_i32 : i32, i32
  }
}

module attributes {stable_mosaic.version = 11 : i64} {
  func.func @_proj_add_ln_kernel(%arg0: i32, %arg1: memref<8x32xf32, #tpu.memory_space<vmem>>, %arg2: memref<8x32xf32, #tpu.memory_space<vmem>>, %arg3: memref<32x32xbf16, #tpu.memory_space<vmem>>, %arg4: memref<1x32xf32, #tpu.memory_space<vmem>>, %arg5: memref<1x32xf32, #tpu.memory_space<vmem>>, %arg6: memref<1x32xf32, #tpu.memory_space<vmem>>, %arg7: memref<8x32xf32, #tpu.memory_space<vmem>>) attributes {dimension_semantics = [#tpu.dimension_semantics<parallel>], iteration_bounds = array<i64: 1>, scalar_prefetch = 0 : i64, scratch_operands = 0 : i64, tpu.core_type = #tpu.core_type<tc>, window_params = [{transform_indices = @transform_0, window_bounds = array<i64: 8, 32>}, {transform_indices = @transform_1, window_bounds = array<i64: 8, 32>}, {pipeline_mode = #tpu.pipeline_mode<synchronous>, transform_indices = @transform_2, window_bounds = array<i64: 32, 32>}, {pipeline_mode = #tpu.pipeline_mode<synchronous>, transform_indices = @transform_3, window_bounds = array<i64: 1, 32>}, {pipeline_mode = #tpu.pipeline_mode<synchronous>, transform_indices = @transform_4, window_bounds = array<i64: 1, 32>}, {pipeline_mode = #tpu.pipeline_mode<synchronous>, transform_indices = @transform_5, window_bounds = array<i64: 1, 32>}, {transform_indices = @transform_6, window_bounds = array<i64: 8, 32>}]} {
    %c0 = arith.constant 0 : index
    %c0_0 = arith.constant 0 : index
    %0 = vector.load %arg1[%c0, %c0_0] : memref<8x32xf32, #tpu.memory_space<vmem>>, vector<8x32xf32>
    %1 = arith.truncf %0 : vector<8x32xf32> to vector<8x32xbf16>
    %c0_1 = arith.constant 0 : index
    %c0_2 = arith.constant 0 : index
    %2 = vector.load %arg3[%c0_1, %c0_2] : memref<32x32xbf16, #tpu.memory_space<vmem>>, vector<32x32xbf16>
    %cst = arith.constant dense<0.000000e+00> : vector<8x32xf32>
    %3 = tpu.matmul %1, %2, %cst {dimension_numbers = #tpu.dot_dimension_numbers<[1], [0], [0], [1], [0, 0, 1, 1], [], []>} : vector<8x32xbf16>, vector<32x32xbf16>, vector<8x32xf32> -> vector<8x32xf32>
    %c0_3 = arith.constant 0 : index
    %c0_4 = arith.constant 0 : index
    %4 = vector.load %arg4[%c0_3, %c0_4] : memref<1x32xf32, #tpu.memory_space<vmem>>, vector<1x32xf32>
    %5 = vector.broadcast %4 : vector<1x32xf32> to vector<8x32xf32>
    %6 = arith.addf %3, %5 : vector<8x32xf32>
    %c0_5 = arith.constant 0 : index
    %c0_6 = arith.constant 0 : index
    %7 = vector.load %arg2[%c0_5, %c0_6] : memref<8x32xf32, #tpu.memory_space<vmem>>, vector<8x32xf32>
    %8 = arith.addf %7, %6 : vector<8x32xf32>
    %cst_7 = arith.constant dense<0.000000e+00> : vector<8xf32>
    %9 = vector.multi_reduction <add>, %8, %cst_7 [1] : vector<8x32xf32> to vector<8xf32>
    %10 = vector.shape_cast %9 : vector<8xf32> to vector<8x1xf32>
    %cst_8 = arith.constant 3.200000e+01 : f32
    %11 = vector.broadcast %cst_8 : f32 to vector<8x1xf32>
    %12 = arith.divf %10, %11 : vector<8x1xf32>
    %13 = vector.broadcast %12 : vector<8x1xf32> to vector<8x32xf32>
    %14 = arith.subf %8, %13 : vector<8x32xf32>
    %15 = arith.mulf %14, %14 : vector<8x32xf32>
    %cst_9 = arith.constant dense<0.000000e+00> : vector<8xf32>
    %16 = vector.multi_reduction <add>, %15, %cst_9 [1] : vector<8x32xf32> to vector<8xf32>
    %17 = vector.shape_cast %16 : vector<8xf32> to vector<8x1xf32>
    %cst_10 = arith.constant 3.200000e+01 : f32
    %18 = vector.broadcast %cst_10 : f32 to vector<8x1xf32>
    %19 = arith.divf %17, %18 : vector<8x1xf32>
    %20 = vector.broadcast %12 : vector<8x1xf32> to vector<8x32xf32>
    %21 = arith.subf %8, %20 : vector<8x32xf32>
    %cst_11 = arith.constant 9.99999974E-6 : f32
    %22 = vector.broadcast %cst_11 : f32 to vector<8x1xf32>
    %23 = arith.addf %19, %22 : vector<8x1xf32>
    %24 = math.rsqrt %23 : vector<8x1xf32>
    %25 = vector.broadcast %24 : vector<8x1xf32> to vector<8x32xf32>
    %26 = arith.mulf %21, %25 : vector<8x32xf32>
    %c0_12 = arith.constant 0 : index
    %c0_13 = arith.constant 0 : index
    %27 = vector.load %arg5[%c0_12, %c0_13] : memref<1x32xf32, #tpu.memory_space<vmem>>, vector<1x32xf32>
    %28 = vector.broadcast %27 : vector<1x32xf32> to vector<8x32xf32>
    %29 = arith.mulf %26, %28 : vector<8x32xf32>
    %c0_14 = arith.constant 0 : index
    %c0_15 = arith.constant 0 : index
    %30 = vector.load %arg6[%c0_14, %c0_15] : memref<1x32xf32, #tpu.memory_space<vmem>>, vector<1x32xf32>
    %31 = vector.broadcast %30 : vector<1x32xf32> to vector<8x32xf32>
    %32 = arith.addf %29, %31 : vector<8x32xf32>
    %c0_16 = arith.constant 0 : index
    %c0_17 = arith.constant 0 : index
    %33 = vector.load %arg7[%c0_16, %c0_17] : memref<8x32xf32, #tpu.memory_space<vmem>>, vector<8x32xf32>
    tpu.vector_store %arg7[%c0_16, %c0_17], %32 {strides = array<i32>} : memref<8x32xf32, #tpu.memory_space<vmem>>, vector<8x32xf32>,
    return
  }
  func.func @transform_0(%arg0: i32) -> (i32, i32) {
    %c0_i32 = arith.constant 0 : i32
    %c0_i32_0 = arith.constant 0 : i32
    return %arg0, %c0_i32 : i32, i32
  }
  func.func @transform_1(%arg0: i32) -> (i32, i32) {
    %c0_i32 = arith.constant 0 : i32
    %c0_i32_0 = arith.constant 0 : i32
    return %arg0, %c0_i32 : i32, i32
  }
  func.func @transform_2(%arg0: i32) -> (i32, i32) {
    %c0_i32 = arith.constant 0 : i32
    %c0_i32_0 = arith.constant 0 : i32
    %c0_i32_1 = arith.constant 0 : i32
    return %c0_i32, %c0_i32_0 : i32, i32
  }
  func.func @transform_3(%arg0: i32) -> (i32, i32) {
    %c0_i32 = arith.constant 0 : i32
    %c0_i32_0 = arith.constant 0 : i32
    %c0_i32_1 = arith.constant 0 : i32
    return %c0_i32, %c0_i32_0 : i32, i32
  }
  func.func @transform_4(%arg0: i32) -> (i32, i32) {
    %c0_i32 = arith.constant 0 : i32
    %c0_i32_0 = arith.constant 0 : i32
    %c0_i32_1 = arith.constant 0 : i32
    return %c0_i32, %c0_i32_0 : i32, i32
  }
  func.func @transform_5(%arg0: i32) -> (i32, i32) {
    %c0_i32 = arith.constant 0 : i32
    %c0_i32_0 = arith.constant 0 : i32
    %c0_i32_1 = arith.constant 0 : i32
    return %c0_i32, %c0_i32_0 : i32, i32
  }
  func.func @transform_6(%arg0: i32) -> (i32, i32) {
    %c0_i32 = arith.constant 0 : i32
    %c0_i32_0 = arith.constant 0 : i32
    return %arg0, %c0_i32 : i32, i32
  }
}

module attributes {stable_mosaic.version = 11 : i64} {
  func.func @_ln_proj_kernel(%arg0: i32, %arg1: memref<8x32xf32, #tpu.memory_space<vmem>>, %arg2: memref<1x32xf32, #tpu.memory_space<vmem>>, %arg3: memref<1x32xf32, #tpu.memory_space<vmem>>, %arg4: memref<32x8xbf16, #tpu.memory_space<vmem>>, %arg5: memref<1x8xf32, #tpu.memory_space<vmem>>, %arg6: memref<8x8xf32, #tpu.memory_space<vmem>>) attributes {dimension_semantics = [#tpu.dimension_semantics<parallel>], iteration_bounds = array<i64: 1>, scalar_prefetch = 0 : i64, scratch_operands = 0 : i64, tpu.core_type = #tpu.core_type<tc>, window_params = [{transform_indices = @transform_0, window_bounds = array<i64: 8, 32>}, {pipeline_mode = #tpu.pipeline_mode<synchronous>, transform_indices = @transform_1, window_bounds = array<i64: 1, 32>}, {pipeline_mode = #tpu.pipeline_mode<synchronous>, transform_indices = @transform_2, window_bounds = array<i64: 1, 32>}, {pipeline_mode = #tpu.pipeline_mode<synchronous>, transform_indices = @transform_3, window_bounds = array<i64: 32, 8>}, {pipeline_mode = #tpu.pipeline_mode<synchronous>, transform_indices = @transform_4, window_bounds = array<i64: 1, 8>}, {transform_indices = @transform_5, window_bounds = array<i64: 8, 8>}]} {
    %c0 = arith.constant 0 : index
    %c0_0 = arith.constant 0 : index
    %0 = vector.load %arg1[%c0, %c0_0] : memref<8x32xf32, #tpu.memory_space<vmem>>, vector<8x32xf32>
    %cst = arith.constant dense<0.000000e+00> : vector<8xf32>
    %1 = vector.multi_reduction <add>, %0, %cst [1] : vector<8x32xf32> to vector<8xf32>
    %2 = vector.shape_cast %1 : vector<8xf32> to vector<8x1xf32>
    %cst_1 = arith.constant 3.200000e+01 : f32
    %3 = vector.broadcast %cst_1 : f32 to vector<8x1xf32>
    %4 = arith.divf %2, %3 : vector<8x1xf32>
    %5 = vector.broadcast %4 : vector<8x1xf32> to vector<8x32xf32>
    %6 = arith.subf %0, %5 : vector<8x32xf32>
    %7 = arith.mulf %6, %6 : vector<8x32xf32>
    %cst_2 = arith.constant dense<0.000000e+00> : vector<8xf32>
    %8 = vector.multi_reduction <add>, %7, %cst_2 [1] : vector<8x32xf32> to vector<8xf32>
    %9 = vector.shape_cast %8 : vector<8xf32> to vector<8x1xf32>
    %cst_3 = arith.constant 3.200000e+01 : f32
    %10 = vector.broadcast %cst_3 : f32 to vector<8x1xf32>
    %11 = arith.divf %9, %10 : vector<8x1xf32>
    %12 = vector.broadcast %4 : vector<8x1xf32> to vector<8x32xf32>
    %13 = arith.subf %0, %12 : vector<8x32xf32>
    %cst_4 = arith.constant 9.99999974E-6 : f32
    %14 = vector.broadcast %cst_4 : f32 to vector<8x1xf32>
    %15 = arith.addf %11, %14 : vector<8x1xf32>
    %16 = math.rsqrt %15 : vector<8x1xf32>
    %17 = vector.broadcast %16 : vector<8x1xf32> to vector<8x32xf32>
    %18 = arith.mulf %13, %17 : vector<8x32xf32>
    %c0_5 = arith.constant 0 : index
    %c0_6 = arith.constant 0 : index
    %19 = vector.load %arg2[%c0_5, %c0_6] : memref<1x32xf32, #tpu.memory_space<vmem>>, vector<1x32xf32>
    %20 = vector.broadcast %19 : vector<1x32xf32> to vector<8x32xf32>
    %21 = arith.mulf %18, %20 : vector<8x32xf32>
    %c0_7 = arith.constant 0 : index
    %c0_8 = arith.constant 0 : index
    %22 = vector.load %arg3[%c0_7, %c0_8] : memref<1x32xf32, #tpu.memory_space<vmem>>, vector<1x32xf32>
    %23 = vector.broadcast %22 : vector<1x32xf32> to vector<8x32xf32>
    %24 = arith.addf %21, %23 : vector<8x32xf32>
    %25 = arith.truncf %24 : vector<8x32xf32> to vector<8x32xbf16>
    %c0_9 = arith.constant 0 : index
    %c0_10 = arith.constant 0 : index
    %26 = vector.load %arg4[%c0_9, %c0_10] : memref<32x8xbf16, #tpu.memory_space<vmem>>, vector<32x8xbf16>
    %cst_11 = arith.constant dense<0.000000e+00> : vector<8x8xf32>
    %27 = tpu.matmul %25, %26, %cst_11 {dimension_numbers = #tpu.dot_dimension_numbers<[1], [0], [0], [1], [0, 0, 1, 1], [], []>} : vector<8x32xbf16>, vector<32x8xbf16>, vector<8x8xf32> -> vector<8x8xf32>
    %c0_12 = arith.constant 0 : index
    %c0_13 = arith.constant 0 : index
    %28 = vector.load %arg5[%c0_12, %c0_13] : memref<1x8xf32, #tpu.memory_space<vmem>>, vector<1x8xf32>
    %29 = vector.broadcast %28 : vector<1x8xf32> to vector<8x8xf32>
    %30 = arith.addf %27, %29 : vector<8x8xf32>
    %c0_14 = arith.constant 0 : index
    %c0_15 = arith.constant 0 : index
    %31 = vector.load %arg6[%c0_14, %c0_15] : memref<8x8xf32, #tpu.memory_space<vmem>>, vector<8x8xf32>
    tpu.vector_store %arg6[%c0_14, %c0_15], %30 {strides = array<i32>} : memref<8x8xf32, #tpu.memory_space<vmem>>, vector<8x8xf32>,
    return
  }
  func.func @transform_0(%arg0: i32) -> (i32, i32) {
    %c0_i32 = arith.constant 0 : i32
    %c0_i32_0 = arith.constant 0 : i32
    return %arg0, %c0_i32 : i32, i32
  }
  func.func @transform_1(%arg0: i32) -> (i32, i32) {
    %c0_i32 = arith.constant 0 : i32
    %c0_i32_0 = arith.constant 0 : i32
    %c0_i32_1 = arith.constant 0 : i32
    return %c0_i32, %c0_i32_0 : i32, i32
  }
  func.func @transform_2(%arg0: i32) -> (i32, i32) {
    %c0_i32 = arith.constant 0 : i32
    %c0_i32_0 = arith.constant 0 : i32
    %c0_i32_1 = arith.constant 0 : i32
    return %c0_i32, %c0_i32_0 : i32, i32
  }
  func.func @transform_3(%arg0: i32) -> (i32, i32) {
    %c0_i32 = arith.constant 0 : i32
    %c0_i32_0 = arith.constant 0 : i32
    %c0_i32_1 = arith.constant 0 : i32
    return %c0_i32, %c0_i32_0 : i32, i32
  }
  func.func @transform_4(%arg0: i32) -> (i32, i32) {
    %c0_i32 = arith.constant 0 : i32
    %c0_i32_0 = arith.constant 0 : i32
    %c0_i32_1 = arith.constant 0 : i32
    return %c0_i32, %c0_i32_0 : i32, i32
  }
  func.func @transform_5(%arg0: i32) -> (i32, i32) {
    %c0_i32 = arith.constant 0 : i32
    %c0_i32_0 = arith.constant 0 : i32
    return %arg0, %c0_i32 : i32, i32
  }
}

module attributes {stable_mosaic.version = 11 : i64} {
  func.func @_linear_kernel_bias(%arg0: i32, %arg1: memref<8x8xf32, #tpu.memory_space<vmem>>, %arg2: memref<8x16xbf16, #tpu.memory_space<vmem>>, %arg3: memref<1x16xf32, #tpu.memory_space<vmem>>, %arg4: memref<8x16xf32, #tpu.memory_space<vmem>>) attributes {dimension_semantics = [#tpu.dimension_semantics<parallel>], iteration_bounds = array<i64: 1>, scalar_prefetch = 0 : i64, scratch_operands = 0 : i64, tpu.core_type = #tpu.core_type<tc>, window_params = [{transform_indices = @transform_0, window_bounds = array<i64: 8, 8>}, {pipeline_mode = #tpu.pipeline_mode<synchronous>, transform_indices = @transform_1, window_bounds = array<i64: 8, 16>}, {pipeline_mode = #tpu.pipeline_mode<synchronous>, transform_indices = @transform_2, window_bounds = array<i64: 1, 16>}, {transform_indices = @transform_3, window_bounds = array<i64: 8, 16>}]} {
    %c0 = arith.constant 0 : index
    %c0_0 = arith.constant 0 : index
    %0 = vector.load %arg1[%c0, %c0_0] : memref<8x8xf32, #tpu.memory_space<vmem>>, vector<8x8xf32>
    %1 = arith.truncf %0 : vector<8x8xf32> to vector<8x8xbf16>
    %c0_1 = arith.constant 0 : index
    %c0_2 = arith.constant 0 : index
    %2 = vector.load %arg2[%c0_1, %c0_2] : memref<8x16xbf16, #tpu.memory_space<vmem>>, vector<8x16xbf16>
    %cst = arith.constant dense<0.000000e+00> : vector<8x16xf32>
    %3 = tpu.matmul %1, %2, %cst {dimension_numbers = #tpu.dot_dimension_numbers<[1], [0], [0], [1], [0, 0, 1, 1], [], []>} : vector<8x8xbf16>, vector<8x16xbf16>, vector<8x16xf32> -> vector<8x16xf32>
    %c0_3 = arith.constant 0 : index
    %c0_4 = arith.constant 0 : index
    %4 = vector.load %arg3[%c0_3, %c0_4] : memref<1x16xf32, #tpu.memory_space<vmem>>, vector<1x16xf32>
    %5 = vector.broadcast %4 : vector<1x16xf32> to vector<8x16xf32>
    %6 = arith.addf %3, %5 : vector<8x16xf32>
    %c0_5 = arith.constant 0 : index
    %c0_6 = arith.constant 0 : index
    %7 = vector.load %arg4[%c0_5, %c0_6] : memref<8x16xf32, #tpu.memory_space<vmem>>, vector<8x16xf32>
    tpu.vector_store %arg4[%c0_5, %c0_6], %6 {strides = array<i32>} : memref<8x16xf32, #tpu.memory_space<vmem>>, vector<8x16xf32>,
    return
  }
  func.func @transform_0(%arg0: i32) -> (i32, i32) {
    %c0_i32 = arith.constant 0 : i32
    %c0_i32_0 = arith.constant 0 : i32
    return %arg0, %c0_i32 : i32, i32
  }
  func.func @transform_1(%arg0: i32) -> (i32, i32) {
    %c0_i32 = arith.constant 0 : i32
    %c0_i32_0 = arith.constant 0 : i32
    %c0_i32_1 = arith.constant 0 : i32
    return %c0_i32, %c0_i32_0 : i32, i32
  }
  func.func @transform_2(%arg0: i32) -> (i32, i32) {
    %c0_i32 = arith.constant 0 : i32
    %c0_i32_0 = arith.constant 0 : i32
    %c0_i32_1 = arith.constant 0 : i32
    return %c0_i32, %c0_i32_0 : i32, i32
  }
  func.func @transform_3(%arg0: i32) -> (i32, i32) {
    %c0_i32 = arith.constant 0 : i32
    %c0_i32_0 = arith.constant 0 : i32
    return %arg0, %c0_i32 : i32, i32
  }
}

module attributes {stable_mosaic.version = 11 : i64} {
  func.func @_linear_kernel_bias(%arg0: i32, %arg1: memref<8x16xf32, #tpu.memory_space<vmem>>, %arg2: memref<16x16xbf16, #tpu.memory_space<vmem>>, %arg3: memref<1x16xf32, #tpu.memory_space<vmem>>, %arg4: memref<8x16xf32, #tpu.memory_space<vmem>>) attributes {dimension_semantics = [#tpu.dimension_semantics<parallel>], iteration_bounds = array<i64: 1>, scalar_prefetch = 0 : i64, scratch_operands = 0 : i64, tpu.core_type = #tpu.core_type<tc>, window_params = [{transform_indices = @transform_0, window_bounds = array<i64: 8, 16>}, {pipeline_mode = #tpu.pipeline_mode<synchronous>, transform_indices = @transform_1, window_bounds = array<i64: 16, 16>}, {pipeline_mode = #tpu.pipeline_mode<synchronous>, transform_indices = @transform_2, window_bounds = array<i64: 1, 16>}, {transform_indices = @transform_3, window_bounds = array<i64: 8, 16>}]} {
    %c0 = arith.constant 0 : index
    %c0_0 = arith.constant 0 : index
    %0 = vector.load %arg1[%c0, %c0_0] : memref<8x16xf32, #tpu.memory_space<vmem>>, vector<8x16xf32>
    %1 = arith.truncf %0 : vector<8x16xf32> to vector<8x16xbf16>
    %c0_1 = arith.constant 0 : index
    %c0_2 = arith.constant 0 : index
    %2 = vector.load %arg2[%c0_1, %c0_2] : memref<16x16xbf16, #tpu.memory_space<vmem>>, vector<16x16xbf16>
    %cst = arith.constant dense<0.000000e+00> : vector<8x16xf32>
    %3 = tpu.matmul %1, %2, %cst {dimension_numbers = #tpu.dot_dimension_numbers<[1], [0], [0], [1], [0, 0, 1, 1], [], []>} : vector<8x16xbf16>, vector<16x16xbf16>, vector<8x16xf32> -> vector<8x16xf32>
    %c0_3 = arith.constant 0 : index
    %c0_4 = arith.constant 0 : index
    %4 = vector.load %arg3[%c0_3, %c0_4] : memref<1x16xf32, #tpu.memory_space<vmem>>, vector<1x16xf32>
    %5 = vector.broadcast %4 : vector<1x16xf32> to vector<8x16xf32>
    %6 = arith.addf %3, %5 : vector<8x16xf32>
    %c0_5 = arith.constant 0 : index
    %c0_6 = arith.constant 0 : index
    %7 = vector.load %arg4[%c0_5, %c0_6] : memref<8x16xf32, #tpu.memory_space<vmem>>, vector<8x16xf32>
    tpu.vector_store %arg4[%c0_5, %c0_6], %6 {strides = array<i32>} : memref<8x16xf32, #tpu.memory_space<vmem>>, vector<8x16xf32>,
    return
  }
  func.func @transform_0(%arg0: i32) -> (i32, i32) {
    %c0_i32 = arith.constant 0 : i32
    %c0_i32_0 = arith.constant 0 : i32
    return %arg0, %c0_i32 : i32, i32
  }
  func.func @transform_1(%arg0: i32) -> (i32, i32) {
    %c0_i32 = arith.constant 0 : i32
    %c0_i32_0 = arith.constant 0 : i32
    %c0_i32_1 = arith.constant 0 : i32
    return %c0_i32, %c0_i32_0 : i32, i32
  }
  func.func @transform_2(%arg0: i32) -> (i32, i32) {
    %c0_i32 = arith.constant 0 : i32
    %c0_i32_0 = arith.constant 0 : i32
    %c0_i32_1 = arith.constant 0 : i32
    return %c0_i32, %c0_i32_0 : i32, i32
  }
  func.func @transform_3(%arg0: i32) -> (i32, i32) {
    %c0_i32 = arith.constant 0 : i32
    %c0_i32_0 = arith.constant 0 : i32
    return %arg0, %c0_i32 : i32, i32
  }
}

module attributes {stable_mosaic.version = 11 : i64} {
  func.func @_linear_kernel_bias(%arg0: i32, %arg1: memref<8x16xf32, #tpu.memory_space<vmem>>, %arg2: memref<16x8xbf16, #tpu.memory_space<vmem>>, %arg3: memref<1x8xf32, #tpu.memory_space<vmem>>, %arg4: memref<8x8xf32, #tpu.memory_space<vmem>>) attributes {dimension_semantics = [#tpu.dimension_semantics<parallel>], iteration_bounds = array<i64: 1>, scalar_prefetch = 0 : i64, scratch_operands = 0 : i64, tpu.core_type = #tpu.core_type<tc>, window_params = [{transform_indices = @transform_0, window_bounds = array<i64: 8, 16>}, {pipeline_mode = #tpu.pipeline_mode<synchronous>, transform_indices = @transform_1, window_bounds = array<i64: 16, 8>}, {pipeline_mode = #tpu.pipeline_mode<synchronous>, transform_indices = @transform_2, window_bounds = array<i64: 1, 8>}, {transform_indices = @transform_3, window_bounds = array<i64: 8, 8>}]} {
    %c0 = arith.constant 0 : index
    %c0_0 = arith.constant 0 : index
    %0 = vector.load %arg1[%c0, %c0_0] : memref<8x16xf32, #tpu.memory_space<vmem>>, vector<8x16xf32>
    %1 = arith.truncf %0 : vector<8x16xf32> to vector<8x16xbf16>
    %c0_1 = arith.constant 0 : index
    %c0_2 = arith.constant 0 : index
    %2 = vector.load %arg2[%c0_1, %c0_2] : memref<16x8xbf16, #tpu.memory_space<vmem>>, vector<16x8xbf16>
    %cst = arith.constant dense<0.000000e+00> : vector<8x8xf32>
    %3 = tpu.matmul %1, %2, %cst {dimension_numbers = #tpu.dot_dimension_numbers<[1], [0], [0], [1], [0, 0, 1, 1], [], []>} : vector<8x16xbf16>, vector<16x8xbf16>, vector<8x8xf32> -> vector<8x8xf32>
    %c0_3 = arith.constant 0 : index
    %c0_4 = arith.constant 0 : index
    %4 = vector.load %arg3[%c0_3, %c0_4] : memref<1x8xf32, #tpu.memory_space<vmem>>, vector<1x8xf32>
    %5 = vector.broadcast %4 : vector<1x8xf32> to vector<8x8xf32>
    %6 = arith.addf %3, %5 : vector<8x8xf32>
    %c0_5 = arith.constant 0 : index
    %c0_6 = arith.constant 0 : index
    %7 = vector.load %arg4[%c0_5, %c0_6] : memref<8x8xf32, #tpu.memory_space<vmem>>, vector<8x8xf32>
    tpu.vector_store %arg4[%c0_5, %c0_6], %6 {strides = array<i32>} : memref<8x8xf32, #tpu.memory_space<vmem>>, vector<8x8xf32>,
    return
  }
  func.func @transform_0(%arg0: i32) -> (i32, i32) {
    %c0_i32 = arith.constant 0 : i32
    %c0_i32_0 = arith.constant 0 : i32
    return %arg0, %c0_i32 : i32, i32
  }
  func.func @transform_1(%arg0: i32) -> (i32, i32) {
    %c0_i32 = arith.constant 0 : i32
    %c0_i32_0 = arith.constant 0 : i32
    %c0_i32_1 = arith.constant 0 : i32
    return %c0_i32, %c0_i32_0 : i32, i32
  }
  func.func @transform_2(%arg0: i32) -> (i32, i32) {
    %c0_i32 = arith.constant 0 : i32
    %c0_i32_0 = arith.constant 0 : i32
    %c0_i32_1 = arith.constant 0 : i32
    return %c0_i32, %c0_i32_0 : i32, i32
  }
  func.func @transform_3(%arg0: i32) -> (i32, i32) {
    %c0_i32 = arith.constant 0 : i32
    %c0_i32_0 = arith.constant 0 : i32
    return %arg0, %c0_i32 : i32, i32
  }
}

module attributes {stable_mosaic.version = 11 : i64} {
  func.func @_linear_kernel_bias(%arg0: i32, %arg1: memref<8x8xf32, #tpu.memory_space<vmem>>, %arg2: memref<8x8xbf16, #tpu.memory_space<vmem>>, %arg3: memref<1x8xf32, #tpu.memory_space<vmem>>, %arg4: memref<8x8xf32, #tpu.memory_space<vmem>>) attributes {dimension_semantics = [#tpu.dimension_semantics<parallel>], iteration_bounds = array<i64: 1>, scalar_prefetch = 0 : i64, scratch_operands = 0 : i64, tpu.core_type = #tpu.core_type<tc>, window_params = [{transform_indices = @transform_0, window_bounds = array<i64: 8, 8>}, {pipeline_mode = #tpu.pipeline_mode<synchronous>, transform_indices = @transform_1, window_bounds = array<i64: 8, 8>}, {pipeline_mode = #tpu.pipeline_mode<synchronous>, transform_indices = @transform_2, window_bounds = array<i64: 1, 8>}, {transform_indices = @transform_3, window_bounds = array<i64: 8, 8>}]} {
    %c0 = arith.constant 0 : index
    %c0_0 = arith.constant 0 : index
    %0 = vector.load %arg1[%c0, %c0_0] : memref<8x8xf32, #tpu.memory_space<vmem>>, vector<8x8xf32>
    %1 = arith.truncf %0 : vector<8x8xf32> to vector<8x8xbf16>
    %c0_1 = arith.constant 0 : index
    %c0_2 = arith.constant 0 : index
    %2 = vector.load %arg2[%c0_1, %c0_2] : memref<8x8xbf16, #tpu.memory_space<vmem>>, vector<8x8xbf16>
    %cst = arith.constant dense<0.000000e+00> : vector<8x8xf32>
    %3 = tpu.matmul %1, %2, %cst {dimension_numbers = #tpu.dot_dimension_numbers<[1], [0], [0], [1], [0, 0, 1, 1], [], []>} : vector<8x8xbf16>, vector<8x8xbf16>, vector<8x8xf32> -> vector<8x8xf32>
    %c0_3 = arith.constant 0 : index
    %c0_4 = arith.constant 0 : index
    %4 = vector.load %arg3[%c0_3, %c0_4] : memref<1x8xf32, #tpu.memory_space<vmem>>, vector<1x8xf32>
    %5 = vector.broadcast %4 : vector<1x8xf32> to vector<8x8xf32>
    %6 = arith.addf %3, %5 : vector<8x8xf32>
    %c0_5 = arith.constant 0 : index
    %c0_6 = arith.constant 0 : index
    %7 = vector.load %arg4[%c0_5, %c0_6] : memref<8x8xf32, #tpu.memory_space<vmem>>, vector<8x8xf32>
    tpu.vector_store %arg4[%c0_5, %c0_6], %6 {strides = array<i32>} : memref<8x8xf32, #tpu.memory_space<vmem>>, vector<8x8xf32>,
    return
  }
  func.func @transform_0(%arg0: i32) -> (i32, i32) {
    %c0_i32 = arith.constant 0 : i32
    %c0_i32_0 = arith.constant 0 : i32
    return %arg0, %c0_i32 : i32, i32
  }
  func.func @transform_1(%arg0: i32) -> (i32, i32) {
    %c0_i32 = arith.constant 0 : i32
    %c0_i32_0 = arith.constant 0 : i32
    %c0_i32_1 = arith.constant 0 : i32
    return %c0_i32, %c0_i32_0 : i32, i32
  }
  func.func @transform_2(%arg0: i32) -> (i32, i32) {
    %c0_i32 = arith.constant 0 : i32
    %c0_i32_0 = arith.constant 0 : i32
    %c0_i32_1 = arith.constant 0 : i32
    return %c0_i32, %c0_i32_0 : i32, i32
  }
  func.func @transform_3(%arg0: i32) -> (i32, i32) {
    %c0_i32 = arith.constant 0 : i32
    %c0_i32_0 = arith.constant 0 : i32
    return %arg0, %c0_i32 : i32, i32
  }
}

</mosaic_0001>

<bundles_post_ra>
// kernel: _lambda_.17
= control target key start
LH: loop header
LB: loop body
LE: loop exit
PB: predicated region body
PF: predicated region fallthrough
CT: control target
= control target key end

     0   :  { %7 = vsyncpa [#allocation3], 0  ;;  %s278_s0 = inlined_call_operand.hbm [shape: f32[8,32], index: 0, kind: input, shape index: {}]   ;;  %s279_s1 = inlined_call_operand.hbm [shape: bf16[32,128], index: 1, kind: input, shape index: {}]   ;;  %s280_s2 = inlined_call_operand.hbm [shape: f32[8,128], index: 2, kind: output, shape index: {}]  }
   0x1   :  { %8 = vsyncpa [#allocation6], 0 }
   0x2   :  { %9 = vsyncpa [#allocation4], 0  ;;  %s213_s9 = smov [#allocation2]   ;;  %s214_s11 = smov [#allocation5]  }
   0x3   :  { %s16_s10 = sshll.u32 %s213_s9, 4  ;;  %s25_s12 = sshll.u32 %s214_s11, 4  ;;  %s17_s10 = int_to_ptr.vmem [resolvable:$true] %s16_s10  ;;  %s235_s12 = int_to_ptr.vmem [resolvable:$true] %s25_s12 }
   0x4   :  { %s141_s15 = scalar_lea.hbm %s278_s0, 128 }
   0x5   :  { %p142_p0 = scmp.ne.s32.totalorder %s278_s0, %s141_s15  ;;  %p145_p1 = scmp.lt.u32.totalorder %s141_s15, %s278_s0 }
   0x7   :  { %p147_p2 = pnand %p145_p1, %p142_p0 }
   0x9   :  { %150 = shalt.err (!%p147_p2)
}
   0xa   :  { %s151_s20 = scalar_lea.vmem %s17_s10, 128  ;;  %p156_p4 = scmp.lt.s32.totalorder %s17_s10, %s17_s10 }
   0xb   :  { %p152_p3 = scmp.ne.s32.totalorder %s17_s10, %s151_s20  ;;  %p157_p5 = scmp.lt.s32.totalorder %s151_s20, %s151_s20 }
   0xd   :  { %p158_p6 = por %p157_p5, %p156_p4 }
   0xf   :  { %p159_p7 = pnand %p158_p6, %p152_p3 }
  0x11   :  { %162 = shalt.err (!%p159_p7)
}
  0x12   :  { %19 = dma.hbm_to_vmem [thread:$0]  %s278_s0, 128, %s17_s10, [#allocation3]  }
  0x13   :  { %s163_s25 = scalar_lea.hbm %s279_s1, 256 }
  0x14   :  { %p164_p8 = scmp.ne.s32.totalorder %s279_s1, %s163_s25  ;;  %p167_p9 = scmp.lt.u32.totalorder %s163_s25, %s279_s1 }
  0x16   :  { %p169_p10 = pnand %p167_p9, %p164_p8 }
  0x18   :  { %172 = shalt.err (!%p169_p10)
}
  0x19   :  { %s173_s30 = scalar_lea.vmem %s235_s12, 256  ;;  %p178_p12 = scmp.lt.s32.totalorder %s235_s12, %s235_s12 }
  0x1a   :  { %p174_p11 = scmp.ne.s32.totalorder %s235_s12, %s173_s30  ;;  %p179_p13 = scmp.lt.s32.totalorder %s173_s30, %s173_s30 }
  0x1c   :  { %p180_p0 = por %p179_p13, %p178_p12 }
  0x1e   :  { %p181_p1 = pnand %p180_p0, %p174_p11 }
  0x20   :  { %184 = shalt.err (!%p181_p1)
}
  0x21   :  { %s215_s0 = smov 64   ;;  %s216_s3 = smov 4  }
  0x22   :  { %31 = dma.hbm_to_vmem [thread:$0]  %s279_s1, 256, %s235_s12, [#allocation6], %s215_s0, %s215_s0, %s216_s3  }
  0x23   :  { %207 = dma.done.wait [#allocation3], 128  }
  0x24   :  { %208 = vsyncadd [#allocation3], 4294967168 }
  0x25   :  { %209 = dma.done.wait [#allocation6], 256  }
  0x26   :  { %210 = vsyncadd [#allocation6], 4294967040  ;;  %v217_v0 = vmov 0.0   ;;  %vm218_vm0 = vmmov 0   ;;  %v139_v1 = vld [vmem:[#allocation5] sm:$0xff]   ;;  %v140_v2 = vld [vmem:[#allocation5 + $0x8] sm:$0xff]  }
  0x27   :  { %124 = vmatprep.subr.bf16.mxu0 %v217_v0  ;;  %128 = vmatprep.mubr.msk.bf16.mxu0 %vm218_vm0, %v217_v0  ;;  %v39_v3 = vld [vmem:[#allocation2] sm:$0xff]  ;;  %vm57_vm1 = vcmask 261120   ;;  %s219_s6 = smov [#allocation7]  }
  0x28   :  { %125 = vmatpush3.bf16.msra.mxu0 %v139_v1  ;;  %v40_v4 = vpack.c.bf16 %v39_v3, %v39_v3  ;;  %s108_s7 = sshll.u32 %s219_s6, 4  ;;  %s109_s7 = int_to_ptr.vmem [resolvable:$true] %s108_s7 }
  0x29   :  { %126 = vmatprep.subr.bf16.mxu0 %v217_v0  ;;  %s185_s1 = scalar_lea.vmem %s109_s7, 128  ;;  %p190_p3 = scmp.lt.s32.totalorder %s109_s7, %s109_s7 }
  0x2a   :  { %p186_p2 = scmp.ne.s32.totalorder %s109_s7, %s185_s1  ;;  %p191_p4 = scmp.lt.s32.totalorder %s185_s1, %s185_s1 }
  0x2c   :  { %127 = vmatpush3.bf16.msra.mxu0 %v140_v2  ;;  %p192_p5 = por %p191_p4, %p190_p3 }
  0x2e   :  { %p193_p6 = pnand %p192_p5, %p186_p2 }
  0x2f   :  { %129 = vmatmul.mubr.msk.bf16.vlgmr.msra.gmra.mrb[0].mxu0 %vm57_vm1, %v40_v4 }
 0x102   :  { %v95_v5 = vpop.f32.mrb[0].mxu0 }
 0x103   :  { %101 = vst [vmem:[#allocation7] sm:$0xff] %v95_v5  ;;  %v130_v6 = vpop.f32.mrb[1].mxu0 }
 0x104   :  { %v98_v7 = vpop.f32.mrb[2].mxu0 }
 0x105   :  { %196 = shalt.err (!%p193_p6)
}
 0x106   :  { %s197_s10 = scalar_lea.hbm %s280_s2, 128 }
 0x107   :  { %p198_p7 = scmp.ne.s32.totalorder %s280_s2, %s197_s10  ;;  %p201_p8 = scmp.lt.u32.totalorder %s197_s10, %s280_s2 }
 0x109   :  { %p203_p9 = pnand %p201_p8, %p198_p7 }
 0x10b   :  { %206 = shalt.err (!%p203_p9)
}
 0x10c   :  { %111 = dma.vmem_to_hbm [thread:$0]  %s109_s7, 128, %s280_s2, [#allocation4]   ;;  %v131_v8 = vpop.f32.mrb[3].mxu0 }
 0x10d   :  { %211 = dma.done.wait [#allocation4], 128  }
 0x10e   :  { %212 = vsyncadd [#allocation4], 4294967168 }
 0x10f   :  { %115 = vsyncpa [#allocation3], 1 }
 0x110   :  { %116 = vsyncpa [#allocation6], 1 }
 0x111   :  { %117 = vsyncpa [#allocation4], 1 }

// kernel: _lambda_.16
= control target key start
LH: loop header
LB: loop body
LE: loop exit
PB: predicated region body
PF: predicated region fallthrough
CT: control target
= control target key end

     0   :  { %7 = vsyncpa [#allocation3], 0  ;;  %s393_s0 = inlined_call_operand.hbm [shape: f32[96,4], index: 0, kind: input, shape index: {}]   ;;  %s394_s1 = inlined_call_operand.hbm [shape: bf16[4,8], index: 1, kind: input, shape index: {}]   ;;  %s395_s2 = inlined_call_operand.hbm [shape: f32[96,8], index: 2, kind: output, shape index: {}]  }
   0x1   :  { %8 = vsyncpa [#allocation6], 0 }
   0x2   :  { %9 = vsyncpa [#allocation4], 0  ;;  %s313_s9 = smov [#allocation2]   ;;  %s241_s13 = scalar_lea.hbm %s393_s0, 1536 }
   0x3   :  { %s15_s10 = sshll.u32 %s313_s9, 4  ;;  %p242_p0 = scmp.ne.s32.totalorder %s393_s0, %s241_s13  ;;  %s16_s10 = int_to_ptr.vmem [resolvable:$true] %s15_s10 }
   0x4   :  { %p245_p1 = scmp.lt.u32.totalorder %s241_s13, %s393_s0 }
   0x6   :  { %p247_p2 = pnand %p245_p1, %p242_p0 }
   0x8   :  { %250 = shalt.err (!%p247_p2)
}
   0x9   :  { %s251_s18 = scalar_lea.vmem %s16_s10, 1536  ;;  %p256_p4 = scmp.lt.s32.totalorder %s16_s10, %s16_s10 }
   0xa   :  { %p252_p3 = scmp.ne.s32.totalorder %s16_s10, %s251_s18  ;;  %p257_p5 = scmp.lt.s32.totalorder %s251_s18, %s251_s18 }
   0xc   :  { %p258_p6 = por %p257_p5, %p256_p4 }
   0xe   :  { %p259_p7 = pnand %p258_p6, %p252_p3 }
  0x10   :  { %262 = shalt.err (!%p259_p7)
}
  0x11   :  { %s314_s19 = smov 128   ;;  %s315_s20 = smov 8  }
  0x12   :  { %21 = dma.hbm_to_vmem [thread:$0]  %s393_s0, 1536, %s16_s10, [#allocation3], %s314_s19, %s314_s19, %s315_s20  }
  0x13   :  { %s316_s23 = smov [#allocation5]   ;;  %s263_s27 = scalar_lea.hbm %s394_s1, 32 }
  0x14   :  { %s28_s24 = sshll.u32 %s316_s23, 4  ;;  %p264_p8 = scmp.ne.s32.totalorder %s394_s1, %s263_s27  ;;  %s29_s24 = int_to_ptr.vmem [resolvable:$true] %s28_s24 }
  0x15   :  { %p267_p9 = scmp.lt.u32.totalorder %s263_s27, %s394_s1 }
  0x17   :  { %p269_p10 = pnand %p267_p9, %p264_p8 }
  0x19   :  { %272 = shalt.err (!%p269_p10)
}
  0x1a   :  { %s273_s4 = scalar_lea.vmem %s29_s24, 32  ;;  %p278_p12 = scmp.lt.s32.totalorder %s29_s24, %s29_s24 }
  0x1b   :  { %p274_p11 = scmp.ne.s32.totalorder %s29_s24, %s273_s4  ;;  %p279_p13 = scmp.lt.s32.totalorder %s273_s4, %s273_s4 }
  0x1d   :  { %p280_p0 = por %p279_p13, %p278_p12 }
  0x1f   :  { %p281_p1 = pnand %p280_p0, %p274_p11 }
  0x21   :  { %284 = shalt.err (!%p281_p1)
}
  0x22   :  { %31 = dma.hbm_to_vmem [thread:$0]  %s394_s1, 32, %s29_s24, [#allocation6]  }
  0x23   :  { %307 = dma.done.wait [#allocation3], 1536  }
  0x24   :  { %308 = vsyncadd [#allocation3], 4294965760 }
  0x25   :  { %309 = dma.done.wait [#allocation6], 32  }
  0x26   :  { %310 = vsyncadd [#allocation6], 4294967264  ;;  %vm77_vm0 = vcmask 1041408   ;;  %v57_v0 = vld [vmem:[#allocation5] sm:$0x3]  ;;  %v44_v2 = vld [vmem:[#allocation2 + $0x28] sm:$0xff] }
  0x27   :  { %v43_v1 = vld [vmem:[#allocation2 + $0x20] sm:$0xff]  ;;  %vm58_vm1 = vcmask 31744   ;;  %235 = vmatprep.subr.msk.bf16.mxu1 %vm77_vm0, %v57_v0  ;;  %v79_v3 = vsel %vm77_vm0, %v57_v0, 0  ;;  %v45_v5 = vld [vmem:[#allocation2 + $0x30] sm:$0xff]  ;;  %v46_v6 = vld [vmem:[#allocation2 + $0x38] sm:$0xff]  ;;  %234 = vmatprep.subr.msk.bf16.mxu0 %vm77_vm0, %v57_v0  ;;  %vm174_vm2 = vcmask 64512  }
  0x28   :  { %v53_v4 = vpack.c.bf16 %v44_v2, %v43_v1  ;;  %v39_v7 = vld [vmem:[#allocation2] sm:$0xff]  ;;  %233 = vmatpush3.bf16.msra.mxu1 %v79_v3  ;;  %v54_v8 = vpack.c.bf16 %v46_v6, %v45_v5  ;;  %219 = vmatpush3.bf16.msra.mxu0 %v79_v3  ;;  %v40_v9 = vld [vmem:[#allocation2 + $0x8] sm:$0xff]  ;;  %v41_v10 = vld [vmem:[#allocation2 + $0x10] sm:$0xff]  ;;  %s317_s1 = smov [#allocation7]  }
  0x29   :  { %v42_v11 = vld [vmem:[#allocation2 + $0x18] sm:$0xff]  ;;  %v51_v12 = vpack.c.bf16 %v40_v9, %v39_v7  ;;  %v47_v14 = vld [vmem:[#allocation2 + $0x40] sm:$0xff]  ;;  %v48_v15 = vld [vmem:[#allocation2 + $0x48] sm:$0xff]  ;;  %s192_s6 = sshll.u32 %s317_s1, 4  ;;  %s193_s6 = int_to_ptr.vmem [resolvable:$true] %s192_s6 }
  0x2a   :  { %224 = vmatprep.mubr.msk.bf16.mxu1 %vm58_vm1, %v53_v4  ;;  %v52_v13 = vpack.c.bf16 %v42_v11, %v41_v10  ;;  %v55_v16 = vpack.c.bf16 %v48_v15, %v47_v14  ;;  %v49_v17 = vld [vmem:[#allocation2 + $0x50] sm:$0xff]  ;;  %v50_v18 = vld [vmem:[#allocation2 + $0x58] sm:$0xff]  ;;  %s285_s7 = scalar_lea.vmem %s193_s6, 1536  ;;  %p290_p3 = scmp.lt.s32.totalorder %s193_s6, %s193_s6 }
  0x2b   :  { %225 = vmatmul.mubr.msk.bf16.vlgmr.msra.gmra.mrb[0].mxu1 %vm58_vm1, %v54_v8  ;;  %220 = vmatprep.mubr.msk.bf16.mxu0 %vm58_vm1, %v51_v12  ;;  %v56_v19 = vpack.c.bf16 %v50_v18, %v49_v17  ;;  %p286_p2 = scmp.ne.s32.totalorder %s193_s6, %s285_s7  ;;  %p291_p4 = scmp.lt.s32.totalorder %s285_s7, %s285_s7 }
  0x2c   :  { %221 = vmatmul.mubr.msk.bf16.vlgmr.msra.gmra.mrb[0].mxu0 %vm58_vm1, %v52_v13  ;;  %228 = vmatprep.mubr.msk.bf16.mxu1 %vm58_vm1, %v55_v16 }
  0x2d   :  { %p292_p5 = por %p291_p4, %p290_p3 }
  0x2f   :  { %p293_p6 = pnand %p292_p5, %p286_p2 }
  0x33   :  { %229 = vmatmul.mubr.msk.bf16.gmra.mrb[4].mxu1 %vm58_vm1, %v56_v19 }
  0xfe   :  { %v226_v20 = vpop.f32.mrb[0].mxu1 }
  0xff   :  { %v168_v21 = vmax.f32 %v226_v20, 0.0  ;;  %v131_v22 = vpop.f32.mrb[1].mxu1  ;;  %v222_v23 = vpop.f32.mrb[0].mxu0 }
 0x100   :  { %v166_v24 = vmax.f32 %v131_v22, 0.0  ;;  %v227_v25 = vpop.f32.mrb[2].mxu1  ;;  %v164_v26 = vmax.f32 %v222_v23, 0.0  ;;  %v115_v27 = vpop.f32.mrb[1].mxu0 }
 0x101   :  { %181 = vst.msk [vmem:[#allocation7 + $0x30] sm:$0xff] %vm174_vm2, %v168_v21  ;;  %v169_v28 = vmax.f32 %v227_v25, 0.0  ;;  %v134_v29 = vpop.f32.mrb[3].mxu1  ;;  %v162_v30 = vmax.f32 %v115_v27, 0.0  ;;  %v223_v31 = vpop.f32.mrb[2].mxu0 }
 0x102   :  { %179 = vst.msk [vmem:[#allocation7 + $0x20] sm:$0xff] %vm174_vm2, %v166_v24  ;;  %v167_v32 = vmax.f32 %v134_v29, 0.0  ;;  %177 = vst.msk [vmem:[#allocation7 + $0x10] sm:$0xff] %vm174_vm2, %v164_v26  ;;  %v165_v33 = vmax.f32 %v223_v31, 0.0  ;;  %v118_v34 = vpop.f32.mrb[3].mxu0 }
 0x103   :  { %182 = vst.msk [vmem:[#allocation7 + $0x38] sm:$0xff] %vm174_vm2, %v169_v28  ;;  %175 = vst.msk [vmem:[#allocation7] sm:$0xff] %vm174_vm2, %v162_v30  ;;  %v163_v35 = vmax.f32 %v118_v34, 0.0 }
 0x104   :  { %180 = vst.msk [vmem:[#allocation7 + $0x28] sm:$0xff] %vm174_vm2, %v167_v32  ;;  %178 = vst.msk [vmem:[#allocation7 + $0x18] sm:$0xff] %vm174_vm2, %v165_v33 }
 0x105   :  { %176 = vst.msk [vmem:[#allocation7 + $0x8] sm:$0xff] %vm174_vm2, %v163_v35 }
 0x106   :  { %v230_v36 = vpop.f32.mrb[4].mxu1 }
 0x107   :  { %v172_v37 = vmax.f32 %v230_v36, 0.0  ;;  %v147_v38 = vpop.f32.mrb[5].mxu1 }
 0x108   :  { %v170_v39 = vmax.f32 %v147_v38, 0.0  ;;  %v231_v40 = vpop.f32.mrb[6].mxu1 }
 0x109   :  { %185 = vst.msk [vmem:[#allocation7 + $0x50] sm:$0xff] %vm174_vm2, %v172_v37  ;;  %v173_v41 = vmax.f32 %v231_v40, 0.0  ;;  %v150_v42 = vpop.f32.mrb[7].mxu1 }
 0x10a   :  { %183 = vst.msk [vmem:[#allocation7 + $0x40] sm:$0xff] %vm174_vm2, %v170_v39  ;;  %v171_v43 = vmax.f32 %v150_v42, 0.0 }
 0x10b   :  { %186 = vst.msk [vmem:[#allocation7 + $0x58] sm:$0xff] %vm174_vm2, %v173_v41 }
 0x10c   :  { %184 = vst.msk [vmem:[#allocation7 + $0x48] sm:$0xff] %vm174_vm2, %v171_v43 }
 0x10d   :  { %296 = shalt.err (!%p293_p6)
}
 0x10e   :  { %s297_s10 = scalar_lea.hbm %s395_s2, 1536 }
 0x10f   :  { %p298_p7 = scmp.ne.s32.totalorder %s395_s2, %s297_s10  ;;  %p301_p8 = scmp.lt.u32.totalorder %s297_s10, %s395_s2 }
 0x111   :  { %p303_p9 = pnand %p301_p8, %p298_p7 }
 0x113   :  { %306 = shalt.err (!%p303_p9)
}
 0x114   :  { %198 = dma.vmem_to_hbm [thread:$0]  %s193_s6, 1536, %s395_s2, [#allocation4], %s314_s19, %s314_s19, %s315_s20  }
 0x115   :  { %311 = dma.done.wait [#allocation4], 1536  }
 0x116   :  { %312 = vsyncadd [#allocation4], 4294965760 }
 0x117   :  { %202 = vsyncpa [#allocation3], 1 }
 0x118   :  { %203 = vsyncpa [#allocation6], 1 }
 0x119   :  { %204 = vsyncpa [#allocation4], 1 }

// kernel: _lambda_.15
= control target key start
LH: loop header
LB: loop body
LE: loop exit
PB: predicated region body
PF: predicated region fallthrough
CT: control target
= control target key end

     0   :  { %8 = vsyncpa [#allocation3], 0  ;;  %s322_s0 = inlined_call_operand.hbm [shape: f32[8,16], index: 0, kind: input, shape index: {}]   ;;  %s323_s1 = inlined_call_operand.hbm [shape: bf16[16,24], index: 1, kind: input, shape index: {}]   ;;  %s324_s2 = inlined_call_operand.hbm [shape: f32[1,24], index: 2, kind: input, shape index: {}]   ;;  %s325_s3 = inlined_call_operand.hbm [shape: f32[8,24], index: 3, kind: output, shape index: {}]  }
   0x1   :  { %9 = vsyncpa [#allocation6], 0 }
   0x2   :  { %10 = vsyncpa [#allocation4], 0  ;;  %s246_s12 = smov [#allocation5]   ;;  %s152_s16 = scalar_lea.hbm %s323_s1, 128 }
   0x3   :  { %s26_s13 = sshll.u32 %s246_s12, 4  ;;  %p153_p0 = scmp.ne.s32.totalorder %s323_s1, %s152_s16  ;;  %s27_s13 = int_to_ptr.vmem [resolvable:$true] %s26_s13 }
   0x4   :  { %p156_p1 = scmp.lt.u32.totalorder %s152_s16, %s323_s1 }
   0x6   :  { %p158_p2 = pnand %p156_p1, %p153_p0 }
   0x8   :  { %161 = shalt.err (!%p158_p2)
}
   0x9   :  { %s162_s21 = scalar_lea.vmem %s27_s13, 128  ;;  %p167_p4 = scmp.lt.s32.totalorder %s27_s13, %s27_s13 }
   0xa   :  { %p163_p3 = scmp.ne.s32.totalorder %s27_s13, %s162_s21  ;;  %p168_p5 = scmp.lt.s32.totalorder %s162_s21, %s162_s21 }
   0xc   :  { %p169_p6 = por %p168_p5, %p167_p4 }
   0xe   :  { %p170_p7 = pnand %p169_p6, %p163_p3 }
  0x10   :  { %173 = shalt.err (!%p170_p7)
}
  0x11   :  { %s247_s22 = smov 64   ;;  %s248_s23 = smov 4  }
  0x12   :  { %32 = dma.hbm_to_vmem [thread:$0]  %s323_s1, 128, %s27_s13, [#allocation6], %s247_s22, %s247_s22, %s248_s23  }
  0x13   :  { %s249_s26 = smov [#allocation2]   ;;  %s250_s28 = smov [#allocation7]  }
  0x14   :  { %s17_s27 = sshll.u32 %s249_s26, 4  ;;  %s39_s29 = sshll.u32 %s250_s28, 4  ;;  %s18_s27 = int_to_ptr.vmem [resolvable:$true] %s17_s27  ;;  %s40_s29 = int_to_ptr.vmem [resolvable:$true] %s39_s29 }
  0x15   :  { %s174_s5 = scalar_lea.hbm %s322_s0, 128 }
  0x16   :  { %p175_p8 = scmp.ne.s32.totalorder %s322_s0, %s174_s5  ;;  %p178_p9 = scmp.lt.u32.totalorder %s174_s5, %s322_s0 }
  0x18   :  { %p180_p10 = pnand %p178_p9, %p175_p8 }
  0x1a   :  { %183 = shalt.err (!%p180_p10)
}
  0x1b   :  { %s184_s1 = scalar_lea.vmem %s18_s27, 128  ;;  %p189_p12 = scmp.lt.s32.totalorder %s18_s27, %s18_s27 }
  0x1c   :  { %p185_p11 = scmp.ne.s32.totalorder %s18_s27, %s184_s1  ;;  %p190_p13 = scmp.lt.s32.totalorder %s184_s1, %s184_s1 }
  0x1e   :  { %p191_p0 = por %p190_p13, %p189_p12 }
  0x20   :  { %p192_p1 = pnand %p191_p0, %p185_p11 }
  0x22   :  { %195 = shalt.err (!%p192_p1)
}
  0x23   :  { %20 = dma.hbm_to_vmem [thread:$0]  %s322_s0, 128, %s18_s27, [#allocation3]  }
  0x24   :  { %s196_s14 = scalar_lea.hbm %s324_s2, 16 }
  0x25   :  { %p197_p2 = scmp.ne.s32.totalorder %s324_s2, %s196_s14  ;;  %p200_p3 = scmp.lt.u32.totalorder %s196_s14, %s324_s2 }
  0x27   :  { %p202_p4 = pnand %p200_p3, %p197_p2 }
  0x29   :  { %205 = shalt.err (!%p202_p4)
}
  0x2a   :  { %s206_s19 = scalar_lea.vmem %s40_s29, 16  ;;  %s210_s20 = scalar_lea.vmem %s40_s29, 32 }
  0x2b   :  { %p207_p5 = scmp.ne.s32.totalorder %s40_s29, %s206_s19  ;;  %p211_p6 = scmp.lt.s32.totalorder %s40_s29, %s40_s29 }
  0x2c   :  { %p212_p7 = scmp.lt.s32.totalorder %s210_s20, %s206_s19 }
  0x2e   :  { %p213_p8 = por %p212_p7, %p211_p6 }
  0x30   :  { %p214_p9 = pnand %p213_p8, %p207_p5 }
  0x32   :  { %217 = shalt.err (!%p214_p9)
}
  0x33   :  { %42 = dma.hbm_to_vmem [thread:$0]  %s324_s2, 16, %s40_s29, [#allocation6]  }
  0x34   :  { %240 = dma.done.wait [#allocation3], 128  }
  0x35   :  { %241 = vsyncadd [#allocation3], 4294967168 }
  0x36   :  { %242 = dma.done.wait [#allocation6], 144  }
  0x37   :  { %243 = vsyncadd [#allocation6], 4294967152  ;;  %v251_v0 = vmov 0.0   ;;  %vm252_vm0 = vmmov 0   ;;  %v151_v1 = vld [vmem:[#allocation5] sm:$0xff]   ;;  %v53_v2 = vld [vmem:[#allocation2] sm:$0xff] }
  0x38   :  { %137 = vmatprep.subr.bf16.mxu0 %v251_v0  ;;  %139 = vmatprep.mubr.msk.bf16.mxu0 %vm252_vm0, %v251_v0  ;;  %v54_v3 = vpack.c.bf16 %v53_v2, %v53_v2  ;;  %vm70_vm1 = vcmask 130048   ;;  %v132_v4 = vld [vmem:[#allocation7] ss:$0 sm:$0xff]  ;;  %s253_s22 = smov [#allocation8]   ;;  %vm114_vm2 = vcmask 195584  }
  0x39   :  { %138 = vmatpush3.bf16.msra.mxu0 %v151_v1  ;;  %s122_s23 = sshll.u32 %s253_s22, 4  ;;  %s123_s23 = int_to_ptr.vmem [resolvable:$true] %s122_s23 }
  0x3a   :  { %s218_s2 = scalar_lea.vmem %s123_s23, 128  ;;  %p223_p11 = scmp.lt.s32.totalorder %s123_s23, %s123_s23 }
  0x3b   :  { %p219_p10 = scmp.ne.s32.totalorder %s123_s23, %s218_s2  ;;  %p224_p12 = scmp.lt.s32.totalorder %s218_s2, %s218_s2 }
  0x3c   :  { %140 = vmatmul.mubr.msk.bf16.vlgmr.msra.gmra.mrb[0].mxu0 %vm70_vm1, %v54_v3 }
  0x3d   :  { %p225_p13 = por %p224_p12, %p223_p11 }
  0x3f   :  { %p226_p0 = pnand %p225_p13, %p219_p10 }
 0x10f   :  { %v108_v5 = vpop.f32.mrb[0].mxu0 }
 0x110   :  { %v109_v6 = vadd.f32 %v132_v4, %v108_v5  ;;  %v141_v7 = vpop.f32.mrb[1].mxu0 }
 0x111   :  { %v111_v8 = vpop.f32.mrb[2].mxu0 }
 0x112   :  { %v142_v9 = vpop.f32.mrb[3].mxu0  ;;  %115 = vst.msk [vmem:[#allocation8] sm:$0xff] %vm114_vm2, %v109_v6 }
 0x113   :  { %229 = shalt.err (!%p226_p0)
}
 0x114   :  { %s230_s26 = scalar_lea.hbm %s325_s3, 128 }
 0x115   :  { %p231_p1 = scmp.ne.s32.totalorder %s325_s3, %s230_s26  ;;  %p234_p2 = scmp.lt.u32.totalorder %s230_s26, %s325_s3 }
 0x117   :  { %p236_p3 = pnand %p234_p2, %p231_p1 }
 0x119   :  { %239 = shalt.err (!%p236_p3)
}
 0x11a   :  { %125 = dma.vmem_to_hbm [thread:$0]  %s123_s23, 128, %s325_s3, [#allocation4]  }
 0x11b   :  { %244 = dma.done.wait [#allocation4], 128  }
 0x11c   :  { %245 = vsyncadd [#allocation4], 4294967168 }
 0x11d   :  { %129 = vsyncpa [#allocation3], 1 }
 0x11e   :  { %130 = vsyncpa [#allocation6], 1 }
 0x11f   :  { %131 = vsyncpa [#allocation4], 1 }

// kernel: _lambda_.20
= control target key start
LH: loop header
LB: loop body
LE: loop exit
PB: predicated region body
PF: predicated region fallthrough
CT: control target
= control target key end

     0   :  { %8 = vsyncpa [#allocation3], 0  ;;  %s335_s0 = inlined_call_operand.hbm [shape: f32[8,32], index: 0, kind: input, shape index: {}]   ;;  %s336_s1 = inlined_call_operand.hbm [shape: bf16[32,48], index: 1, kind: input, shape index: {}]   ;;  %s337_s2 = inlined_call_operand.hbm [shape: f32[1,48], index: 2, kind: input, shape index: {}]   ;;  %s338_s3 = inlined_call_operand.hbm [shape: f32[8,48], index: 3, kind: output, shape index: {}]  }
   0x1   :  { %9 = vsyncpa [#allocation6], 0 }
   0x2   :  { %10 = vsyncpa [#allocation4], 0  ;;  %s259_s12 = smov [#allocation5]   ;;  %s165_s16 = scalar_lea.hbm %s336_s1, 256 }
   0x3   :  { %s26_s13 = sshll.u32 %s259_s12, 4  ;;  %p166_p0 = scmp.ne.s32.totalorder %s336_s1, %s165_s16  ;;  %s27_s13 = int_to_ptr.vmem [resolvable:$true] %s26_s13 }
   0x4   :  { %p169_p1 = scmp.lt.u32.totalorder %s165_s16, %s336_s1 }
   0x6   :  { %p171_p2 = pnand %p169_p1, %p166_p0 }
   0x8   :  { %174 = shalt.err (!%p171_p2)
}
   0x9   :  { %s175_s21 = scalar_lea.vmem %s27_s13, 256  ;;  %p180_p4 = scmp.lt.s32.totalorder %s27_s13, %s27_s13 }
   0xa   :  { %p176_p3 = scmp.ne.s32.totalorder %s27_s13, %s175_s21  ;;  %p181_p5 = scmp.lt.s32.totalorder %s175_s21, %s175_s21 }
   0xc   :  { %p182_p6 = por %p181_p5, %p180_p4 }
   0xe   :  { %p183_p7 = pnand %p182_p6, %p176_p3 }
  0x10   :  { %186 = shalt.err (!%p183_p7)
}
  0x11   :  { %s260_s22 = smov 64   ;;  %s261_s23 = smov 4  }
  0x12   :  { %32 = dma.hbm_to_vmem [thread:$0]  %s336_s1, 256, %s27_s13, [#allocation6], %s260_s22, %s260_s22, %s261_s23  }
  0x13   :  { %s262_s26 = smov [#allocation2]   ;;  %s263_s28 = smov [#allocation7]  }
  0x14   :  { %s17_s27 = sshll.u32 %s262_s26, 4  ;;  %s39_s29 = sshll.u32 %s263_s28, 4  ;;  %s18_s27 = int_to_ptr.vmem [resolvable:$true] %s17_s27  ;;  %s40_s29 = int_to_ptr.vmem [resolvable:$true] %s39_s29 }
  0x15   :  { %s187_s5 = scalar_lea.hbm %s335_s0, 128 }
  0x16   :  { %p188_p8 = scmp.ne.s32.totalorder %s335_s0, %s187_s5  ;;  %p191_p9 = scmp.lt.u32.totalorder %s187_s5, %s335_s0 }
  0x18   :  { %p193_p10 = pnand %p191_p9, %p188_p8 }
  0x1a   :  { %196 = shalt.err (!%p193_p10)
}
  0x1b   :  { %s197_s1 = scalar_lea.vmem %s18_s27, 128  ;;  %p202_p12 = scmp.lt.s32.totalorder %s18_s27, %s18_s27 }
  0x1c   :  { %p198_p11 = scmp.ne.s32.totalorder %s18_s27, %s197_s1  ;;  %p203_p13 = scmp.lt.s32.totalorder %s197_s1, %s197_s1 }
  0x1e   :  { %p204_p0 = por %p203_p13, %p202_p12 }
  0x20   :  { %p205_p1 = pnand %p204_p0, %p198_p11 }
  0x22   :  { %208 = shalt.err (!%p205_p1)
}
  0x23   :  { %20 = dma.hbm_to_vmem [thread:$0]  %s335_s0, 128, %s18_s27, [#allocation3]  }
  0x24   :  { %s209_s14 = scalar_lea.hbm %s337_s2, 16 }
  0x25   :  { %p210_p2 = scmp.ne.s32.totalorder %s337_s2, %s209_s14  ;;  %p213_p3 = scmp.lt.u32.totalorder %s209_s14, %s337_s2 }
  0x27   :  { %p215_p4 = pnand %p213_p3, %p210_p2 }
  0x29   :  { %218 = shalt.err (!%p215_p4)
}
  0x2a   :  { %s219_s19 = scalar_lea.vmem %s40_s29, 16  ;;  %s223_s20 = scalar_lea.vmem %s40_s29, 32 }
  0x2b   :  { %p220_p5 = scmp.ne.s32.totalorder %s40_s29, %s219_s19  ;;  %p224_p6 = scmp.lt.s32.totalorder %s40_s29, %s40_s29 }
  0x2c   :  { %p225_p7 = scmp.lt.s32.totalorder %s223_s20, %s219_s19 }
  0x2e   :  { %p226_p8 = por %p225_p7, %p224_p6 }
  0x30   :  { %p227_p9 = pnand %p226_p8, %p220_p5 }
  0x32   :  { %230 = shalt.err (!%p227_p9)
}
  0x33   :  { %42 = dma.hbm_to_vmem [thread:$0]  %s337_s2, 16, %s40_s29, [#allocation6]  }
  0x34   :  { %253 = dma.done.wait [#allocation3], 128  }
  0x35   :  { %254 = vsyncadd [#allocation3], 4294967168 }
  0x36   :  { %255 = dma.done.wait [#allocation6], 272  }
  0x37   :  { %256 = vsyncadd [#allocation6], 4294967024  ;;  %v264_v0 = vmov 0.0   ;;  %vm265_vm0 = vmmov 0   ;;  %v163_v1 = vld [vmem:[#allocation5] sm:$0xff]   ;;  %v164_v2 = vld [vmem:[#allocation5 + $0x8] sm:$0xff]  }
  0x38   :  { %147 = vmatprep.subr.bf16.mxu0 %v264_v0  ;;  %151 = vmatprep.mubr.msk.bf16.mxu0 %vm265_vm0, %v264_v0  ;;  %v53_v3 = vld [vmem:[#allocation2] sm:$0xff]  ;;  %vm78_vm1 = vcmask 261120   ;;  %v140_v5 = vld [vmem:[#allocation7] ss:$0 sm:$0xff]  ;;  %s266_s22 = smov [#allocation8]   ;;  %vm122_vm2 = vcmask 392192  }
  0x39   :  { %148 = vmatpush3.bf16.msra.mxu0 %v163_v1  ;;  %v54_v4 = vpack.c.bf16 %v53_v3, %v53_v3  ;;  %s130_s2 = sshll.u32 %s266_s22, 4  ;;  %s131_s2 = int_to_ptr.vmem [resolvable:$true] %s130_s2 }
  0x3a   :  { %149 = vmatprep.subr.bf16.mxu0 %v264_v0  ;;  %s231_s23 = scalar_lea.vmem %s131_s2, 128  ;;  %p236_p11 = scmp.lt.s32.totalorder %s131_s2, %s131_s2 }
  0x3b   :  { %p232_p10 = scmp.ne.s32.totalorder %s131_s2, %s231_s23  ;;  %p237_p12 = scmp.lt.s32.totalorder %s231_s23, %s231_s23 }
  0x3d   :  { %150 = vmatpush3.bf16.msra.mxu0 %v164_v2  ;;  %p238_p13 = por %p237_p12, %p236_p11 }
  0x3f   :  { %p239_p0 = pnand %p238_p13, %p232_p10 }
  0x40   :  { %152 = vmatmul.mubr.msk.bf16.vlgmr.msra.gmra.mrb[0].mxu0 %vm78_vm1, %v54_v4 }
 0x113   :  { %v116_v6 = vpop.f32.mrb[0].mxu0 }
 0x114   :  { %v117_v7 = vadd.f32 %v140_v5, %v116_v6  ;;  %v153_v8 = vpop.f32.mrb[1].mxu0 }
 0x115   :  { %v119_v9 = vpop.f32.mrb[2].mxu0 }
 0x116   :  { %v154_v10 = vpop.f32.mrb[3].mxu0  ;;  %123 = vst.msk [vmem:[#allocation8] sm:$0xff] %vm122_vm2, %v117_v7 }
 0x117   :  { %242 = shalt.err (!%p239_p0)
}
 0x118   :  { %s243_s26 = scalar_lea.hbm %s338_s3, 128 }
 0x119   :  { %p244_p1 = scmp.ne.s32.totalorder %s338_s3, %s243_s26  ;;  %p247_p2 = scmp.lt.u32.totalorder %s243_s26, %s338_s3 }
 0x11b   :  { %p249_p3 = pnand %p247_p2, %p244_p1 }
 0x11d   :  { %252 = shalt.err (!%p249_p3)
}
 0x11e   :  { %133 = dma.vmem_to_hbm [thread:$0]  %s131_s2, 128, %s338_s3, [#allocation4]  }
 0x11f   :  { %257 = dma.done.wait [#allocation4], 128  }
 0x120   :  { %258 = vsyncadd [#allocation4], 4294967168 }
 0x121   :  { %137 = vsyncpa [#allocation3], 1 }
 0x122   :  { %138 = vsyncpa [#allocation6], 1 }
 0x123   :  { %139 = vsyncpa [#allocation4], 1 }

// kernel: _lambda_.21
= control target key start
LH: loop header
LB: loop body
LE: loop exit
PB: predicated region body
PF: predicated region fallthrough
CT: control target
= control target key end

     0   :  { %10 = vsyncpa [#allocation3], 0  ;;  %s1280_s0 = inlined_call_operand.hbm [shape: f32[4,2,32], index: 0, kind: input, shape index: {}]   ;;  %s1281_s1 = inlined_call_operand.hbm [shape: f32[4,2,48], index: 1, kind: input, shape index: {}]   ;;  %s1282_s2 = inlined_call_operand.hbm [shape: f32[4,2,32], index: 2, kind: input, shape index: {}]   ;;  %s1283_s3 = inlined_call_operand.hbm [shape: f32[8,32], index: 3, kind: input, shape index: {}]   ;;  %s1284_s4 = inlined_call_operand.hbm [shape: f32[1,32], index: 4, kind: input, shape index: {}]   ;;  %s1285_s5 = inlined_call_operand.hbm [shape: f32[4,2,32], index: 5, kind: output, shape index: {}]  }
   0x1   :  { %11 = vsyncpa [#allocation6], 0 }
   0x2   :  { %12 = vsyncpa [#allocation9], 0 }
   0x3   :  { %13 = vsyncpa [#allocation4], 0  ;;  %s957_s18 = smov [#allocation5]   ;;  %s958_s20 = smov [#allocation8]  }
   0x4   :  { %s31_s19 = sshll.u32 %s957_s18, 4  ;;  %s56_s21 = sshll.u32 %s958_s20, 4  ;;  %s32_s19 = int_to_ptr.vmem [resolvable:$true] %s31_s19  ;;  %s57_s21 = int_to_ptr.vmem [resolvable:$true] %s56_s21 }
   0x5   :  { %s817_s24 = scalar_lea.hbm %s1281_s1, 128 }
   0x6   :  { %p818_p0 = scmp.ne.s32.totalorder %s1281_s1, %s817_s24  ;;  %p821_p1 = scmp.lt.u32.totalorder %s817_s24, %s1281_s1 }
   0x8   :  { %p823_p2 = pnand %p821_p1, %p818_p0 }
   0xa   :  { %826 = shalt.err (!%p823_p2)
}
   0xb   :  { %s827_s29 = scalar_lea.vmem %s32_s19, 128  ;;  %p832_p4 = scmp.lt.s32.totalorder %s32_s19, %s32_s19 }
   0xc   :  { %p828_p3 = scmp.ne.s32.totalorder %s32_s19, %s827_s29  ;;  %p833_p5 = scmp.lt.s32.totalorder %s827_s29, %s827_s29 }
   0xe   :  { %p834_p6 = por %p833_p5, %p832_p4 }
  0x10   :  { %p835_p7 = pnand %p834_p6, %p828_p3 }
  0x12   :  { %838 = shalt.err (!%p835_p7)
}
  0x13   :  { %s959_s30 = smov 32   ;;  %s960_s6 = smov 2  }
  0x14   :  { %37 = dma.hbm_to_vmem [thread:$0]  %s1281_s1, 128, %s32_s19, [#allocation6], %s959_s30, %s959_s30, %s960_s6  }
  0x15   :  { %s839_s11 = scalar_lea.hbm %s1283_s3, 128 }
  0x16   :  { %p840_p8 = scmp.ne.s32.totalorder %s1283_s3, %s839_s11  ;;  %p843_p9 = scmp.lt.u32.totalorder %s839_s11, %s1283_s3 }
  0x18   :  { %p845_p10 = pnand %p843_p9, %p840_p8 }
  0x1a   :  { %848 = shalt.err (!%p845_p10)
}
  0x1b   :  { %s849_s16 = scalar_lea.vmem %s57_s21, 128  ;;  %p854_p12 = scmp.lt.s32.totalorder %s57_s21, %s57_s21 }
  0x1c   :  { %p850_p11 = scmp.ne.s32.totalorder %s57_s21, %s849_s16  ;;  %p855_p13 = scmp.lt.s32.totalorder %s849_s16, %s849_s16 }
  0x1e   :  { %p856_p0 = por %p855_p13, %p854_p12 }
  0x20   :  { %p857_p1 = pnand %p856_p0, %p850_p11 }
  0x22   :  { %860 = shalt.err (!%p857_p1)
}
  0x23   :  { %59 = dma.hbm_to_vmem [thread:$0]  %s1283_s3, 128, %s57_s21, [#allocation9]  }
  0x24   :  { %s961_s18 = smov [#allocation2]   ;;  %s962_s20 = smov [#allocation7]  }
  0x25   :  { %s19_s19 = sshll.u32 %s961_s18, 4  ;;  %s43_s22 = sshll.u32 %s962_s20, 4  ;;  %s20_s19 = int_to_ptr.vmem [resolvable:$true] %s19_s19  ;;  %s1023_s22 = int_to_ptr.vmem [resolvable:$true] %s43_s22 }
  0x26   :  { %s861_s25 = scalar_lea.hbm %s1280_s0, 128 }
  0x27   :  { %p862_p2 = scmp.ne.s32.totalorder %s1280_s0, %s861_s25  ;;  %p865_p3 = scmp.lt.u32.totalorder %s861_s25, %s1280_s0 }
  0x29   :  { %p867_p4 = pnand %p865_p3, %p862_p2 }
  0x2b   :  { %870 = shalt.err (!%p867_p4)
}
  0x2c   :  { %s871_s3 = scalar_lea.vmem %s20_s19, 128  ;;  %p876_p6 = scmp.lt.s32.totalorder %s20_s19, %s20_s19 }
  0x2d   :  { %p872_p5 = scmp.ne.s32.totalorder %s20_s19, %s871_s3  ;;  %p877_p7 = scmp.lt.s32.totalorder %s871_s3, %s871_s3 }
  0x2f   :  { %p878_p8 = por %p877_p7, %p876_p6 }
  0x31   :  { %p879_p9 = pnand %p878_p8, %p872_p5 }
  0x33   :  { %882 = shalt.err (!%p879_p9)
}
  0x34   :  { %25 = dma.hbm_to_vmem [thread:$0]  %s1280_s0, 128, %s20_s19, [#allocation3], %s959_s30, %s959_s30, %s960_s6  }
  0x35   :  { %s883_s10 = scalar_lea.hbm %s1282_s2, 128 }
  0x36   :  { %p884_p10 = scmp.ne.s32.totalorder %s1282_s2, %s883_s10  ;;  %p887_p11 = scmp.lt.u32.totalorder %s883_s10, %s1282_s2 }
  0x38   :  { %p889_p12 = pnand %p887_p11, %p884_p10 }
  0x3a   :  { %892 = shalt.err (!%p889_p12)
}
  0x3b   :  { %s893_s15 = scalar_lea.vmem %s1023_s22, 128  ;;  %p898_p0 = scmp.lt.s32.totalorder %s1023_s22, %s1023_s22 }
  0x3c   :  { %p894_p13 = scmp.ne.s32.totalorder %s1023_s22, %s893_s15  ;;  %p899_p1 = scmp.lt.s32.totalorder %s893_s15, %s893_s15 }
  0x3e   :  { %p900_p2 = por %p899_p1, %p898_p0 }
  0x40   :  { %p901_p3 = pnand %p900_p2, %p894_p13 }
  0x42   :  { %904 = shalt.err (!%p901_p3)
}
  0x43   :  { %49 = dma.hbm_to_vmem [thread:$0]  %s1282_s2, 128, %s1023_s22, [#allocation6], %s959_s30, %s959_s30, %s960_s6  }
  0x44   :  { %s963_s1 = smov [#allocation10]   ;;  %s905_s20 = scalar_lea.hbm %s1284_s4, 16 }
  0x45   :  { %s66_s17 = sshll.u32 %s963_s1, 4  ;;  %p906_p4 = scmp.ne.s32.totalorder %s1284_s4, %s905_s20  ;;  %s67_s17 = int_to_ptr.vmem [resolvable:$true] %s66_s17 }
  0x46   :  { %p909_p5 = scmp.lt.u32.totalorder %s905_s20, %s1284_s4 }
  0x48   :  { %p911_p6 = pnand %p909_p5, %p906_p4 }
  0x4a   :  { %914 = shalt.err (!%p911_p6)
}
  0x4b   :  { %s915_s27 = scalar_lea.vmem %s67_s17, 16  ;;  %s919_s2 = scalar_lea.vmem %s67_s17, 32 }
  0x4c   :  { %p916_p7 = scmp.ne.s32.totalorder %s67_s17, %s915_s27  ;;  %p920_p8 = scmp.lt.s32.totalorder %s67_s17, %s67_s17 }
  0x4d   :  { %p921_p9 = scmp.lt.s32.totalorder %s919_s2, %s915_s27 }
  0x4f   :  { %p922_p10 = por %p921_p9, %p920_p8 }
  0x51   :  { %p923_p11 = pnand %p922_p10, %p916_p7 }
  0x53   :  { %926 = shalt.err (!%p923_p11)
}
  0x54   :  { %69 = dma.hbm_to_vmem [thread:$0]  %s1284_s4, 16, %s67_s17, [#allocation9]  }
  0x55   :  { %949 = dma.done.wait [#allocation3], 128  }
  0x56   :  { %950 = vsyncadd [#allocation3], 4294967168 }
  0x57   :  { %951 = dma.done.wait [#allocation6], 256  }
  0x58   :  { %952 = vsyncadd [#allocation6], 4294967040 }
  0x59   :  { %953 = dma.done.wait [#allocation9], 144  }
  0x5a   :  { %954 = vsyncadd [#allocation9], 4294967152  ;;  %v106_v0 = vlaneseq  ;;  %v1078_v4 = vld [vmem:[#allocation5 + $0x4] sm:$0x3]  ;;  %v1080_v5 = vld [vmem:[#allocation5 + $0x6] sm:$0x3] }
  0x5b   :  { %v264_v7 = vand.u32 2147483647, %v1078_v4  ;;  %v94_v9 = vand.u32 2147483647, %v1080_v5  ;;  %v1086_v10 = vld [vmem:[#allocation5 + $0x2] sm:$0x3] }
  0x5c   :  { %v1072_v1 = vshrl.u32 %v106_v0, 7  ;;  %v1088_v11 = vld [vmem:[#allocation5] sm:$0x3]  ;;  %v425_v15 = vand.u32 2147483647, %v1086_v10  ;;  %v263_v39 = vmax.f32 %v1078_v4, 0.0 }
  0x5d   :  { %v265_v12 = vsub.f32 0.0, %v264_v7  ;;  %v95_v16 = vsub.f32 0.0, %v94_v9  ;;  %v583_v17 = vand.u32 2147483647, %v1088_v11  ;;  %v964_v36 = vmov 1966171168  }
  0x5e   :  { %v151_v2 = vsub.s32 1, %v1072_v1  ;;  %v1076_v3 = vsub.s32 0, %v1072_v1  ;;  %v426_v19 = vsub.f32 0.0, %v425_v15  ;;  %v104_v37 = vunpack.c.l.s4 %v964_v36  ;;  %v1108_v48 = vld [vmem:[#allocation2 + $0x4] sm:$0x3]  ;;  %s965_s4 = smov [#allocation11]  }
  0x5f   :  { %v266_v18 = vmul.f32 1.442695, %v265_v12  ;;  %v96_v20 = vmul.f32 1.442695, %v95_v16  ;;  %v584_v21 = vsub.f32 0.0, %v583_v17  ;;  %v93_v41 = vmax.f32 %v1080_v5, 0.0 }
  0x60   :  { %v322_v6 = vrot.slane %v1078_v4, %v151_v2  ;;  %v152_v8 = vrot.slane %v1080_v5, %v151_v2  ;;  %v314_v13 = vrot.slane %v1078_v4, %v1076_v3  ;;  %v144_v14 = vrot.slane %v1080_v5, %v1076_v3  ;;  %v1110_v50 = vld [vmem:[#allocation2 + $0x6] sm:$0x3]  ;;  %v1122_v4 = vld [vmem:[#allocation2 + $0x2] sm:$0x3]  ;;  %s741_s29 = sshll.u32 %s965_s4, 4  ;;  %s742_s29 = int_to_ptr.vmem [resolvable:$true] %s741_s29 }
  0x61   :  { %769 = vpow2.f32 %v266_v18  ;;  %v427_v22 = vmul.f32 1.442695, %v426_v19  ;;  %v475_v23 = vrot.slane %v1086_v10, %v1076_v3  ;;  %v483_v24 = vrot.slane %v1086_v10, %v151_v2  ;;  %s927_s3 = scalar_lea.vmem %s742_s29, 128  ;;  %p932_p13 = scmp.lt.s32.totalorder %s742_s29, %s742_s29 }
  0x62   :  { %325 = vbcast.lane.b32.xlu1 %v322_v6, 288  ;;  %155 = vbcast.lane.b32.xlu0 %v152_v8, 288  ;;  %771 = vpow2.f32 %v96_v20  ;;  %v585_v25 = vmul.f32 1.442695, %v584_v21  ;;  %v633_v26 = vrot.slane %v1088_v11, %v1076_v3  ;;  %v641_v27 = vrot.slane %v1088_v11, %v151_v2  ;;  %p928_p12 = scmp.ne.s32.totalorder %s742_s29, %s927_s3  ;;  %p933_p0 = scmp.lt.s32.totalorder %s927_s3, %s927_s3 }
  0x63   :  { %773 = vpow2.f32 %v427_v22  ;;  %v105_v38 = vunpack.c.0.s8 %v104_v37  ;;  %v424_v44 = vmax.f32 %v1086_v10, 0.0  ;;  %v582_v58 = vmax.f32 %v1088_v11, 0.0 }
  0x64   :  { %775 = vpow2.f32 %v585_v25  ;;  %vm207_vm0 = vcmask 261120   ;;  %vm251_vm1 = vcmask 1041409   ;;  %vm255_vm2 = vcmask 254976   ;;  %p934_p1 = por %p933_p0, %p932_p13 }
  0x65   :  { %v1106_v46 = vsub.s32 %v105_v38, %v1072_v1 }
  0x66   :  { %317 = vbcast.lane.b32.xlu1 %v314_v13, 288  ;;  %147 = vbcast.lane.b32.xlu0 %v144_v14, 288  ;;  %p935_p2 = pnand %p934_p1, %p928_p12 }
  0x6a   :  { %478 = vbcast.lane.b32.xlu1 %v475_v23, 288  ;;  %486 = vbcast.lane.b32.xlu0 %v483_v24, 288 }
  0x6b   :  { %v770_v28 = vpop.eup %769 }
  0x6c   :  { %v772_v29 = vpop.eup %771  ;;  %v268_v30 = vadd.f32 1.0, %v770_v28 }
  0x6d   :  { %v774_v31 = vpop.eup %773  ;;  %v98_v32 = vadd.f32 1.0, %v772_v29  ;;  %v1153_v29 = vld [vmem:[#allocation2] sm:$0x3] }
  0x6e   :  { %636 = vbcast.lane.b32.xlu1 %v633_v26, 288  ;;  %644 = vbcast.lane.b32.xlu0 %v641_v27, 288  ;;  %v776_v33 = vpop.eup %775  ;;  %777 = vlog2.f32 %v268_v30  ;;  %v429_v34 = vadd.f32 1.0, %v774_v31 }
  0x6f   :  { %779 = vlog2.f32 %v98_v32  ;;  %v587_v35 = vadd.f32 1.0, %v776_v33 }
  0x70   :  { %781 = vlog2.f32 %v429_v34 }
  0x71   :  { %783 = vlog2.f32 %v587_v35 }
  0x72   :  { %373 = vbcast.lane.b32.xlu1 %v322_v6, 296  ;;  %203 = vbcast.lane.b32.xlu0 %v152_v8, 296 }
  0x76   :  { %692 = vbcast.lane.b32.xlu1 %v641_v27, 296  ;;  %534 = vbcast.lane.b32.xlu0 %v483_v24, 296 }
  0x78   :  { %v778_v40 = vpop.eup %777 }
  0x79   :  { %v780_v42 = vpop.eup %779  ;;  %v270_v43 = vmul.f32 0.6931472, %v778_v40 }
  0x7a   :  { %369 = vbcast.lane.b32.xlu1 %v314_v13, 296  ;;  %199 = vbcast.lane.b32.xlu0 %v144_v14, 296  ;;  %v782_v45 = vpop.eup %781  ;;  %v100_v47 = vmul.f32 0.6931472, %v780_v42 }
  0x7b   :  { %v271_v49 = vadd.f32 %v270_v43, %v263_v39  ;;  %v431_v51 = vmul.f32 0.6931472, %v782_v45  ;;  %v784_v53 = vpop.eup %783 }
  0x7c   :  { %v101_v52 = vadd.f32 %v100_v47, %v93_v41  ;;  %v589_v5 = vmul.f32 0.6931472, %v784_v53 }
  0x7d   :  { %v279_v54 = vrot.slane %v271_v49, %v1106_v46  ;;  %v327_v55 = vmul.f32 %v271_v49, %v1108_v48  ;;  %v432_v56 = vadd.f32 %v431_v51, %v424_v44 }
  0x7e   :  { %688 = vbcast.lane.b32.xlu1 %v633_v26, 296  ;;  %530 = vbcast.lane.b32.xlu0 %v475_v23, 296  ;;  %v109_v57 = vrot.slane %v101_v52, %v1106_v46  ;;  %v157_v59 = vmul.f32 %v101_v52, %v1110_v50  ;;  %v590_v21 = vadd.f32 %v589_v5, %v582_v58  ;;  %v85_v52 = vld [vmem:[#allocation8] sm:$0xff] }
  0x7f   :  { %v280_v60 = vcombine.high %v279_v54, %v279_v54  ;;  %v287_v61 = vrot.slane %v279_v54, %v1106_v46  ;;  %v335_v62 = vrot.slane %v327_v55, %v1106_v46  ;;  %v440_v63 = vrot.slane %v432_v56, %v1106_v46 }
  0x80   :  { %v110_v0 = vcombine.high %v109_v57, %v109_v57  ;;  %v165_v1 = vrot.slane %v157_v59, %v1106_v46  ;;  %v117_v2 = vrot.slane %v109_v57, %v1106_v46  ;;  %v488_v17 = vmul.f32 %v432_v56, %v1122_v4  ;;  %v1181_v57 = vld [vmem:[#allocation7 + $0x4] sm:$0x3]  ;;  %v1183_v59 = vld [vmem:[#allocation7 + $0x6] sm:$0x3] }
  0x81   :  { %v294_v6 = vrot.slane %v280_v60, %v1106_v46  ;;  %v298_v7 = vrot.slane %v287_v61, %v1076_v3  ;;  %v336_v8 = vcombine.high %v335_v62, %v335_v62  ;;  %v343_v9 = vrot.slane %v335_v62, %v1106_v46 }
  0x82   :  { %v124_v10 = vrot.slane %v110_v0, %v1106_v46  ;;  %v166_v11 = vcombine.high %v165_v1, %v165_v1  ;;  %v128_v12 = vrot.slane %v117_v2, %v1076_v3  ;;  %v173_v13 = vrot.slane %v165_v1, %v1106_v46 }
  0x83   :  { %v1131_v14 = vrot.slane %v336_v8, %v1106_v46  ;;  %v302_v15 = vrot.slane %v294_v6, %v1076_v3  ;;  %v1135_v16 = vrot.slane %v343_v9, %v1076_v3  ;;  %v441_v23 = vcombine.high %v440_v63, %v440_v63  ;;  %v1187_v6 = vld [vmem:[#allocation7] sm:$0x3]  ;;  %v1189_v9 = vld [vmem:[#allocation7 + $0x2] sm:$0x3] }
  0x84   :  { %v132_v18 = vrot.slane %v124_v10, %v1076_v3  ;;  %v1140_v19 = vrot.slane %v166_v11, %v1106_v46  ;;  %v1143_v20 = vrot.slane %v173_v13, %v1076_v3  ;;  %v448_v25 = vrot.slane %v440_v63, %v1106_v46 }
  0x85   :  { %v358_v22 = vrot.slane %v1131_v14, %v1076_v3  ;;  %v455_v26 = vrot.slane %v441_v23, %v1106_v46  ;;  %v496_v27 = vrot.slane %v488_v17, %v1106_v46  ;;  %v598_v30 = vrot.slane %v590_v21, %v1106_v46 }
  0x86   :  { %v188_v24 = vrot.slane %v1140_v19, %v1076_v3  ;;  %v459_v28 = vrot.slane %v448_v25, %v1076_v3  ;;  %v646_v38 = vmul.f32 %v590_v21, %v1153_v29  ;;  %v136_v53 = vmul.f32 %v132_v18, %v85_v52 }
  0x87   :  { %v504_v31 = vrot.slane %v496_v27, %v1106_v46  ;;  %v463_v32 = vrot.slane %v455_v26, %v1076_v3  ;;  %v497_v33 = vcombine.high %v496_v27, %v496_v27  ;;  %v599_v34 = vcombine.high %v598_v30, %v598_v30 }
  0x88   :  { %v606_v35 = vrot.slane %v598_v30, %v1106_v46  ;;  %v654_v42 = vrot.slane %v646_v38, %v1106_v46  ;;  %v139_v54 = vmul.f32 1.442695, %v136_v53  ;;  %v135_v55 = vmul.f32 %v128_v12, %v85_v52 }
  0x89   :  { %v1160_v36 = vrot.slane %v504_v31, %v1076_v3  ;;  %v1163_v37 = vrot.slane %v497_v33, %v1106_v46  ;;  %v613_v39 = vrot.slane %v599_v34, %v1106_v46  ;;  %v306_v56 = vmul.f32 %v302_v15, %v85_v52 }
  0x8a   :  { %v617_v40 = vrot.slane %v606_v35, %v1076_v3  ;;  %v662_v44 = vrot.slane %v654_v42, %v1106_v46  ;;  %v655_v45 = vcombine.high %v654_v42, %v654_v42  ;;  %785 = vpow2.f32 %v139_v54 }
  0x8b   :  { %v519_v41 = vrot.slane %v1163_v37, %v1076_v3  ;;  %v621_v43 = vrot.slane %v613_v39, %v1076_v3  ;;  %v137_v58 = vmul.f32 1.442695, %v135_v55  ;;  %v305_v60 = vmul.f32 %v298_v7, %v85_v52 }
  0x8c   :  { %v1174_v47 = vrot.slane %v662_v44, %v1076_v3  ;;  %v1177_v49 = vrot.slane %v655_v45, %v1106_v46  ;;  %v757_v61 = vmul.f32 -1.442695, %v1181_v57  ;;  %v309_v62 = vmul.f32 1.442695, %v306_v56 }
  0x8d   :  { %v467_v46 = vmul.f32 %v463_v32, %v85_v52  ;;  %v756_v63 = vmul.f32 -1.442695, %v1183_v59  ;;  %787 = vpow2.f32 %v137_v58  ;;  %v307_v0 = vmul.f32 1.442695, %v305_v60 }
  0x8e   :  { %v677_v51 = vrot.slane %v1177_v49, %v1076_v3  ;;  %v466_v1 = vmul.f32 %v459_v28, %v85_v52  ;;  %789 = vpow2.f32 %v757_v61  ;;  %v625_v5 = vmul.f32 %v621_v43, %v85_v52 }
  0x8f   :  { %791 = vpow2.f32 %v309_v62  ;;  %v470_v2 = vmul.f32 1.442695, %v467_v46  ;;  %v624_v11 = vmul.f32 %v617_v40, %v85_v52  ;;  %v759_v12 = vmul.f32 -1.442695, %v1187_v6 }
  0x90   :  { %793 = vpow2.f32 %v756_v63  ;;  %v468_v8 = vmul.f32 1.442695, %v466_v1  ;;  %v628_v10 = vmul.f32 1.442695, %v625_v5  ;;  %v758_v13 = vmul.f32 -1.442695, %v1189_v9 }
  0x91   :  { %795 = vpow2.f32 %v307_v0  ;;  %v626_v23 = vmul.f32 1.442695, %v624_v11 }
  0x92   :  { %797 = vpow2.f32 %v470_v2 }
  0x93   :  { %799 = vpow2.f32 %v468_v8 }
  0x94   :  { %v786_v7 = vpop.eup %785  ;;  %801 = vpow2.f32 %v628_v10 }
  0x95   :  { %v194_v15 = vmul.f32 0.0, %v786_v7  ;;  %803 = vpow2.f32 %v759_v12 }
  0x96   :  { %805 = vpow2.f32 %v758_v13 }
  0x97   :  { %v788_v17 = vpop.eup %787  ;;  %807 = vpow2.f32 %v626_v23 }
  0x98   :  { %v790_v25 = vpop.eup %789  ;;  %v193_v31 = vmul.f32 0.0, %v788_v17 }
  0x99   :  { %v792_v27 = vpop.eup %791  ;;  %v401_v34 = vadd.f32 1.0, %v790_v25 }
  0x9a   :  { %v794_v28 = vpop.eup %793 }
  0x9b   :  { %v796_v35 = vpop.eup %795  ;;  %809 = vrcp.f32 %v401_v34 }
  0x9c   :  { %v798_v19 = vpop.eup %797 }
  0x9d   :  { %v800_v52 = vpop.eup %799 }
  0x9e   :  { %v802_v55 = vpop.eup %801 }
  0xd4   :  { %v326_v18 = vpop.permute.xlu1 %325  ;;  %v156_v21 = vpop.permute.xlu0 %155 }
  0xd5   :  { %v192_v26 = vmul.f32 %v188_v24, %v156_v21  ;;  %v362_v38 = vmul.f32 %v358_v22, %v326_v18  ;;  %v238_v24 = vadd.f32 1.0, %v794_v28 }
  0xd7   :  { %v196_v30 = vadd.f32 %v194_v15, %v192_v26  ;;  %811 = vrcp.f32 %v238_v24 }
  0xd8   :  { %v318_v32 = vpop.permute.xlu1 %317  ;;  %v148_v33 = vpop.permute.xlu0 %147 }
  0xd9   :  { %v364_v39 = vmul.f32 %v792_v27, %v196_v30  ;;  %v191_v40 = vmul.f32 %v1143_v20, %v148_v33  ;;  %v361_v53 = vmul.f32 %v1135_v16, %v318_v32  ;;  %v804_v20 = vpop.eup %803 }
  0xda   :  { %v806_v60 = vpop.eup %805  ;;  %v720_v37 = vadd.f32 1.0, %v804_v20 }
  0xdb   :  { %v1200_v42 = vadd.f32 %v193_v31, %v191_v40  ;;  %v366_v43 = vadd.f32 %v364_v39, %v362_v38  ;;  %v808_v1 = vpop.eup %807  ;;  %v562_v8 = vadd.f32 1.0, %v806_v60 }
  0xdc   :  { %v479_v44 = vpop.permute.xlu1 %478  ;;  %v487_v45 = vpop.permute.xlu0 %486  ;;  %813 = vrcp.f32 %v720_v37 }
  0xdd   :  { %v363_v54 = vmul.f32 %v796_v35, %v1200_v42  ;;  %v523_v14 = vmul.f32 %v519_v41, %v487_v45  ;;  %v525_v22 = vmul.f32 %v798_v19, %v366_v43  ;;  %v522_v46 = vmul.f32 %v1160_v36, %v479_v44  ;;  %v755_v41 = vld [vmem:[#allocation10] ss:$0 sm:$0xff]  ;;  %v810_v15 = vpop.eup %809 }
  0xde   :  { %v1216_v3 = vmul.f32 %v755_v41, %v1108_v48  ;;  %v1219_v49 = vmul.f32 %v755_v41, %v1110_v50  ;;  %815 = vrcp.f32 %v562_v8  ;;  %v1224_v27 = vmul.f32 %v755_v41, %v1122_v4 }
  0xdf   :  { %v365_v56 = vadd.f32 %v363_v54, %v361_v53  ;;  %v527_v58 = vadd.f32 %v525_v22, %v523_v14  ;;  %v1227_v48 = vmul.f32 %v755_v41, %v1153_v29  ;;  %v1232_v34 = vmul.f32 %v810_v15, %v1181_v57 }
  0xe0   :  { %v637_v61 = vpop.permute.xlu1 %636  ;;  %v645_v62 = vpop.permute.xlu0 %644  ;;  %v393_v31 = vrot.slane %v1216_v3, 1  ;;  %v230_v33 = vrot.slane %v1219_v49, 1  ;;  %v554_v45 = vrot.slane %v1224_v27, 1 }
  0xe1   :  { %v524_v63 = vmul.f32 %v800_v52, %v365_v56  ;;  %v681_v16 = vmul.f32 %v677_v51, %v645_v62  ;;  %v683_v0 = vmul.f32 %v802_v55, %v527_v58  ;;  %v680_v11 = vmul.f32 %v1174_v47, %v637_v61  ;;  %v812_v21 = vpop.eup %811 }
  0xe2   :  { %v1235_v35 = vmul.f32 %v812_v21, %v1183_v59  ;;  %v712_v44 = vrot.slane %v1227_v48, 1  ;;  %v406_v22 = vrot.slane %v1232_v34, 1 }
  0xe3   :  { %v1211_v2 = vadd.f32 %v524_v63, %v522_v46  ;;  %v685_v5 = vadd.f32 %v683_v0, %v681_v16 }
  0xe4   :  { %v374_v7 = vpop.permute.xlu1 %373  ;;  %v204_v10 = vpop.permute.xlu0 %203  ;;  %v243_v55 = vrot.slane %v1235_v35, 1 }
  0xe5   :  { %v376_v12 = vmul.f32 %v374_v7, %v366_v43  ;;  %v206_v36 = vmul.f32 %v204_v10, %v196_v30  ;;  %v682_v13 = vmul.f32 %v808_v1, %v1211_v2 }
  0xe6   :  { %v814_v60 = vpop.eup %813 }
  0xe7   :  { %v384_v51 = vsel %vm207_vm0, %v376_v12, 0.0  ;;  %v215_v17 = vsel %vm207_vm0, %v206_v36, 0.0  ;;  %v684_v18 = vadd.f32 %v682_v13, %v680_v11  ;;  %v723_v15 = vmul.f32 %v814_v60, %v1187_v6 }
  0xe8   :  { %v385_v47 = vrot.slane %v384_v51, 4  ;;  %v216_v23 = vrot.slane %v215_v17, 4  ;;  %v693_v25 = vpop.permute.xlu1 %692  ;;  %v535_v26 = vpop.permute.xlu0 %534 }
  0xe9   :  { %v695_v50 = vmul.f32 %v693_v25, %v685_v5  ;;  %v537_v28 = vmul.f32 %v535_v26, %v527_v58 }
  0xea   :  { %v386_v30 = vadd.f32 %v385_v47, %v384_v51  ;;  %v217_v32 = vadd.f32 %v216_v23, %v215_v17 }
  0xeb   :  { %v703_v4 = vsel %vm207_vm0, %v695_v50, 0.0  ;;  %v545_v38 = vsel %vm207_vm0, %v537_v28, 0.0 }
  0xec   :  { %v387_v29 = vrot.slane %v386_v30, 2  ;;  %v218_v39 = vrot.slane %v217_v32, 2  ;;  %v704_v40 = vrot.slane %v703_v4, 4  ;;  %v546_v19 = vrot.slane %v545_v38, 4  ;;  %v370_v24 = vpop.permute.xlu1 %369  ;;  %v200_v43 = vpop.permute.xlu0 %199 }
  0xed   :  { %v375_v52 = vmul.f32 %v370_v24, %v365_v56  ;;  %v205_v57 = vmul.f32 %v200_v43, %v1200_v42  ;;  %v816_v42 = vpop.eup %815 }
  0xee   :  { %v388_v53 = vadd.f32 %v387_v29, %v386_v30  ;;  %v219_v59 = vadd.f32 %v218_v39, %v217_v32  ;;  %v705_v54 = vadd.f32 %v704_v40, %v703_v4  ;;  %v547_v14 = vadd.f32 %v546_v19, %v545_v38 }
  0xef   :  { %v377_v20 = vsel %vm207_vm0, %v375_v52, 0.0  ;;  %v208_v58 = vsel %vm207_vm0, %v205_v57, 0.0  ;;  %v565_v17 = vmul.f32 %v816_v42, %v1189_v9  ;;  %v725_v29 = vrot.slane %v723_v15, 1 }
  0xf0   :  { %v389_v61 = vrot.slane %v388_v53, 1  ;;  %v220_v62 = vrot.slane %v219_v59, 1  ;;  %v706_v46 = vrot.slane %v705_v54, 2  ;;  %v548_v63 = vrot.slane %v547_v14, 2  ;;  %v689_v56 = vpop.permute.xlu1 %688  ;;  %v531_v16 = vpop.permute.xlu0 %530 }
  0xf1   :  { %v378_v0 = vrot.slane %v377_v20, 4  ;;  %v209_v1 = vrot.slane %v208_v58, 4  ;;  %v694_v37 = vmul.f32 %v689_v56, %v684_v18  ;;  %v536_v41 = vmul.f32 %v531_v16, %v1211_v2 }
  0xf2   :  { %v390_v5 = vadd.f32 %v389_v61, %v388_v53  ;;  %v221_v8 = vadd.f32 %v220_v62, %v219_v59  ;;  %v707_v7 = vadd.f32 %v706_v46, %v705_v54  ;;  %v549_v10 = vadd.f32 %v548_v63, %v547_v14 }
  0xf3   :  { %v379_v11 = vadd.f32 %v378_v0, %v377_v20  ;;  %v210_v12 = vadd.f32 %v209_v1, %v208_v58  ;;  %v696_v36 = vsel %vm207_vm0, %v694_v37, 0.0  ;;  %v538_v13 = vsel %vm207_vm0, %v536_v41, 0.0 }
  0xf4   :  { %v708_v51 = vrot.slane %v707_v7, 1  ;;  %v550_v21 = vrot.slane %v549_v10, 1  ;;  %v697_v23 = vrot.slane %v696_v36, 4  ;;  %v539_v2 = vrot.slane %v538_v13, 4 }
  0xf5   :  { %v380_v47 = vrot.slane %v379_v11, 2  ;;  %v211_v18 = vrot.slane %v210_v12, 2  ;;  %v397_v25 = vadd.f32 %v393_v31, %v390_v5  ;;  %v234_v26 = vadd.f32 %v230_v33, %v221_v8 }
  0xf6   :  { %v709_v50 = vadd.f32 %v708_v51, %v707_v7  ;;  %v551_v28 = vadd.f32 %v550_v21, %v549_v10  ;;  %v698_v4 = vadd.f32 %v697_v23, %v696_v36  ;;  %v540_v38 = vadd.f32 %v539_v2, %v538_v13 }
  0xf7   :  { %v381_v30 = vadd.f32 %v380_v47, %v379_v11  ;;  %v212_v32 = vadd.f32 %v211_v18, %v210_v12  ;;  %v567_v39 = vrot.slane %v565_v17, 1  ;;  %v410_v9 = vmul.f32 %v406_v22, %v397_v25 }
  0xf8   :  { %v699_v19 = vrot.slane %v698_v4, 2  ;;  %v541_v24 = vrot.slane %v540_v38, 2  ;;  %v247_v43 = vmul.f32 %v243_v55, %v234_v26  ;;  %v716_v52 = vadd.f32 %v712_v44, %v709_v50 }
  0xf9   :  { %v382_v40 = vrot.slane %v381_v30, 1  ;;  %v213_v6 = vrot.slane %v212_v32, 1  ;;  %v558_v57 = vadd.f32 %v554_v45, %v551_v28  ;;  %v413_v60 = vrot.slane %v410_v9, 7 }
  0xfa   :  { %v700_v31 = vadd.f32 %v699_v19, %v698_v4  ;;  %v542_v33 = vadd.f32 %v541_v24, %v540_v38  ;;  %v250_v61 = vrot.slane %v247_v43, 7  ;;  %v729_v62 = vmul.f32 %v725_v29, %v716_v52 }
  0xfb   :  { %v383_v53 = vadd.f32 %v382_v40, %v381_v30  ;;  %v214_v59 = vadd.f32 %v213_v6, %v212_v32  ;;  %v571_v46 = vmul.f32 %v567_v39, %v558_v57 }
  0xfc   :  { %v701_v20 = vrot.slane %v700_v31, 1  ;;  %v543_v58 = vrot.slane %v542_v33, 1  ;;  %v732_v16 = vrot.slane %v729_v62, 7 }
  0xfd   :  { %v396_v54 = vadd.f32 %v1216_v3, %v383_v53  ;;  %v233_v14 = vadd.f32 %v1219_v49, %v214_v59 }
  0xfe   :  { %v702_v45 = vadd.f32 %v701_v20, %v700_v31  ;;  %v544_v55 = vadd.f32 %v543_v58, %v542_v33 }
  0xff   :  { %v409_v22 = vmul.f32 %v1232_v34, %v396_v54  ;;  %v246_v44 = vmul.f32 %v1235_v35, %v233_v14  ;;  %v574_v34 = vrot.slane %v571_v46, 7 }
 0x100   :  { %v715_v63 = vadd.f32 %v1227_v48, %v702_v45  ;;  %v557_v56 = vadd.f32 %v1224_v27, %v544_v55 }
 0x101   :  { %v252_v3 = vsel %vm251_vm1, %v250_v61, %v246_v44  ;;  %v414_v49 = vsel %vm251_vm1, %v413_v60, %v409_v22 }
 0x102   :  { %256 = vst.msk [vmem:[#allocation11 + $0x6] sm:$0x3] %vm255_vm2, %v252_v3  ;;  %417 = vst.msk [vmem:[#allocation11 + $0x4] sm:$0x3] %vm255_vm2, %v414_v49  ;;  %v728_v42 = vmul.f32 %v723_v15, %v715_v63  ;;  %v570_v35 = vmul.f32 %v565_v17, %v557_v56 }
 0x104   :  { %v575_v0 = vsel %vm251_vm1, %v574_v34, %v570_v35  ;;  %v733_v48 = vsel %vm251_vm1, %v732_v16, %v728_v42 }
 0x105   :  { %578 = vst.msk [vmem:[#allocation11 + $0x2] sm:$0x3] %vm255_vm2, %v575_v0  ;;  %735 = vst.msk [vmem:[#allocation11] sm:$0x3] %vm255_vm2, %v733_v48 }
 0x106   :  { %938 = shalt.err (!%p935_p2)
}
 0x107   :  { %s939_s8 = scalar_lea.hbm %s1285_s5, 128 }
 0x108   :  { %p940_p3 = scmp.ne.s32.totalorder %s1285_s5, %s939_s8  ;;  %p943_p4 = scmp.lt.u32.totalorder %s939_s8, %s1285_s5 }
 0x10a   :  { %p945_p5 = pnand %p943_p4, %p940_p3 }
 0x10c   :  { %948 = shalt.err (!%p945_p5)
}
 0x10d   :  { %747 = dma.vmem_to_hbm [thread:$0]  %s742_s29, 128, %s1285_s5, [#allocation4], %s959_s30, %s959_s30, %s960_s6  }
 0x10e   :  { %955 = dma.done.wait [#allocation4], 128  }
 0x10f   :  { %956 = vsyncadd [#allocation4], 4294967168 }
 0x110   :  { %751 = vsyncpa [#allocation3], 1 }
 0x111   :  { %752 = vsyncpa [#allocation6], 1 }
 0x112   :  { %753 = vsyncpa [#allocation9], 1 }
 0x113   :  { %754 = vsyncpa [#allocation4], 1 }

// kernel: _lambda_.19
= control target key start
LH: loop header
LB: loop body
LE: loop exit
PB: predicated region body
PF: predicated region fallthrough
CT: control target
= control target key end

     0   :  { %10 = vsyncpa [#allocation3], 0  ;;  %s1280_s0 = inlined_call_operand.hbm [shape: f32[4,2,32], index: 0, kind: input, shape index: {}]   ;;  %s1281_s1 = inlined_call_operand.hbm [shape: f32[4,2,48], index: 1, kind: input, shape index: {}]   ;;  %s1282_s2 = inlined_call_operand.hbm [shape: f32[4,2,32], index: 2, kind: input, shape index: {}]   ;;  %s1283_s3 = inlined_call_operand.hbm [shape: f32[8,32], index: 3, kind: input, shape index: {}]   ;;  %s1284_s4 = inlined_call_operand.hbm [shape: f32[1,32], index: 4, kind: input, shape index: {}]   ;;  %s1285_s5 = inlined_call_operand.hbm [shape: f32[4,2,32], index: 5, kind: output, shape index: {}]  }
   0x1   :  { %11 = vsyncpa [#allocation6], 0 }
   0x2   :  { %12 = vsyncpa [#allocation9], 0 }
   0x3   :  { %13 = vsyncpa [#allocation4], 0  ;;  %s957_s18 = smov [#allocation5]   ;;  %s958_s20 = smov [#allocation8]  }
   0x4   :  { %s31_s19 = sshll.u32 %s957_s18, 4  ;;  %s56_s21 = sshll.u32 %s958_s20, 4  ;;  %s32_s19 = int_to_ptr.vmem [resolvable:$true] %s31_s19  ;;  %s57_s21 = int_to_ptr.vmem [resolvable:$true] %s56_s21 }
   0x5   :  { %s817_s24 = scalar_lea.hbm %s1281_s1, 128 }
   0x6   :  { %p818_p0 = scmp.ne.s32.totalorder %s1281_s1, %s817_s24  ;;  %p821_p1 = scmp.lt.u32.totalorder %s817_s24, %s1281_s1 }
   0x8   :  { %p823_p2 = pnand %p821_p1, %p818_p0 }
   0xa   :  { %826 = shalt.err (!%p823_p2)
}
   0xb   :  { %s827_s29 = scalar_lea.vmem %s32_s19, 128  ;;  %p832_p4 = scmp.lt.s32.totalorder %s32_s19, %s32_s19 }
   0xc   :  { %p828_p3 = scmp.ne.s32.totalorder %s32_s19, %s827_s29  ;;  %p833_p5 = scmp.lt.s32.totalorder %s827_s29, %s827_s29 }
   0xe   :  { %p834_p6 = por %p833_p5, %p832_p4 }
  0x10   :  { %p835_p7 = pnand %p834_p6, %p828_p3 }
  0x12   :  { %838 = shalt.err (!%p835_p7)
}
  0x13   :  { %s959_s30 = smov 32   ;;  %s960_s6 = smov 2  }
  0x14   :  { %37 = dma.hbm_to_vmem [thread:$0]  %s1281_s1, 128, %s32_s19, [#allocation6], %s959_s30, %s959_s30, %s960_s6  }
  0x15   :  { %s839_s11 = scalar_lea.hbm %s1283_s3, 128 }
  0x16   :  { %p840_p8 = scmp.ne.s32.totalorder %s1283_s3, %s839_s11  ;;  %p843_p9 = scmp.lt.u32.totalorder %s839_s11, %s1283_s3 }
  0x18   :  { %p845_p10 = pnand %p843_p9, %p840_p8 }
  0x1a   :  { %848 = shalt.err (!%p845_p10)
}
  0x1b   :  { %s849_s16 = scalar_lea.vmem %s57_s21, 128  ;;  %p854_p12 = scmp.lt.s32.totalorder %s57_s21, %s57_s21 }
  0x1c   :  { %p850_p11 = scmp.ne.s32.totalorder %s57_s21, %s849_s16  ;;  %p855_p13 = scmp.lt.s32.totalorder %s849_s16, %s849_s16 }
  0x1e   :  { %p856_p0 = por %p855_p13, %p854_p12 }
  0x20   :  { %p857_p1 = pnand %p856_p0, %p850_p11 }
  0x22   :  { %860 = shalt.err (!%p857_p1)
}
  0x23   :  { %59 = dma.hbm_to_vmem [thread:$0]  %s1283_s3, 128, %s57_s21, [#allocation9]  }
  0x24   :  { %s961_s18 = smov [#allocation2]   ;;  %s962_s20 = smov [#allocation7]  }
  0x25   :  { %s19_s19 = sshll.u32 %s961_s18, 4  ;;  %s43_s22 = sshll.u32 %s962_s20, 4  ;;  %s20_s19 = int_to_ptr.vmem [resolvable:$true] %s19_s19  ;;  %s1023_s22 = int_to_ptr.vmem [resolvable:$true] %s43_s22 }
  0x26   :  { %s861_s25 = scalar_lea.hbm %s1280_s0, 128 }
  0x27   :  { %p862_p2 = scmp.ne.s32.totalorder %s1280_s0, %s861_s25  ;;  %p865_p3 = scmp.lt.u32.totalorder %s861_s25, %s1280_s0 }
  0x29   :  { %p867_p4 = pnand %p865_p3, %p862_p2 }
  0x2b   :  { %870 = shalt.err (!%p867_p4)
}
  0x2c   :  { %s871_s3 = scalar_lea.vmem %s20_s19, 128  ;;  %p876_p6 = scmp.lt.s32.totalorder %s20_s19, %s20_s19 }
  0x2d   :  { %p872_p5 = scmp.ne.s32.totalorder %s20_s19, %s871_s3  ;;  %p877_p7 = scmp.lt.s32.totalorder %s871_s3, %s871_s3 }
  0x2f   :  { %p878_p8 = por %p877_p7, %p876_p6 }
  0x31   :  { %p879_p9 = pnand %p878_p8, %p872_p5 }
  0x33   :  { %882 = shalt.err (!%p879_p9)
}
  0x34   :  { %25 = dma.hbm_to_vmem [thread:$0]  %s1280_s0, 128, %s20_s19, [#allocation3], %s959_s30, %s959_s30, %s960_s6  }
  0x35   :  { %s883_s10 = scalar_lea.hbm %s1282_s2, 128 }
  0x36   :  { %p884_p10 = scmp.ne.s32.totalorder %s1282_s2, %s883_s10  ;;  %p887_p11 = scmp.lt.u32.totalorder %s883_s10, %s1282_s2 }
  0x38   :  { %p889_p12 = pnand %p887_p11, %p884_p10 }
  0x3a   :  { %892 = shalt.err (!%p889_p12)
}
  0x3b   :  { %s893_s15 = scalar_lea.vmem %s1023_s22, 128  ;;  %p898_p0 = scmp.lt.s32.totalorder %s1023_s22, %s1023_s22 }
  0x3c   :  { %p894_p13 = scmp.ne.s32.totalorder %s1023_s22, %s893_s15  ;;  %p899_p1 = scmp.lt.s32.totalorder %s893_s15, %s893_s15 }
  0x3e   :  { %p900_p2 = por %p899_p1, %p898_p0 }
  0x40   :  { %p901_p3 = pnand %p900_p2, %p894_p13 }
  0x42   :  { %904 = shalt.err (!%p901_p3)
}
  0x43   :  { %49 = dma.hbm_to_vmem [thread:$0]  %s1282_s2, 128, %s1023_s22, [#allocation6], %s959_s30, %s959_s30, %s960_s6  }
  0x44   :  { %s963_s1 = smov [#allocation10]   ;;  %s905_s20 = scalar_lea.hbm %s1284_s4, 16 }
  0x45   :  { %s66_s17 = sshll.u32 %s963_s1, 4  ;;  %p906_p4 = scmp.ne.s32.totalorder %s1284_s4, %s905_s20  ;;  %s67_s17 = int_to_ptr.vmem [resolvable:$true] %s66_s17 }
  0x46   :  { %p909_p5 = scmp.lt.u32.totalorder %s905_s20, %s1284_s4 }
  0x48   :  { %p911_p6 = pnand %p909_p5, %p906_p4 }
  0x4a   :  { %914 = shalt.err (!%p911_p6)
}
  0x4b   :  { %s915_s27 = scalar_lea.vmem %s67_s17, 16  ;;  %s919_s2 = scalar_lea.vmem %s67_s17, 32 }
  0x4c   :  { %p916_p7 = scmp.ne.s32.totalorder %s67_s17, %s915_s27  ;;  %p920_p8 = scmp.lt.s32.totalorder %s67_s17, %s67_s17 }
  0x4d   :  { %p921_p9 = scmp.lt.s32.totalorder %s919_s2, %s915_s27 }
  0x4f   :  { %p922_p10 = por %p921_p9, %p920_p8 }
  0x51   :  { %p923_p11 = pnand %p922_p10, %p916_p7 }
  0x53   :  { %926 = shalt.err (!%p923_p11)
}
  0x54   :  { %69 = dma.hbm_to_vmem [thread:$0]  %s1284_s4, 16, %s67_s17, [#allocation9]  }
  0x55   :  { %949 = dma.done.wait [#allocation3], 128  }
  0x56   :  { %950 = vsyncadd [#allocation3], 4294967168 }
  0x57   :  { %951 = dma.done.wait [#allocation6], 256  }
  0x58   :  { %952 = vsyncadd [#allocation6], 4294967040 }
  0x59   :  { %953 = dma.done.wait [#allocation9], 144  }
  0x5a   :  { %954 = vsyncadd [#allocation9], 4294967152  ;;  %v103_v0 = vlaneseq  ;;  %v1078_v4 = vld [vmem:[#allocation5 + $0x2] sm:$0x3]  ;;  %v1080_v5 = vld [vmem:[#allocation5] sm:$0x3] }
  0x5b   :  { %v260_v7 = vand.u32 2147483647, %v1078_v4  ;;  %v91_v9 = vand.u32 2147483647, %v1080_v5  ;;  %v1086_v10 = vld [vmem:[#allocation5 + $0x4] sm:$0x3] }
  0x5c   :  { %v1072_v1 = vshrl.u32 %v103_v0, 7  ;;  %v1088_v11 = vld [vmem:[#allocation5 + $0x6] sm:$0x3]  ;;  %v421_v15 = vand.u32 2147483647, %v1086_v10  ;;  %v259_v39 = vmax.f32 %v1078_v4, 0.0 }
  0x5d   :  { %v261_v12 = vsub.f32 0.0, %v260_v7  ;;  %v92_v16 = vsub.f32 0.0, %v91_v9  ;;  %v582_v17 = vand.u32 2147483647, %v1088_v11  ;;  %v964_v36 = vmov 1966171168  }
  0x5e   :  { %v148_v2 = vsub.s32 1, %v1072_v1  ;;  %v1076_v3 = vsub.s32 0, %v1072_v1  ;;  %v422_v19 = vsub.f32 0.0, %v421_v15  ;;  %v101_v37 = vunpack.c.l.s4 %v964_v36  ;;  %v1108_v48 = vld [vmem:[#allocation2 + $0x2] sm:$0x3]  ;;  %s965_s4 = smov [#allocation11]  }
  0x5f   :  { %v262_v18 = vmul.f32 1.442695, %v261_v12  ;;  %v93_v20 = vmul.f32 1.442695, %v92_v16  ;;  %v583_v21 = vsub.f32 0.0, %v582_v17  ;;  %v90_v41 = vmax.f32 %v1080_v5, 0.0 }
  0x60   :  { %v318_v6 = vrot.slane %v1078_v4, %v148_v2  ;;  %v149_v8 = vrot.slane %v1080_v5, %v148_v2  ;;  %v310_v13 = vrot.slane %v1078_v4, %v1076_v3  ;;  %v141_v14 = vrot.slane %v1080_v5, %v1076_v3  ;;  %v1110_v50 = vld [vmem:[#allocation2] sm:$0x3]  ;;  %v1122_v4 = vld [vmem:[#allocation2 + $0x4] sm:$0x3]  ;;  %s741_s29 = sshll.u32 %s965_s4, 4  ;;  %s742_s29 = int_to_ptr.vmem [resolvable:$true] %s741_s29 }
  0x61   :  { %769 = vpow2.f32 %v262_v18  ;;  %v423_v22 = vmul.f32 1.442695, %v422_v19  ;;  %v471_v23 = vrot.slane %v1086_v10, %v1076_v3  ;;  %v479_v24 = vrot.slane %v1086_v10, %v148_v2  ;;  %s927_s3 = scalar_lea.vmem %s742_s29, 128  ;;  %p932_p13 = scmp.lt.s32.totalorder %s742_s29, %s742_s29 }
  0x62   :  { %321 = vbcast.lane.b32.xlu1 %v318_v6, 288  ;;  %152 = vbcast.lane.b32.xlu0 %v149_v8, 288  ;;  %771 = vpow2.f32 %v93_v20  ;;  %v584_v25 = vmul.f32 1.442695, %v583_v21  ;;  %v632_v26 = vrot.slane %v1088_v11, %v1076_v3  ;;  %v640_v27 = vrot.slane %v1088_v11, %v148_v2  ;;  %p928_p12 = scmp.ne.s32.totalorder %s742_s29, %s927_s3  ;;  %p933_p0 = scmp.lt.s32.totalorder %s927_s3, %s927_s3 }
  0x63   :  { %773 = vpow2.f32 %v423_v22  ;;  %v102_v38 = vunpack.c.0.s8 %v101_v37  ;;  %v420_v44 = vmax.f32 %v1086_v10, 0.0  ;;  %v581_v58 = vmax.f32 %v1088_v11, 0.0 }
  0x64   :  { %775 = vpow2.f32 %v584_v25  ;;  %vm204_vm0 = vcmask 261120   ;;  %vm248_vm1 = vcmask 1041409   ;;  %vm251_vm2 = vcmask 254976   ;;  %p934_p1 = por %p933_p0, %p932_p13 }
  0x65   :  { %v1106_v46 = vsub.s32 %v102_v38, %v1072_v1 }
  0x66   :  { %313 = vbcast.lane.b32.xlu1 %v310_v13, 288  ;;  %144 = vbcast.lane.b32.xlu0 %v141_v14, 288  ;;  %p935_p2 = pnand %p934_p1, %p928_p12 }
  0x6a   :  { %474 = vbcast.lane.b32.xlu1 %v471_v23, 288  ;;  %482 = vbcast.lane.b32.xlu0 %v479_v24, 288 }
  0x6b   :  { %v770_v28 = vpop.eup %769 }
  0x6c   :  { %v772_v29 = vpop.eup %771  ;;  %v264_v30 = vadd.f32 1.0, %v770_v28 }
  0x6d   :  { %v774_v31 = vpop.eup %773  ;;  %v95_v32 = vadd.f32 1.0, %v772_v29  ;;  %v1153_v29 = vld [vmem:[#allocation2 + $0x6] sm:$0x3] }
  0x6e   :  { %635 = vbcast.lane.b32.xlu1 %v632_v26, 288  ;;  %643 = vbcast.lane.b32.xlu0 %v640_v27, 288  ;;  %v776_v33 = vpop.eup %775  ;;  %777 = vlog2.f32 %v264_v30  ;;  %v425_v34 = vadd.f32 1.0, %v774_v31 }
  0x6f   :  { %779 = vlog2.f32 %v95_v32  ;;  %v586_v35 = vadd.f32 1.0, %v776_v33 }
  0x70   :  { %781 = vlog2.f32 %v425_v34 }
  0x71   :  { %783 = vlog2.f32 %v586_v35 }
  0x72   :  { %369 = vbcast.lane.b32.xlu1 %v318_v6, 296  ;;  %200 = vbcast.lane.b32.xlu0 %v149_v8, 296 }
  0x76   :  { %691 = vbcast.lane.b32.xlu1 %v640_v27, 296  ;;  %530 = vbcast.lane.b32.xlu0 %v479_v24, 296 }
  0x78   :  { %v778_v40 = vpop.eup %777 }
  0x79   :  { %v780_v42 = vpop.eup %779  ;;  %v266_v43 = vmul.f32 0.6931472, %v778_v40 }
  0x7a   :  { %365 = vbcast.lane.b32.xlu1 %v310_v13, 296  ;;  %196 = vbcast.lane.b32.xlu0 %v141_v14, 296  ;;  %v782_v45 = vpop.eup %781  ;;  %v97_v47 = vmul.f32 0.6931472, %v780_v42 }
  0x7b   :  { %v267_v49 = vadd.f32 %v266_v43, %v259_v39  ;;  %v427_v51 = vmul.f32 0.6931472, %v782_v45  ;;  %v784_v53 = vpop.eup %783 }
  0x7c   :  { %v98_v52 = vadd.f32 %v97_v47, %v90_v41  ;;  %v588_v5 = vmul.f32 0.6931472, %v784_v53 }
  0x7d   :  { %v275_v54 = vrot.slane %v267_v49, %v1106_v46  ;;  %v323_v55 = vmul.f32 %v267_v49, %v1108_v48  ;;  %v428_v56 = vadd.f32 %v427_v51, %v420_v44 }
  0x7e   :  { %687 = vbcast.lane.b32.xlu1 %v632_v26, 296  ;;  %526 = vbcast.lane.b32.xlu0 %v471_v23, 296  ;;  %v106_v57 = vrot.slane %v98_v52, %v1106_v46  ;;  %v154_v59 = vmul.f32 %v98_v52, %v1110_v50  ;;  %v589_v21 = vadd.f32 %v588_v5, %v581_v58  ;;  %v85_v52 = vld [vmem:[#allocation8] sm:$0xff] }
  0x7f   :  { %v276_v60 = vcombine.high %v275_v54, %v275_v54  ;;  %v283_v61 = vrot.slane %v275_v54, %v1106_v46  ;;  %v331_v62 = vrot.slane %v323_v55, %v1106_v46  ;;  %v436_v63 = vrot.slane %v428_v56, %v1106_v46 }
  0x80   :  { %v107_v0 = vcombine.high %v106_v57, %v106_v57  ;;  %v162_v1 = vrot.slane %v154_v59, %v1106_v46  ;;  %v114_v2 = vrot.slane %v106_v57, %v1106_v46  ;;  %v484_v17 = vmul.f32 %v428_v56, %v1122_v4  ;;  %v1181_v57 = vld [vmem:[#allocation7 + $0x2] sm:$0x3]  ;;  %v1183_v59 = vld [vmem:[#allocation7] sm:$0x3] }
  0x81   :  { %v290_v6 = vrot.slane %v276_v60, %v1106_v46  ;;  %v294_v7 = vrot.slane %v283_v61, %v1076_v3  ;;  %v332_v8 = vcombine.high %v331_v62, %v331_v62  ;;  %v339_v9 = vrot.slane %v331_v62, %v1106_v46 }
  0x82   :  { %v121_v10 = vrot.slane %v107_v0, %v1106_v46  ;;  %v163_v11 = vcombine.high %v162_v1, %v162_v1  ;;  %v125_v12 = vrot.slane %v114_v2, %v1076_v3  ;;  %v170_v13 = vrot.slane %v162_v1, %v1106_v46 }
  0x83   :  { %v1131_v14 = vrot.slane %v332_v8, %v1106_v46  ;;  %v298_v15 = vrot.slane %v290_v6, %v1076_v3  ;;  %v1135_v16 = vrot.slane %v339_v9, %v1076_v3  ;;  %v437_v23 = vcombine.high %v436_v63, %v436_v63  ;;  %v1187_v6 = vld [vmem:[#allocation7 + $0x6] sm:$0x3]  ;;  %v1189_v9 = vld [vmem:[#allocation7 + $0x4] sm:$0x3] }
  0x84   :  { %v129_v18 = vrot.slane %v121_v10, %v1076_v3  ;;  %v1140_v19 = vrot.slane %v163_v11, %v1106_v46  ;;  %v1143_v20 = vrot.slane %v170_v13, %v1076_v3  ;;  %v444_v25 = vrot.slane %v436_v63, %v1106_v46 }
  0x85   :  { %v354_v22 = vrot.slane %v1131_v14, %v1076_v3  ;;  %v451_v26 = vrot.slane %v437_v23, %v1106_v46  ;;  %v492_v27 = vrot.slane %v484_v17, %v1106_v46  ;;  %v597_v30 = vrot.slane %v589_v21, %v1106_v46 }
  0x86   :  { %v185_v24 = vrot.slane %v1140_v19, %v1076_v3  ;;  %v455_v28 = vrot.slane %v444_v25, %v1076_v3  ;;  %v645_v38 = vmul.f32 %v589_v21, %v1153_v29  ;;  %v133_v53 = vmul.f32 %v129_v18, %v85_v52 }
  0x87   :  { %v500_v31 = vrot.slane %v492_v27, %v1106_v46  ;;  %v459_v32 = vrot.slane %v451_v26, %v1076_v3  ;;  %v493_v33 = vcombine.high %v492_v27, %v492_v27  ;;  %v598_v34 = vcombine.high %v597_v30, %v597_v30 }
  0x88   :  { %v605_v35 = vrot.slane %v597_v30, %v1106_v46  ;;  %v653_v42 = vrot.slane %v645_v38, %v1106_v46  ;;  %v136_v54 = vmul.f32 1.442695, %v133_v53  ;;  %v132_v55 = vmul.f32 %v125_v12, %v85_v52 }
  0x89   :  { %v1160_v36 = vrot.slane %v500_v31, %v1076_v3  ;;  %v1163_v37 = vrot.slane %v493_v33, %v1106_v46  ;;  %v612_v39 = vrot.slane %v598_v34, %v1106_v46  ;;  %v302_v56 = vmul.f32 %v298_v15, %v85_v52 }
  0x8a   :  { %v616_v40 = vrot.slane %v605_v35, %v1076_v3  ;;  %v661_v44 = vrot.slane %v653_v42, %v1106_v46  ;;  %v654_v45 = vcombine.high %v653_v42, %v653_v42  ;;  %785 = vpow2.f32 %v136_v54 }
  0x8b   :  { %v515_v41 = vrot.slane %v1163_v37, %v1076_v3  ;;  %v620_v43 = vrot.slane %v612_v39, %v1076_v3  ;;  %v134_v58 = vmul.f32 1.442695, %v132_v55  ;;  %v301_v60 = vmul.f32 %v294_v7, %v85_v52 }
  0x8c   :  { %v1174_v47 = vrot.slane %v661_v44, %v1076_v3  ;;  %v1177_v49 = vrot.slane %v654_v45, %v1106_v46  ;;  %v757_v61 = vmul.f32 -1.442695, %v1181_v57  ;;  %v305_v62 = vmul.f32 1.442695, %v302_v56 }
  0x8d   :  { %v463_v46 = vmul.f32 %v459_v32, %v85_v52  ;;  %v756_v63 = vmul.f32 -1.442695, %v1183_v59  ;;  %787 = vpow2.f32 %v134_v58  ;;  %v303_v0 = vmul.f32 1.442695, %v301_v60 }
  0x8e   :  { %v676_v51 = vrot.slane %v1177_v49, %v1076_v3  ;;  %v462_v1 = vmul.f32 %v455_v28, %v85_v52  ;;  %789 = vpow2.f32 %v757_v61  ;;  %v624_v5 = vmul.f32 %v620_v43, %v85_v52 }
  0x8f   :  { %791 = vpow2.f32 %v305_v62  ;;  %v466_v2 = vmul.f32 1.442695, %v463_v46  ;;  %v623_v11 = vmul.f32 %v616_v40, %v85_v52  ;;  %v759_v12 = vmul.f32 -1.442695, %v1187_v6 }
  0x90   :  { %793 = vpow2.f32 %v756_v63  ;;  %v464_v8 = vmul.f32 1.442695, %v462_v1  ;;  %v627_v10 = vmul.f32 1.442695, %v624_v5  ;;  %v758_v13 = vmul.f32 -1.442695, %v1189_v9 }
  0x91   :  { %795 = vpow2.f32 %v303_v0  ;;  %v625_v23 = vmul.f32 1.442695, %v623_v11 }
  0x92   :  { %797 = vpow2.f32 %v466_v2 }
  0x93   :  { %799 = vpow2.f32 %v464_v8 }
  0x94   :  { %v786_v7 = vpop.eup %785  ;;  %801 = vpow2.f32 %v627_v10 }
  0x95   :  { %v191_v15 = vmul.f32 0.0, %v786_v7  ;;  %803 = vpow2.f32 %v759_v12 }
  0x96   :  { %805 = vpow2.f32 %v758_v13 }
  0x97   :  { %v788_v17 = vpop.eup %787  ;;  %807 = vpow2.f32 %v625_v23 }
  0x98   :  { %v790_v25 = vpop.eup %789  ;;  %v190_v31 = vmul.f32 0.0, %v788_v17 }
  0x99   :  { %v792_v27 = vpop.eup %791  ;;  %v397_v34 = vadd.f32 1.0, %v790_v25 }
  0x9a   :  { %v794_v28 = vpop.eup %793 }
  0x9b   :  { %v796_v35 = vpop.eup %795  ;;  %809 = vrcp.f32 %v397_v34 }
  0x9c   :  { %v798_v19 = vpop.eup %797 }
  0x9d   :  { %v800_v52 = vpop.eup %799 }
  0x9e   :  { %v802_v55 = vpop.eup %801 }
  0xd4   :  { %v322_v18 = vpop.permute.xlu1 %321  ;;  %v153_v21 = vpop.permute.xlu0 %152 }
  0xd5   :  { %v189_v26 = vmul.f32 %v185_v24, %v153_v21  ;;  %v358_v38 = vmul.f32 %v354_v22, %v322_v18  ;;  %v235_v24 = vadd.f32 1.0, %v794_v28 }
  0xd7   :  { %v193_v30 = vadd.f32 %v191_v15, %v189_v26  ;;  %811 = vrcp.f32 %v235_v24 }
  0xd8   :  { %v314_v32 = vpop.permute.xlu1 %313  ;;  %v145_v33 = vpop.permute.xlu0 %144 }
  0xd9   :  { %v360_v39 = vmul.f32 %v792_v27, %v193_v30  ;;  %v188_v40 = vmul.f32 %v1143_v20, %v145_v33  ;;  %v357_v53 = vmul.f32 %v1135_v16, %v314_v32  ;;  %v804_v20 = vpop.eup %803 }
  0xda   :  { %v806_v60 = vpop.eup %805  ;;  %v719_v37 = vadd.f32 1.0, %v804_v20 }
  0xdb   :  { %v1200_v42 = vadd.f32 %v190_v31, %v188_v40  ;;  %v362_v43 = vadd.f32 %v360_v39, %v358_v38  ;;  %v808_v1 = vpop.eup %807  ;;  %v558_v8 = vadd.f32 1.0, %v806_v60 }
  0xdc   :  { %v475_v44 = vpop.permute.xlu1 %474  ;;  %v483_v45 = vpop.permute.xlu0 %482  ;;  %813 = vrcp.f32 %v719_v37 }
  0xdd   :  { %v359_v54 = vmul.f32 %v796_v35, %v1200_v42  ;;  %v519_v14 = vmul.f32 %v515_v41, %v483_v45  ;;  %v521_v22 = vmul.f32 %v798_v19, %v362_v43  ;;  %v518_v46 = vmul.f32 %v1160_v36, %v475_v44  ;;  %v755_v41 = vld [vmem:[#allocation10] ss:$0 sm:$0xff]  ;;  %v810_v15 = vpop.eup %809 }
  0xde   :  { %v1216_v3 = vmul.f32 %v755_v41, %v1108_v48  ;;  %v1219_v49 = vmul.f32 %v755_v41, %v1110_v50  ;;  %815 = vrcp.f32 %v558_v8  ;;  %v1224_v27 = vmul.f32 %v755_v41, %v1122_v4 }
  0xdf   :  { %v361_v56 = vadd.f32 %v359_v54, %v357_v53  ;;  %v523_v58 = vadd.f32 %v521_v22, %v519_v14  ;;  %v1227_v48 = vmul.f32 %v755_v41, %v1153_v29  ;;  %v1232_v34 = vmul.f32 %v810_v15, %v1181_v57 }
  0xe0   :  { %v636_v61 = vpop.permute.xlu1 %635  ;;  %v644_v62 = vpop.permute.xlu0 %643  ;;  %v389_v31 = vrot.slane %v1216_v3, 1  ;;  %v227_v33 = vrot.slane %v1219_v49, 1  ;;  %v550_v45 = vrot.slane %v1224_v27, 1 }
  0xe1   :  { %v520_v63 = vmul.f32 %v800_v52, %v361_v56  ;;  %v680_v16 = vmul.f32 %v676_v51, %v644_v62  ;;  %v682_v0 = vmul.f32 %v802_v55, %v523_v58  ;;  %v679_v11 = vmul.f32 %v1174_v47, %v636_v61  ;;  %v812_v21 = vpop.eup %811 }
  0xe2   :  { %v1235_v35 = vmul.f32 %v812_v21, %v1183_v59  ;;  %v711_v44 = vrot.slane %v1227_v48, 1  ;;  %v402_v22 = vrot.slane %v1232_v34, 1 }
  0xe3   :  { %v1211_v2 = vadd.f32 %v520_v63, %v518_v46  ;;  %v684_v5 = vadd.f32 %v682_v0, %v680_v16 }
  0xe4   :  { %v370_v7 = vpop.permute.xlu1 %369  ;;  %v201_v10 = vpop.permute.xlu0 %200  ;;  %v240_v55 = vrot.slane %v1235_v35, 1 }
  0xe5   :  { %v372_v12 = vmul.f32 %v370_v7, %v362_v43  ;;  %v203_v36 = vmul.f32 %v201_v10, %v193_v30  ;;  %v681_v13 = vmul.f32 %v808_v1, %v1211_v2 }
  0xe6   :  { %v814_v60 = vpop.eup %813 }
  0xe7   :  { %v380_v51 = vsel %vm204_vm0, %v372_v12, 0.0  ;;  %v212_v17 = vsel %vm204_vm0, %v203_v36, 0.0  ;;  %v683_v18 = vadd.f32 %v681_v13, %v679_v11  ;;  %v722_v15 = vmul.f32 %v814_v60, %v1187_v6 }
  0xe8   :  { %v381_v47 = vrot.slane %v380_v51, 4  ;;  %v213_v23 = vrot.slane %v212_v17, 4  ;;  %v692_v25 = vpop.permute.xlu1 %691  ;;  %v531_v26 = vpop.permute.xlu0 %530 }
  0xe9   :  { %v694_v50 = vmul.f32 %v692_v25, %v684_v5  ;;  %v533_v28 = vmul.f32 %v531_v26, %v523_v58 }
  0xea   :  { %v382_v30 = vadd.f32 %v381_v47, %v380_v51  ;;  %v214_v32 = vadd.f32 %v213_v23, %v212_v17 }
  0xeb   :  { %v702_v4 = vsel %vm204_vm0, %v694_v50, 0.0  ;;  %v541_v38 = vsel %vm204_vm0, %v533_v28, 0.0 }
  0xec   :  { %v383_v29 = vrot.slane %v382_v30, 2  ;;  %v215_v39 = vrot.slane %v214_v32, 2  ;;  %v703_v40 = vrot.slane %v702_v4, 4  ;;  %v542_v19 = vrot.slane %v541_v38, 4  ;;  %v366_v24 = vpop.permute.xlu1 %365  ;;  %v197_v43 = vpop.permute.xlu0 %196 }
  0xed   :  { %v371_v52 = vmul.f32 %v366_v24, %v361_v56  ;;  %v202_v57 = vmul.f32 %v197_v43, %v1200_v42  ;;  %v816_v42 = vpop.eup %815 }
  0xee   :  { %v384_v53 = vadd.f32 %v383_v29, %v382_v30  ;;  %v216_v59 = vadd.f32 %v215_v39, %v214_v32  ;;  %v704_v54 = vadd.f32 %v703_v40, %v702_v4  ;;  %v543_v14 = vadd.f32 %v542_v19, %v541_v38 }
  0xef   :  { %v373_v20 = vsel %vm204_vm0, %v371_v52, 0.0  ;;  %v205_v58 = vsel %vm204_vm0, %v202_v57, 0.0  ;;  %v561_v17 = vmul.f32 %v816_v42, %v1189_v9  ;;  %v724_v29 = vrot.slane %v722_v15, 1 }
  0xf0   :  { %v385_v61 = vrot.slane %v384_v53, 1  ;;  %v217_v62 = vrot.slane %v216_v59, 1  ;;  %v705_v46 = vrot.slane %v704_v54, 2  ;;  %v544_v63 = vrot.slane %v543_v14, 2  ;;  %v688_v56 = vpop.permute.xlu1 %687  ;;  %v527_v16 = vpop.permute.xlu0 %526 }
  0xf1   :  { %v374_v0 = vrot.slane %v373_v20, 4  ;;  %v206_v1 = vrot.slane %v205_v58, 4  ;;  %v693_v37 = vmul.f32 %v688_v56, %v683_v18  ;;  %v532_v41 = vmul.f32 %v527_v16, %v1211_v2 }
  0xf2   :  { %v386_v5 = vadd.f32 %v385_v61, %v384_v53  ;;  %v218_v8 = vadd.f32 %v217_v62, %v216_v59  ;;  %v706_v7 = vadd.f32 %v705_v46, %v704_v54  ;;  %v545_v10 = vadd.f32 %v544_v63, %v543_v14 }
  0xf3   :  { %v375_v11 = vadd.f32 %v374_v0, %v373_v20  ;;  %v207_v12 = vadd.f32 %v206_v1, %v205_v58  ;;  %v695_v36 = vsel %vm204_vm0, %v693_v37, 0.0  ;;  %v534_v13 = vsel %vm204_vm0, %v532_v41, 0.0 }
  0xf4   :  { %v707_v51 = vrot.slane %v706_v7, 1  ;;  %v546_v21 = vrot.slane %v545_v10, 1  ;;  %v696_v23 = vrot.slane %v695_v36, 4  ;;  %v535_v2 = vrot.slane %v534_v13, 4 }
  0xf5   :  { %v376_v47 = vrot.slane %v375_v11, 2  ;;  %v208_v18 = vrot.slane %v207_v12, 2  ;;  %v393_v25 = vadd.f32 %v389_v31, %v386_v5  ;;  %v231_v26 = vadd.f32 %v227_v33, %v218_v8 }
  0xf6   :  { %v708_v50 = vadd.f32 %v707_v51, %v706_v7  ;;  %v547_v28 = vadd.f32 %v546_v21, %v545_v10  ;;  %v697_v4 = vadd.f32 %v696_v23, %v695_v36  ;;  %v536_v38 = vadd.f32 %v535_v2, %v534_v13 }
  0xf7   :  { %v377_v30 = vadd.f32 %v376_v47, %v375_v11  ;;  %v209_v32 = vadd.f32 %v208_v18, %v207_v12  ;;  %v563_v39 = vrot.slane %v561_v17, 1  ;;  %v406_v9 = vmul.f32 %v402_v22, %v393_v25 }
  0xf8   :  { %v698_v19 = vrot.slane %v697_v4, 2  ;;  %v537_v24 = vrot.slane %v536_v38, 2  ;;  %v244_v43 = vmul.f32 %v240_v55, %v231_v26  ;;  %v715_v52 = vadd.f32 %v711_v44, %v708_v50 }
  0xf9   :  { %v378_v40 = vrot.slane %v377_v30, 1  ;;  %v210_v6 = vrot.slane %v209_v32, 1  ;;  %v554_v57 = vadd.f32 %v550_v45, %v547_v28  ;;  %v409_v60 = vrot.slane %v406_v9, 7 }
  0xfa   :  { %v699_v31 = vadd.f32 %v698_v19, %v697_v4  ;;  %v538_v33 = vadd.f32 %v537_v24, %v536_v38  ;;  %v247_v61 = vrot.slane %v244_v43, 7  ;;  %v728_v62 = vmul.f32 %v724_v29, %v715_v52 }
  0xfb   :  { %v379_v53 = vadd.f32 %v378_v40, %v377_v30  ;;  %v211_v59 = vadd.f32 %v210_v6, %v209_v32  ;;  %v567_v46 = vmul.f32 %v563_v39, %v554_v57 }
  0xfc   :  { %v700_v20 = vrot.slane %v699_v31, 1  ;;  %v539_v58 = vrot.slane %v538_v33, 1  ;;  %v731_v16 = vrot.slane %v728_v62, 7 }
  0xfd   :  { %v392_v54 = vadd.f32 %v1216_v3, %v379_v53  ;;  %v230_v14 = vadd.f32 %v1219_v49, %v211_v59 }
  0xfe   :  { %v701_v45 = vadd.f32 %v700_v20, %v699_v31  ;;  %v540_v55 = vadd.f32 %v539_v58, %v538_v33 }
  0xff   :  { %v405_v22 = vmul.f32 %v1232_v34, %v392_v54  ;;  %v243_v44 = vmul.f32 %v1235_v35, %v230_v14  ;;  %v570_v34 = vrot.slane %v567_v46, 7 }
 0x100   :  { %v714_v63 = vadd.f32 %v1227_v48, %v701_v45  ;;  %v553_v56 = vadd.f32 %v1224_v27, %v540_v55 }
 0x101   :  { %v249_v3 = vsel %vm248_vm1, %v247_v61, %v243_v44  ;;  %v410_v49 = vsel %vm248_vm1, %v409_v60, %v405_v22 }
 0x102   :  { %252 = vst.msk [vmem:[#allocation11] sm:$0x3] %vm251_vm2, %v249_v3  ;;  %413 = vst.msk [vmem:[#allocation11 + $0x2] sm:$0x3] %vm251_vm2, %v410_v49  ;;  %v727_v42 = vmul.f32 %v722_v15, %v714_v63  ;;  %v566_v35 = vmul.f32 %v561_v17, %v553_v56 }
 0x104   :  { %v571_v0 = vsel %vm248_vm1, %v570_v34, %v566_v35  ;;  %v732_v48 = vsel %vm248_vm1, %v731_v16, %v727_v42 }
 0x105   :  { %574 = vst.msk [vmem:[#allocation11 + $0x4] sm:$0x3] %vm251_vm2, %v571_v0  ;;  %735 = vst.msk [vmem:[#allocation11 + $0x6] sm:$0x3] %vm251_vm2, %v732_v48 }
 0x106   :  { %938 = shalt.err (!%p935_p2)
}
 0x107   :  { %s939_s8 = scalar_lea.hbm %s1285_s5, 128 }
 0x108   :  { %p940_p3 = scmp.ne.s32.totalorder %s1285_s5, %s939_s8  ;;  %p943_p4 = scmp.lt.u32.totalorder %s939_s8, %s1285_s5 }
 0x10a   :  { %p945_p5 = pnand %p943_p4, %p940_p3 }
 0x10c   :  { %948 = shalt.err (!%p945_p5)
}
 0x10d   :  { %747 = dma.vmem_to_hbm [thread:$0]  %s742_s29, 128, %s1285_s5, [#allocation4], %s959_s30, %s959_s30, %s960_s6  }
 0x10e   :  { %955 = dma.done.wait [#allocation4], 128  }
 0x10f   :  { %956 = vsyncadd [#allocation4], 4294967168 }
 0x110   :  { %751 = vsyncpa [#allocation3], 1 }
 0x111   :  { %752 = vsyncpa [#allocation6], 1 }
 0x112   :  { %753 = vsyncpa [#allocation9], 1 }
 0x113   :  { %754 = vsyncpa [#allocation4], 1 }

// kernel: _lambda_.22
= control target key start
LH: loop header
LB: loop body
LE: loop exit
PB: predicated region body
PF: predicated region fallthrough
CT: control target
= control target key end

     0   :  { %12 = vsyncpa [#allocation3], 0  ;;  %s694_s0 = inlined_call_operand.hbm [shape: f32[8,32], index: 0, kind: input, shape index: {}]   ;;  %s695_s1 = inlined_call_operand.hbm [shape: f32[8,32], index: 1, kind: input, shape index: {}]   ;;  %s696_s2 = inlined_call_operand.hbm [shape: f32[8,32], index: 2, kind: input, shape index: {}]   ;;  %s697_s3 = inlined_call_operand.hbm [shape: bf16[32,32], index: 3, kind: input, shape index: {}]   ;;  %s698_s4 = inlined_call_operand.hbm [shape: bf16[32,32], index: 4, kind: input, shape index: {}]   ;;  %s699_s5 = inlined_call_operand.hbm [shape: f32[1,32], index: 5, kind: input, shape index: {}]   ;;  %s700_s6 = inlined_call_operand.hbm [shape: f32[1,32], index: 6, kind: input, shape index: {}]   ;;  %s701_s7 = inlined_call_operand.hbm [shape: f32[8,32], index: 7, kind: output, shape index: {}]  }
   0x1   :  { %13 = vsyncpa [#allocation6], 0 }
   0x2   :  { %14 = vsyncpa [#allocation9], 0 }
   0x3   :  { %15 = vsyncpa [#allocation12], 0 }
   0x4   :  { %16 = vsyncpa [#allocation4], 0  ;;  %s521_s24 = smov [#allocation5]   ;;  %s522_s26 = smov [#allocation8]  }
   0x5   :  { %s33_s25 = sshll.u32 %s521_s24, 4  ;;  %s52_s27 = sshll.u32 %s522_s26, 4  ;;  %s34_s25 = int_to_ptr.vmem [resolvable:$true] %s33_s25  ;;  %s573_s27 = int_to_ptr.vmem [resolvable:$true] %s52_s27 }
   0x6   :  { %s335_s30 = scalar_lea.hbm %s695_s1, 128 }
   0x7   :  { %p336_p0 = scmp.ne.s32.totalorder %s695_s1, %s335_s30  ;;  %p339_p1 = scmp.lt.u32.totalorder %s335_s30, %s695_s1 }
   0x9   :  { %p341_p2 = pnand %p339_p1, %p336_p0 }
   0xb   :  { %344 = shalt.err (!%p341_p2)
}
   0xc   :  { %s345_s12 = scalar_lea.vmem %s34_s25, 128  ;;  %p350_p4 = scmp.lt.s32.totalorder %s34_s25, %s34_s25 }
   0xd   :  { %p346_p3 = scmp.ne.s32.totalorder %s34_s25, %s345_s12  ;;  %p351_p5 = scmp.lt.s32.totalorder %s345_s12, %s345_s12 }
   0xf   :  { %p352_p6 = por %p351_p5, %p350_p4 }
  0x11   :  { %p353_p7 = pnand %p352_p6, %p346_p3 }
  0x13   :  { %356 = shalt.err (!%p353_p7)
}
  0x14   :  { %36 = dma.hbm_to_vmem [thread:$0]  %s695_s1, 128, %s34_s25, [#allocation6]  }
  0x15   :  { %s357_s17 = scalar_lea.hbm %s697_s3, 256 }
  0x16   :  { %p358_p8 = scmp.ne.s32.totalorder %s697_s3, %s357_s17  ;;  %p361_p9 = scmp.lt.u32.totalorder %s357_s17, %s697_s3 }
  0x18   :  { %p363_p10 = pnand %p361_p9, %p358_p8 }
  0x1a   :  { %366 = shalt.err (!%p363_p10)
}
  0x1b   :  { %s367_s22 = scalar_lea.vmem %s573_s27, 256  ;;  %p372_p12 = scmp.lt.s32.totalorder %s573_s27, %s573_s27 }
  0x1c   :  { %p368_p11 = scmp.ne.s32.totalorder %s573_s27, %s367_s22  ;;  %p373_p13 = scmp.lt.s32.totalorder %s367_s22, %s367_s22 }
  0x1e   :  { %p374_p0 = por %p373_p13, %p372_p12 }
  0x20   :  { %p375_p1 = pnand %p374_p0, %p368_p11 }
  0x22   :  { %378 = shalt.err (!%p375_p1)
}
  0x23   :  { %s523_s1 = smov 64   ;;  %s524_s23 = smov 4  }
  0x24   :  { %58 = dma.hbm_to_vmem [thread:$0]  %s697_s3, 256, %s573_s27, [#allocation9], %s523_s1, %s523_s1, %s524_s23  }
  0x25   :  { %s525_s26 = smov [#allocation11]   ;;  %s526_s29 = smov [#allocation2]  }
  0x26   :  { %s77_s28 = sshll.u32 %s525_s26, 4  ;;  %s23_s30 = sshll.u32 %s526_s29, 4  ;;  %s78_s28 = int_to_ptr.vmem [resolvable:$true] %s77_s28  ;;  %s24_s30 = int_to_ptr.vmem [resolvable:$true] %s23_s30 }
  0x27   :  { %s379_s10 = scalar_lea.hbm %s699_s5, 16 }
  0x28   :  { %p380_p2 = scmp.ne.s32.totalorder %s699_s5, %s379_s10  ;;  %p383_p3 = scmp.lt.u32.totalorder %s379_s10, %s699_s5 }
  0x2a   :  { %p385_p4 = pnand %p383_p3, %p380_p2 }
  0x2c   :  { %388 = shalt.err (!%p385_p4)
}
  0x2d   :  { %s389_s3 = scalar_lea.vmem %s78_s28, 16  ;;  %s393_s27 = scalar_lea.vmem %s78_s28, 32 }
  0x2e   :  { %p390_p5 = scmp.ne.s32.totalorder %s78_s28, %s389_s3  ;;  %p394_p6 = scmp.lt.s32.totalorder %s78_s28, %s78_s28 }
  0x2f   :  { %p395_p7 = scmp.lt.s32.totalorder %s393_s27, %s389_s3 }
  0x31   :  { %p396_p8 = por %p395_p7, %p394_p6 }
  0x33   :  { %p397_p9 = pnand %p396_p8, %p390_p5 }
  0x35   :  { %400 = shalt.err (!%p397_p9)
}
  0x36   :  { %80 = dma.hbm_to_vmem [thread:$0]  %s699_s5, 16, %s78_s28, [#allocation12]  }
  0x37   :  { %s401_s19 = scalar_lea.hbm %s694_s0, 128 }
  0x38   :  { %p402_p10 = scmp.ne.s32.totalorder %s694_s0, %s401_s19  ;;  %p405_p11 = scmp.lt.u32.totalorder %s401_s19, %s694_s0 }
  0x3a   :  { %p407_p12 = pnand %p405_p11, %p402_p10 }
  0x3c   :  { %410 = shalt.err (!%p407_p12)
}
  0x3d   :  { %s411_s25 = scalar_lea.vmem %s24_s30, 128  ;;  %p416_p0 = scmp.lt.s32.totalorder %s24_s30, %s24_s30 }
  0x3e   :  { %p412_p13 = scmp.ne.s32.totalorder %s24_s30, %s411_s25  ;;  %p417_p1 = scmp.lt.s32.totalorder %s411_s25, %s411_s25 }
  0x40   :  { %p418_p2 = por %p417_p1, %p416_p0 }
  0x42   :  { %p419_p3 = pnand %p418_p2, %p412_p13 }
  0x44   :  { %422 = shalt.err (!%p419_p3)
}
  0x45   :  { %26 = dma.hbm_to_vmem [thread:$0]  %s694_s0, 128, %s24_s30, [#allocation3]  }
  0x46   :  { %s527_s28 = smov [#allocation7]   ;;  %s528_s8 = smov [#allocation10]  }
  0x47   :  { %s43_s29 = sshll.u32 %s527_s28, 4  ;;  %s64_s9 = sshll.u32 %s528_s8, 4  ;;  %s44_s29 = int_to_ptr.vmem [resolvable:$true] %s43_s29  ;;  %s631_s9 = int_to_ptr.vmem [resolvable:$true] %s64_s9 }
  0x48   :  { %s423_s12 = scalar_lea.hbm %s696_s2, 128 }
  0x49   :  { %p424_p4 = scmp.ne.s32.totalorder %s696_s2, %s423_s12  ;;  %p427_p5 = scmp.lt.u32.totalorder %s423_s12, %s696_s2 }
  0x4b   :  { %p429_p6 = pnand %p427_p5, %p424_p4 }
  0x4d   :  { %432 = shalt.err (!%p429_p6)
}
  0x4e   :  { %s433_s0 = scalar_lea.vmem %s44_s29, 128  ;;  %p438_p8 = scmp.lt.s32.totalorder %s44_s29, %s44_s29 }
  0x4f   :  { %p434_p7 = scmp.ne.s32.totalorder %s44_s29, %s433_s0  ;;  %p439_p9 = scmp.lt.s32.totalorder %s433_s0, %s433_s0 }
  0x51   :  { %p440_p10 = por %p439_p9, %p438_p8 }
  0x53   :  { %p441_p11 = pnand %p440_p10, %p434_p7 }
  0x55   :  { %444 = shalt.err (!%p441_p11)
}
  0x56   :  { %46 = dma.hbm_to_vmem [thread:$0]  %s696_s2, 128, %s44_s29, [#allocation6]  }
  0x57   :  { %s445_s18 = scalar_lea.hbm %s698_s4, 256 }
  0x58   :  { %p446_p12 = scmp.ne.s32.totalorder %s698_s4, %s445_s18  ;;  %p449_p13 = scmp.lt.u32.totalorder %s445_s18, %s698_s4 }
  0x5a   :  { %p451_p0 = pnand %p449_p13, %p446_p12 }
  0x5c   :  { %454 = shalt.err (!%p451_p0)
}
  0x5d   :  { %s455_s24 = scalar_lea.vmem %s631_s9, 256  ;;  %p460_p2 = scmp.lt.s32.totalorder %s631_s9, %s631_s9 }
  0x5e   :  { %p456_p1 = scmp.ne.s32.totalorder %s631_s9, %s455_s24  ;;  %p461_p3 = scmp.lt.s32.totalorder %s455_s24, %s455_s24 }
  0x60   :  { %p462_p4 = por %p461_p3, %p460_p2 }
  0x62   :  { %p463_p5 = pnand %p462_p4, %p456_p1 }
  0x64   :  { %466 = shalt.err (!%p463_p5)
}
  0x65   :  { %70 = dma.hbm_to_vmem [thread:$0]  %s698_s4, 256, %s631_s9, [#allocation9], %s523_s1, %s523_s1, %s524_s23  }
  0x66   :  { %s529_s5 = smov [#allocation13]   ;;  %s467_s8 = scalar_lea.hbm %s700_s6, 16 }
  0x67   :  { %s87_s26 = sshll.u32 %s529_s5, 4  ;;  %p468_p6 = scmp.ne.s32.totalorder %s700_s6, %s467_s8  ;;  %s88_s26 = int_to_ptr.vmem [resolvable:$true] %s87_s26 }
  0x68   :  { %p471_p7 = scmp.lt.u32.totalorder %s467_s8, %s700_s6 }
  0x6a   :  { %p473_p8 = pnand %p471_p7, %p468_p6 }
  0x6c   :  { %476 = shalt.err (!%p473_p8)
}
  0x6d   :  { %s477_s14 = scalar_lea.vmem %s88_s26, 16  ;;  %s481_s4 = scalar_lea.vmem %s88_s26, 32 }
  0x6e   :  { %p478_p9 = scmp.ne.s32.totalorder %s88_s26, %s477_s14  ;;  %p482_p10 = scmp.lt.s32.totalorder %s88_s26, %s88_s26 }
  0x6f   :  { %p483_p11 = scmp.lt.s32.totalorder %s481_s4, %s477_s14 }
  0x71   :  { %p484_p12 = por %p483_p11, %p482_p10 }
  0x73   :  { %p485_p13 = pnand %p484_p12, %p478_p9 }
  0x75   :  { %488 = shalt.err (!%p485_p13)
}
  0x76   :  { %90 = dma.hbm_to_vmem [thread:$0]  %s700_s6, 16, %s88_s26, [#allocation12]  }
  0x77   :  { %511 = dma.done.wait [#allocation3], 128  }
  0x78   :  { %512 = vsyncadd [#allocation3], 4294967168 }
  0x79   :  { %513 = dma.done.wait [#allocation6], 256  }
  0x7a   :  { %514 = vsyncadd [#allocation6], 4294967040 }
  0x7b   :  { %515 = dma.done.wait [#allocation9], 512  }
  0x7c   :  { %516 = vsyncadd [#allocation9], 4294966784 }
  0x7d   :  { %517 = dma.done.wait [#allocation12], 32  }
  0x7e   :  { %518 = vsyncadd [#allocation12], 4294967264  ;;  %v530_v0 = vmov 0.0   ;;  %vm531_vm0 = vmmov 0   ;;  %v329_v1 = vld [vmem:[#allocation10] sm:$0xff]   ;;  %v330_v2 = vld [vmem:[#allocation8] sm:$0xff]  }
  0x7f   :  { %301 = vmatprep.subr.bf16.mxu0 %v530_v0  ;;  %309 = vmatprep.subr.bf16.mxu1 %v530_v0  ;;  %v331_v3 = vld [vmem:[#allocation10 + $0x8] sm:$0xff]   ;;  %v332_v4 = vld [vmem:[#allocation8 + $0x8] sm:$0xff]   ;;  %v119_v5 = vld [vmem:[#allocation5] sm:$0xff]  ;;  %vm137_vm1 = vcmask 261120   ;;  %s532_s6 = smov [#allocation14]  }
  0x80   :  { %305 = vmatprep.mubr.msk.bf16.mxu0 %vm531_vm0, %v530_v0  ;;  %313 = vmatprep.mubr.msk.bf16.mxu1 %vm531_vm0, %v530_v0  ;;  %v113_v6 = vld [vmem:[#allocation2] sm:$0xff]  ;;  %v120_v7 = vpack.c.bf16 %v119_v5, %v119_v5  ;;  %v236_v12 = vld [vmem:[#allocation7] sm:$0xff]  ;;  %v293_v30 = vld [vmem:[#allocation11] ss:$0 sm:$0xff]  ;;  %s275_s9 = sshll.u32 %s532_s6, 4  ;;  %s276_s9 = int_to_ptr.vmem [resolvable:$true] %s275_s9 }
  0x81   :  { %302 = vmatpush3.bf16.msra.mxu0 %v329_v1  ;;  %310 = vmatpush3.bf16.msra.mxu1 %v330_v2  ;;  %v114_v8 = vpack.c.bf16 %v113_v6, %v113_v6  ;;  %v294_v32 = vld [vmem:[#allocation13] ss:$0 sm:$0xff]  ;;  %s489_s3 = scalar_lea.vmem %s276_s9, 128  ;;  %p494_p1 = scmp.lt.s32.totalorder %s276_s9, %s276_s9 }
  0x82   :  { %303 = vmatprep.subr.bf16.mxu0 %v530_v0  ;;  %311 = vmatprep.subr.bf16.mxu1 %v530_v0  ;;  %p490_p0 = scmp.ne.s32.totalorder %s276_s9, %s489_s3  ;;  %p495_p2 = scmp.lt.s32.totalorder %s489_s3, %s489_s3 }
  0x84   :  { %p496_p3 = por %p495_p2, %p494_p1 }
  0x85   :  { %304 = vmatpush3.bf16.msra.mxu0 %v331_v3  ;;  %312 = vmatpush3.bf16.msra.mxu1 %v332_v4 }
  0x86   :  { %p497_p4 = pnand %p496_p3, %p490_p0 }
  0x88   :  { %306 = vmatmul.mubr.msk.bf16.vlgmr.msra.gmra.mrb[0].mxu0 %vm137_vm1, %v120_v7  ;;  %314 = vmatmul.mubr.msk.bf16.vlgmr.msra.gmra.mrb[0].mxu1 %vm137_vm1, %v114_v8 }
 0x15b   :  { %v175_v9 = vpop.f32.mrb[0].mxu0  ;;  %v230_v10 = vpop.f32.mrb[0].mxu1 }
 0x15c   :  { %v307_v11 = vpop.f32.mrb[1].mxu0  ;;  %v231_v13 = vadd.f32 %v230_v10, %v175_v9  ;;  %v315_v14 = vpop.f32.mrb[1].mxu1 }
 0x15d   :  { %v178_v15 = vpop.f32.mrb[2].mxu0  ;;  %v233_v16 = vpop.f32.mrb[2].mxu1 }
 0x15e   :  { %v308_v17 = vpop.f32.mrb[3].mxu0  ;;  %v316_v18 = vpop.f32.mrb[3].mxu1  ;;  %v237_v19 = vadd.f32 %v236_v12, %v231_v13 }
 0x160   :  { %v238_v20 = vsel %vm137_vm1, %v237_v19, 0.0 }
 0x161   :  { %239 = vadd.xlane.f32.xlu0 %v238_v20 }
 0x1ee   :  { %v240_v21 = vpop.xlane.xlu0 %239 }
 0x1ef   :  { %v242_v22 = vmul.f32 0.03125, %v240_v21 }
 0x1f1   :  { %v243_v23 = vsub.f32 %v237_v19, %v242_v22 }
 0x1f3   :  { %v244_v24 = vmul.f32 %v243_v23, %v243_v23 }
 0x1f5   :  { %v245_v25 = vsel %vm137_vm1, %v244_v24, 0.0 }
 0x1f6   :  { %246 = vadd.xlane.f32.xlu0 %v245_v25 }
 0x283   :  { %v247_v26 = vpop.xlane.xlu0 %246 }
 0x284   :  { %v248_v27 = vmul.f32 0.03125, %v247_v26 }
 0x286   :  { %v249_v28 = vadd.f32 1e-05, %v248_v27 }
 0x288   :  { %333 = vrsqrt.f32 %v249_v28 }
 0x292   :  { %v334_v29 = vpop.eup %333 }
 0x293   :  { %v251_v31 = vmul.f32 %v334_v29, %v243_v23 }
 0x295   :  { %v259_v33 = vmul.f32 %v293_v30, %v251_v31 }
 0x297   :  { %v267_v34 = vadd.f32 %v294_v32, %v259_v33 }
 0x299   :  { %268 = vst.msk [vmem:[#allocation14] sm:$0xff] %vm137_vm1, %v267_v34 }
 0x29a   :  { %500 = shalt.err (!%p497_p4)
}
 0x29b   :  { %s501_s30 = scalar_lea.hbm %s701_s7, 128 }
 0x29c   :  { %p502_p5 = scmp.ne.s32.totalorder %s701_s7, %s501_s30  ;;  %p505_p6 = scmp.lt.u32.totalorder %s501_s30, %s701_s7 }
 0x29e   :  { %p507_p7 = pnand %p505_p6, %p502_p5 }
 0x2a0   :  { %510 = shalt.err (!%p507_p7)
}
 0x2a1   :  { %278 = dma.vmem_to_hbm [thread:$0]  %s276_s9, 128, %s701_s7, [#allocation4]  }
 0x2a2   :  { %519 = dma.done.wait [#allocation4], 128  }
 0x2a3   :  { %520 = vsyncadd [#allocation4], 4294967168 }
 0x2a4   :  { %282 = vsyncpa [#allocation3], 1 }
 0x2a5   :  { %283 = vsyncpa [#allocation6], 1 }
 0x2a6   :  { %284 = vsyncpa [#allocation9], 1 }
 0x2a7   :  { %285 = vsyncpa [#allocation12], 1 }
 0x2a8   :  { %286 = vsyncpa [#allocation4], 1 }

// kernel: _lambda_.23
= control target key start
LH: loop header
LB: loop body
LE: loop exit
PB: predicated region body
PF: predicated region fallthrough
CT: control target
= control target key end

     0   :  { %8 = vsyncpa [#allocation3], 0  ;;  %s335_s0 = inlined_call_operand.hbm [shape: f32[8,32], index: 0, kind: input, shape index: {}]   ;;  %s336_s1 = inlined_call_operand.hbm [shape: bf16[32,32], index: 1, kind: input, shape index: {}]   ;;  %s337_s2 = inlined_call_operand.hbm [shape: f32[1,32], index: 2, kind: input, shape index: {}]   ;;  %s338_s3 = inlined_call_operand.hbm [shape: f32[8,32], index: 3, kind: output, shape index: {}]  }
   0x1   :  { %9 = vsyncpa [#allocation6], 0 }
   0x2   :  { %10 = vsyncpa [#allocation4], 0  ;;  %s259_s12 = smov [#allocation5]   ;;  %s165_s16 = scalar_lea.hbm %s336_s1, 256 }
   0x3   :  { %s26_s13 = sshll.u32 %s259_s12, 4  ;;  %p166_p0 = scmp.ne.s32.totalorder %s336_s1, %s165_s16  ;;  %s27_s13 = int_to_ptr.vmem [resolvable:$true] %s26_s13 }
   0x4   :  { %p169_p1 = scmp.lt.u32.totalorder %s165_s16, %s336_s1 }
   0x6   :  { %p171_p2 = pnand %p169_p1, %p166_p0 }
   0x8   :  { %174 = shalt.err (!%p171_p2)
}
   0x9   :  { %s175_s21 = scalar_lea.vmem %s27_s13, 256  ;;  %p180_p4 = scmp.lt.s32.totalorder %s27_s13, %s27_s13 }
   0xa   :  { %p176_p3 = scmp.ne.s32.totalorder %s27_s13, %s175_s21  ;;  %p181_p5 = scmp.lt.s32.totalorder %s175_s21, %s175_s21 }
   0xc   :  { %p182_p6 = por %p181_p5, %p180_p4 }
   0xe   :  { %p183_p7 = pnand %p182_p6, %p176_p3 }
  0x10   :  { %186 = shalt.err (!%p183_p7)
}
  0x11   :  { %s260_s22 = smov 64   ;;  %s261_s23 = smov 4  }
  0x12   :  { %32 = dma.hbm_to_vmem [thread:$0]  %s336_s1, 256, %s27_s13, [#allocation6], %s260_s22, %s260_s22, %s261_s23  }
  0x13   :  { %s262_s26 = smov [#allocation2]   ;;  %s263_s28 = smov [#allocation7]  }
  0x14   :  { %s17_s27 = sshll.u32 %s262_s26, 4  ;;  %s39_s29 = sshll.u32 %s263_s28, 4  ;;  %s18_s27 = int_to_ptr.vmem [resolvable:$true] %s17_s27  ;;  %s40_s29 = int_to_ptr.vmem [resolvable:$true] %s39_s29 }
  0x15   :  { %s187_s5 = scalar_lea.hbm %s335_s0, 128 }
  0x16   :  { %p188_p8 = scmp.ne.s32.totalorder %s335_s0, %s187_s5  ;;  %p191_p9 = scmp.lt.u32.totalorder %s187_s5, %s335_s0 }
  0x18   :  { %p193_p10 = pnand %p191_p9, %p188_p8 }
  0x1a   :  { %196 = shalt.err (!%p193_p10)
}
  0x1b   :  { %s197_s1 = scalar_lea.vmem %s18_s27, 128  ;;  %p202_p12 = scmp.lt.s32.totalorder %s18_s27, %s18_s27 }
  0x1c   :  { %p198_p11 = scmp.ne.s32.totalorder %s18_s27, %s197_s1  ;;  %p203_p13 = scmp.lt.s32.totalorder %s197_s1, %s197_s1 }
  0x1e   :  { %p204_p0 = por %p203_p13, %p202_p12 }
  0x20   :  { %p205_p1 = pnand %p204_p0, %p198_p11 }
  0x22   :  { %208 = shalt.err (!%p205_p1)
}
  0x23   :  { %20 = dma.hbm_to_vmem [thread:$0]  %s335_s0, 128, %s18_s27, [#allocation3]  }
  0x24   :  { %s209_s14 = scalar_lea.hbm %s337_s2, 16 }
  0x25   :  { %p210_p2 = scmp.ne.s32.totalorder %s337_s2, %s209_s14  ;;  %p213_p3 = scmp.lt.u32.totalorder %s209_s14, %s337_s2 }
  0x27   :  { %p215_p4 = pnand %p213_p3, %p210_p2 }
  0x29   :  { %218 = shalt.err (!%p215_p4)
}
  0x2a   :  { %s219_s19 = scalar_lea.vmem %s40_s29, 16  ;;  %s223_s20 = scalar_lea.vmem %s40_s29, 32 }
  0x2b   :  { %p220_p5 = scmp.ne.s32.totalorder %s40_s29, %s219_s19  ;;  %p224_p6 = scmp.lt.s32.totalorder %s40_s29, %s40_s29 }
  0x2c   :  { %p225_p7 = scmp.lt.s32.totalorder %s223_s20, %s219_s19 }
  0x2e   :  { %p226_p8 = por %p225_p7, %p224_p6 }
  0x30   :  { %p227_p9 = pnand %p226_p8, %p220_p5 }
  0x32   :  { %230 = shalt.err (!%p227_p9)
}
  0x33   :  { %42 = dma.hbm_to_vmem [thread:$0]  %s337_s2, 16, %s40_s29, [#allocation6]  }
  0x34   :  { %253 = dma.done.wait [#allocation3], 128  }
  0x35   :  { %254 = vsyncadd [#allocation3], 4294967168 }
  0x36   :  { %255 = dma.done.wait [#allocation6], 272  }
  0x37   :  { %256 = vsyncadd [#allocation6], 4294967024  ;;  %v264_v0 = vmov 0.0   ;;  %vm265_vm0 = vmmov 0   ;;  %v163_v1 = vld [vmem:[#allocation5] sm:$0xff]   ;;  %v164_v2 = vld [vmem:[#allocation5 + $0x8] sm:$0xff]  }
  0x38   :  { %147 = vmatprep.subr.bf16.mxu0 %v264_v0  ;;  %151 = vmatprep.mubr.msk.bf16.mxu0 %vm265_vm0, %v264_v0  ;;  %v53_v3 = vld [vmem:[#allocation2] sm:$0xff]  ;;  %vm78_vm1 = vcmask 261120   ;;  %v140_v5 = vld [vmem:[#allocation7] ss:$0 sm:$0xff]  ;;  %s266_s2 = smov [#allocation8]  }
  0x39   :  { %148 = vmatpush3.bf16.msra.mxu0 %v163_v1  ;;  %v54_v4 = vpack.c.bf16 %v53_v3, %v53_v3  ;;  %s130_s22 = sshll.u32 %s266_s2, 4  ;;  %s131_s22 = int_to_ptr.vmem [resolvable:$true] %s130_s22 }
  0x3a   :  { %149 = vmatprep.subr.bf16.mxu0 %v264_v0  ;;  %s231_s23 = scalar_lea.vmem %s131_s22, 128  ;;  %p236_p11 = scmp.lt.s32.totalorder %s131_s22, %s131_s22 }
  0x3b   :  { %p232_p10 = scmp.ne.s32.totalorder %s131_s22, %s231_s23  ;;  %p237_p12 = scmp.lt.s32.totalorder %s231_s23, %s231_s23 }
  0x3d   :  { %150 = vmatpush3.bf16.msra.mxu0 %v164_v2  ;;  %p238_p13 = por %p237_p12, %p236_p11 }
  0x3f   :  { %p239_p0 = pnand %p238_p13, %p232_p10 }
  0x40   :  { %152 = vmatmul.mubr.msk.bf16.vlgmr.msra.gmra.mrb[0].mxu0 %vm78_vm1, %v54_v4 }
 0x113   :  { %v116_v6 = vpop.f32.mrb[0].mxu0 }
 0x114   :  { %v117_v7 = vadd.f32 %v140_v5, %v116_v6  ;;  %v153_v8 = vpop.f32.mrb[1].mxu0 }
 0x115   :  { %v119_v9 = vpop.f32.mrb[2].mxu0 }
 0x116   :  { %v122_v10 = vmax.f32 %v117_v7, 0.0  ;;  %v154_v11 = vpop.f32.mrb[3].mxu0 }
 0x118   :  { %123 = vst.msk [vmem:[#allocation8] sm:$0xff] %vm78_vm1, %v122_v10 }
 0x119   :  { %242 = shalt.err (!%p239_p0)
}
 0x11a   :  { %s243_s26 = scalar_lea.hbm %s338_s3, 128 }
 0x11b   :  { %p244_p1 = scmp.ne.s32.totalorder %s338_s3, %s243_s26  ;;  %p247_p2 = scmp.lt.u32.totalorder %s243_s26, %s338_s3 }
 0x11d   :  { %p249_p3 = pnand %p247_p2, %p244_p1 }
 0x11f   :  { %252 = shalt.err (!%p249_p3)
}
 0x120   :  { %133 = dma.vmem_to_hbm [thread:$0]  %s131_s22, 128, %s338_s3, [#allocation4]  }
 0x121   :  { %257 = dma.done.wait [#allocation4], 128  }
 0x122   :  { %258 = vsyncadd [#allocation4], 4294967168 }
 0x123   :  { %137 = vsyncpa [#allocation3], 1 }
 0x124   :  { %138 = vsyncpa [#allocation6], 1 }
 0x125   :  { %139 = vsyncpa [#allocation4], 1 }

// kernel: _lambda_.24
= control target key start
LH: loop header
LB: loop body
LE: loop exit
PB: predicated region body
PF: predicated region fallthrough
CT: control target
= control target key end

     0   :  { %11 = vsyncpa [#allocation3], 0  ;;  %s554_s0 = inlined_call_operand.hbm [shape: f32[8,32], index: 0, kind: input, shape index: {}]   ;;  %s555_s1 = inlined_call_operand.hbm [shape: f32[8,32], index: 1, kind: input, shape index: {}]   ;;  %s556_s2 = inlined_call_operand.hbm [shape: bf16[32,32], index: 2, kind: input, shape index: {}]   ;;  %s557_s3 = inlined_call_operand.hbm [shape: f32[1,32], index: 3, kind: input, shape index: {}]   ;;  %s558_s4 = inlined_call_operand.hbm [shape: f32[1,32], index: 4, kind: input, shape index: {}]   ;;  %s559_s5 = inlined_call_operand.hbm [shape: f32[1,32], index: 5, kind: input, shape index: {}]   ;;  %s560_s6 = inlined_call_operand.hbm [shape: f32[8,32], index: 6, kind: output, shape index: {}]  }
   0x1   :  { %12 = vsyncpa [#allocation6], 0 }
   0x2   :  { %13 = vsyncpa [#allocation9], 0 }
   0x3   :  { %14 = vsyncpa [#allocation12], 0 }
   0x4   :  { %15 = vsyncpa [#allocation4], 0  ;;  %s413_s21 = smov [#allocation5]   ;;  %s414_s23 = smov [#allocation8]  }
   0x5   :  { %s32_s22 = sshll.u32 %s413_s21, 4  ;;  %s54_s24 = sshll.u32 %s414_s23, 4  ;;  %s33_s22 = int_to_ptr.vmem [resolvable:$true] %s32_s22  ;;  %s55_s24 = int_to_ptr.vmem [resolvable:$true] %s54_s24 }
   0x6   :  { %s249_s27 = scalar_lea.hbm %s555_s1, 128 }
   0x7   :  { %p250_p0 = scmp.ne.s32.totalorder %s555_s1, %s249_s27  ;;  %p253_p1 = scmp.lt.u32.totalorder %s249_s27, %s555_s1 }
   0x9   :  { %p255_p2 = pnand %p253_p1, %p250_p0 }
   0xb   :  { %258 = shalt.err (!%p255_p2)
}
   0xc   :  { %s259_s8 = scalar_lea.vmem %s33_s22, 128  ;;  %p264_p4 = scmp.lt.s32.totalorder %s33_s22, %s33_s22 }
   0xd   :  { %p260_p3 = scmp.ne.s32.totalorder %s33_s22, %s259_s8  ;;  %p265_p5 = scmp.lt.s32.totalorder %s259_s8, %s259_s8 }
   0xf   :  { %p266_p6 = por %p265_p5, %p264_p4 }
  0x11   :  { %p267_p7 = pnand %p266_p6, %p260_p3 }
  0x13   :  { %270 = shalt.err (!%p267_p7)
}
  0x14   :  { %35 = dma.hbm_to_vmem [thread:$0]  %s555_s1, 128, %s33_s22, [#allocation6]  }
  0x15   :  { %s271_s13 = scalar_lea.hbm %s557_s3, 16 }
  0x16   :  { %p272_p8 = scmp.ne.s32.totalorder %s557_s3, %s271_s13  ;;  %p275_p9 = scmp.lt.u32.totalorder %s271_s13, %s557_s3 }
  0x18   :  { %p277_p10 = pnand %p275_p9, %p272_p8 }
  0x1a   :  { %280 = shalt.err (!%p277_p10)
}
  0x1b   :  { %s281_s18 = scalar_lea.vmem %s55_s24, 16  ;;  %s285_s19 = scalar_lea.vmem %s55_s24, 32 }
  0x1c   :  { %p282_p11 = scmp.ne.s32.totalorder %s55_s24, %s281_s18  ;;  %p286_p12 = scmp.lt.s32.totalorder %s55_s24, %s55_s24 }
  0x1d   :  { %p287_p13 = scmp.lt.s32.totalorder %s285_s19, %s281_s18 }
  0x1f   :  { %p288_p0 = por %p287_p13, %p286_p12 }
  0x21   :  { %p289_p1 = pnand %p288_p0, %p282_p11 }
  0x23   :  { %292 = shalt.err (!%p289_p1)
}
  0x24   :  { %57 = dma.hbm_to_vmem [thread:$0]  %s557_s3, 16, %s55_s24, [#allocation9]  }
  0x25   :  { %s415_s21 = smov [#allocation2]   ;;  %s416_s23 = smov [#allocation7]  }
  0x26   :  { %s22_s22 = sshll.u32 %s415_s21, 4  ;;  %s41_s25 = sshll.u32 %s416_s23, 4  ;;  %s23_s22 = int_to_ptr.vmem [resolvable:$true] %s22_s22  ;;  %s483_s25 = int_to_ptr.vmem [resolvable:$true] %s41_s25 }
  0x27   :  { %s293_s28 = scalar_lea.hbm %s554_s0, 128 }
  0x28   :  { %p294_p2 = scmp.ne.s32.totalorder %s554_s0, %s293_s28  ;;  %p297_p3 = scmp.lt.u32.totalorder %s293_s28, %s554_s0 }
  0x2a   :  { %p299_p4 = pnand %p297_p3, %p294_p2 }
  0x2c   :  { %302 = shalt.err (!%p299_p4)
}
  0x2d   :  { %s303_s3 = scalar_lea.vmem %s23_s22, 128  ;;  %p308_p6 = scmp.lt.s32.totalorder %s23_s22, %s23_s22 }
  0x2e   :  { %p304_p5 = scmp.ne.s32.totalorder %s23_s22, %s303_s3  ;;  %p309_p7 = scmp.lt.s32.totalorder %s303_s3, %s303_s3 }
  0x30   :  { %p310_p8 = por %p309_p7, %p308_p6 }
  0x32   :  { %p311_p9 = pnand %p310_p8, %p304_p5 }
  0x34   :  { %314 = shalt.err (!%p311_p9)
}
  0x35   :  { %25 = dma.hbm_to_vmem [thread:$0]  %s554_s0, 128, %s23_s22, [#allocation3]  }
  0x36   :  { %s315_s12 = scalar_lea.hbm %s556_s2, 256 }
  0x37   :  { %p316_p10 = scmp.ne.s32.totalorder %s556_s2, %s315_s12  ;;  %p319_p11 = scmp.lt.u32.totalorder %s315_s12, %s556_s2 }
  0x39   :  { %p321_p12 = pnand %p319_p11, %p316_p10 }
  0x3b   :  { %324 = shalt.err (!%p321_p12)
}
  0x3c   :  { %s325_s17 = scalar_lea.vmem %s483_s25, 256  ;;  %p330_p0 = scmp.lt.s32.totalorder %s483_s25, %s483_s25 }
  0x3d   :  { %p326_p13 = scmp.ne.s32.totalorder %s483_s25, %s325_s17  ;;  %p331_p1 = scmp.lt.s32.totalorder %s325_s17, %s325_s17 }
  0x3f   :  { %p332_p2 = por %p331_p1, %p330_p0 }
  0x41   :  { %p333_p3 = pnand %p332_p2, %p326_p13 }
  0x43   :  { %336 = shalt.err (!%p333_p3)
}
  0x44   :  { %s417_s0 = smov 64   ;;  %s418_s18 = smov 4  }
  0x45   :  { %47 = dma.hbm_to_vmem [thread:$0]  %s556_s2, 256, %s483_s25, [#allocation6], %s417_s0, %s417_s0, %s418_s18  }
  0x46   :  { %s419_s20 = smov [#allocation10]   ;;  %s420_s22 = smov [#allocation11]  }
  0x47   :  { %s64_s21 = sshll.u32 %s419_s20, 4  ;;  %s74_s23 = sshll.u32 %s420_s22, 4  ;;  %s65_s21 = int_to_ptr.vmem [resolvable:$true] %s64_s21  ;;  %s75_s23 = int_to_ptr.vmem [resolvable:$true] %s74_s23 }
  0x48   :  { %s337_s28 = scalar_lea.hbm %s558_s4, 16 }
  0x49   :  { %p338_p4 = scmp.ne.s32.totalorder %s558_s4, %s337_s28  ;;  %p341_p5 = scmp.lt.u32.totalorder %s337_s28, %s558_s4 }
  0x4b   :  { %p343_p6 = pnand %p341_p5, %p338_p4 }
  0x4d   :  { %346 = shalt.err (!%p343_p6)
}
  0x4e   :  { %s347_s2 = scalar_lea.vmem %s65_s21, 16  ;;  %s351_s25 = scalar_lea.vmem %s65_s21, 32 }
  0x4f   :  { %p348_p7 = scmp.ne.s32.totalorder %s65_s21, %s347_s2  ;;  %p352_p8 = scmp.lt.s32.totalorder %s65_s21, %s65_s21 }
  0x50   :  { %p353_p9 = scmp.lt.s32.totalorder %s351_s25, %s347_s2 }
  0x52   :  { %p354_p10 = por %p353_p9, %p352_p8 }
  0x54   :  { %p355_p11 = pnand %p354_p10, %p348_p7 }
  0x56   :  { %358 = shalt.err (!%p355_p11)
}
  0x57   :  { %67 = dma.hbm_to_vmem [thread:$0]  %s558_s4, 16, %s65_s21, [#allocation9]  }
  0x58   :  { %s359_s11 = scalar_lea.hbm %s559_s5, 16 }
  0x59   :  { %p360_p12 = scmp.ne.s32.totalorder %s559_s5, %s359_s11  ;;  %p363_p13 = scmp.lt.u32.totalorder %s359_s11, %s559_s5 }
  0x5b   :  { %p365_p0 = pnand %p363_p13, %p360_p12 }
  0x5d   :  { %368 = shalt.err (!%p365_p0)
}
  0x5e   :  { %s369_s16 = scalar_lea.vmem %s75_s23, 16  ;;  %s373_s17 = scalar_lea.vmem %s75_s23, 32 }
  0x5f   :  { %p370_p1 = scmp.ne.s32.totalorder %s75_s23, %s369_s16  ;;  %p374_p2 = scmp.lt.s32.totalorder %s75_s23, %s75_s23 }
  0x60   :  { %p375_p3 = scmp.lt.s32.totalorder %s373_s17, %s369_s16 }
  0x62   :  { %p376_p4 = por %p375_p3, %p374_p2 }
  0x64   :  { %p377_p5 = pnand %p376_p4, %p370_p1 }
  0x66   :  { %380 = shalt.err (!%p377_p5)
}
  0x67   :  { %77 = dma.hbm_to_vmem [thread:$0]  %s559_s5, 16, %s75_s23, [#allocation12]  }
  0x68   :  { %403 = dma.done.wait [#allocation3], 128  }
  0x69   :  { %404 = vsyncadd [#allocation3], 4294967168 }
  0x6a   :  { %405 = dma.done.wait [#allocation6], 384  }
  0x6b   :  { %406 = vsyncadd [#allocation6], 4294966912 }
  0x6c   :  { %407 = dma.done.wait [#allocation9], 32  }
  0x6d   :  { %408 = vsyncadd [#allocation9], 4294967264 }
  0x6e   :  { %409 = dma.done.wait [#allocation12], 16  }
  0x6f   :  { %410 = vsyncadd [#allocation12], 4294967280  ;;  %v421_v0 = vmov 0.0   ;;  %vm422_vm0 = vmmov 0   ;;  %v245_v1 = vld [vmem:[#allocation7] sm:$0xff]   ;;  %v246_v2 = vld [vmem:[#allocation7 + $0x8] sm:$0xff]  }
  0x70   :  { %226 = vmatprep.subr.bf16.mxu0 %v421_v0  ;;  %230 = vmatprep.mubr.msk.bf16.mxu0 %vm422_vm0, %v421_v0  ;;  %v97_v3 = vld [vmem:[#allocation2] sm:$0xff]  ;;  %vm122_vm1 = vcmask 261120   ;;  %v166_v7 = vld [vmem:[#allocation5] sm:$0xff]  ;;  %s423_s5 = smov [#allocation13]  }
  0x71   :  { %227 = vmatpush3.bf16.msra.mxu0 %v245_v1  ;;  %v98_v4 = vpack.c.bf16 %v97_v3, %v97_v3  ;;  %v217_v5 = vld [vmem:[#allocation8] ss:$0 sm:$0xff]  ;;  %v221_v23 = vld [vmem:[#allocation10] ss:$0 sm:$0xff]  ;;  %v222_v25 = vld [vmem:[#allocation11] ss:$0 sm:$0xff] }
  0x72   :  { %228 = vmatprep.subr.bf16.mxu0 %v421_v0  ;;  %s205_s18 = sshll.u32 %s423_s5, 4  ;;  %s206_s18 = int_to_ptr.vmem [resolvable:$true] %s205_s18 }
  0x73   :  { %s381_s19 = scalar_lea.vmem %s206_s18, 128  ;;  %p386_p7 = scmp.lt.s32.totalorder %s206_s18, %s206_s18 }
  0x74   :  { %p382_p6 = scmp.ne.s32.totalorder %s206_s18, %s381_s19  ;;  %p387_p8 = scmp.lt.s32.totalorder %s381_s19, %s381_s19 }
  0x75   :  { %229 = vmatpush3.bf16.msra.mxu0 %v246_v2 }
  0x76   :  { %p388_p9 = por %p387_p8, %p386_p7 }
  0x78   :  { %231 = vmatmul.mubr.msk.bf16.vlgmr.msra.gmra.mrb[0].mxu0 %vm122_vm1, %v98_v4  ;;  %p389_p10 = pnand %p388_p9, %p382_p6 }
 0x14b   :  { %v160_v6 = vpop.f32.mrb[0].mxu0 }
 0x14c   :  { %v161_v8 = vadd.f32 %v217_v5, %v160_v6  ;;  %v232_v9 = vpop.f32.mrb[1].mxu0 }
 0x14d   :  { %v163_v10 = vpop.f32.mrb[2].mxu0 }
 0x14e   :  { %v233_v11 = vpop.f32.mrb[3].mxu0  ;;  %v167_v12 = vadd.f32 %v166_v7, %v161_v8 }
 0x150   :  { %v168_v13 = vsel %vm122_vm1, %v167_v12, 0.0 }
 0x151   :  { %169 = vadd.xlane.f32.xlu0 %v168_v13 }
 0x1de   :  { %v170_v14 = vpop.xlane.xlu0 %169 }
 0x1df   :  { %v172_v15 = vmul.f32 0.03125, %v170_v14 }
 0x1e1   :  { %v173_v16 = vsub.f32 %v167_v12, %v172_v15 }
 0x1e3   :  { %v174_v17 = vmul.f32 %v173_v16, %v173_v16 }
 0x1e5   :  { %v175_v18 = vsel %vm122_vm1, %v174_v17, 0.0 }
 0x1e6   :  { %176 = vadd.xlane.f32.xlu0 %v175_v18 }
 0x273   :  { %v177_v19 = vpop.xlane.xlu0 %176 }
 0x274   :  { %v178_v20 = vmul.f32 0.03125, %v177_v19 }
 0x276   :  { %v179_v21 = vadd.f32 1e-05, %v178_v20 }
 0x278   :  { %247 = vrsqrt.f32 %v179_v21 }
 0x282   :  { %v248_v22 = vpop.eup %247 }
 0x283   :  { %v181_v24 = vmul.f32 %v248_v22, %v173_v16 }
 0x285   :  { %v189_v26 = vmul.f32 %v221_v23, %v181_v24 }
 0x287   :  { %v197_v27 = vadd.f32 %v222_v25, %v189_v26 }
 0x289   :  { %198 = vst.msk [vmem:[#allocation13] sm:$0xff] %vm122_vm1, %v197_v27 }
 0x28a   :  { %392 = shalt.err (!%p389_p10)
}
 0x28b   :  { %s393_s21 = scalar_lea.hbm %s560_s6, 128 }
 0x28c   :  { %p394_p11 = scmp.ne.s32.totalorder %s560_s6, %s393_s21  ;;  %p397_p12 = scmp.lt.u32.totalorder %s393_s21, %s560_s6 }
 0x28e   :  { %p399_p13 = pnand %p397_p12, %p394_p11 }
 0x290   :  { %402 = shalt.err (!%p399_p13)
}
 0x291   :  { %208 = dma.vmem_to_hbm [thread:$0]  %s206_s18, 128, %s560_s6, [#allocation4]  }
 0x292   :  { %411 = dma.done.wait [#allocation4], 128  }
 0x293   :  { %412 = vsyncadd [#allocation4], 4294967168 }
 0x294   :  { %212 = vsyncpa [#allocation3], 1 }
 0x295   :  { %213 = vsyncpa [#allocation6], 1 }
 0x296   :  { %214 = vsyncpa [#allocation9], 1 }
 0x297   :  { %215 = vsyncpa [#allocation12], 1 }
 0x298   :  { %216 = vsyncpa [#allocation4], 1 }

// kernel: _lambda_.25
= control target key start
LH: loop header
LB: loop body
LE: loop exit
PB: predicated region body
PF: predicated region fallthrough
CT: control target
= control target key end

     0   :  { %10 = vsyncpa [#allocation3], 0  ;;  %s493_s0 = inlined_call_operand.hbm [shape: f32[8,32], index: 0, kind: input, shape index: {}]   ;;  %s494_s1 = inlined_call_operand.hbm [shape: f32[1,32], index: 1, kind: input, shape index: {}]   ;;  %s495_s2 = inlined_call_operand.hbm [shape: f32[1,32], index: 2, kind: input, shape index: {}]   ;;  %s496_s3 = inlined_call_operand.hbm [shape: bf16[32,8], index: 3, kind: input, shape index: {}]   ;;  %s497_s4 = inlined_call_operand.hbm [shape: f32[1,8], index: 4, kind: input, shape index: {}]   ;;  %s498_s5 = inlined_call_operand.hbm [shape: f32[8,8], index: 5, kind: output, shape index: {}]  }
   0x1   :  { %11 = vsyncpa [#allocation6], 0 }
   0x2   :  { %12 = vsyncpa [#allocation9], 0 }
   0x3   :  { %13 = vsyncpa [#allocation4], 0  ;;  %s371_s18 = smov [#allocation5]   ;;  %s372_s20 = smov [#allocation8]  }
   0x4   :  { %s30_s19 = sshll.u32 %s371_s18, 4  ;;  %s49_s21 = sshll.u32 %s372_s20, 4  ;;  %s31_s19 = int_to_ptr.vmem [resolvable:$true] %s30_s19  ;;  %s411_s21 = int_to_ptr.vmem [resolvable:$true] %s49_s21 }
   0x5   :  { %s231_s24 = scalar_lea.hbm %s494_s1, 16 }
   0x6   :  { %p232_p0 = scmp.ne.s32.totalorder %s494_s1, %s231_s24  ;;  %p235_p1 = scmp.lt.u32.totalorder %s231_s24, %s494_s1 }
   0x8   :  { %p237_p2 = pnand %p235_p1, %p232_p0 }
   0xa   :  { %240 = shalt.err (!%p237_p2)
}
   0xb   :  { %s241_s29 = scalar_lea.vmem %s31_s19, 16  ;;  %s245_s30 = scalar_lea.vmem %s31_s19, 32 }
   0xc   :  { %p242_p3 = scmp.ne.s32.totalorder %s31_s19, %s241_s29  ;;  %p246_p4 = scmp.lt.s32.totalorder %s31_s19, %s31_s19 }
   0xd   :  { %p247_p5 = scmp.lt.s32.totalorder %s245_s30, %s241_s29 }
   0xf   :  { %p248_p6 = por %p247_p5, %p246_p4 }
  0x11   :  { %p249_p7 = pnand %p248_p6, %p242_p3 }
  0x13   :  { %252 = shalt.err (!%p249_p7)
}
  0x14   :  { %33 = dma.hbm_to_vmem [thread:$0]  %s494_s1, 16, %s31_s19, [#allocation6]  }
  0x15   :  { %s253_s10 = scalar_lea.hbm %s496_s3, 256 }
  0x16   :  { %p254_p8 = scmp.ne.s32.totalorder %s496_s3, %s253_s10  ;;  %p257_p9 = scmp.lt.u32.totalorder %s253_s10, %s496_s3 }
  0x18   :  { %p259_p10 = pnand %p257_p9, %p254_p8 }
  0x1a   :  { %262 = shalt.err (!%p259_p10)
}
  0x1b   :  { %s263_s15 = scalar_lea.vmem %s411_s21, 256  ;;  %p268_p12 = scmp.lt.s32.totalorder %s411_s21, %s411_s21 }
  0x1c   :  { %p264_p11 = scmp.ne.s32.totalorder %s411_s21, %s263_s15  ;;  %p269_p13 = scmp.lt.s32.totalorder %s263_s15, %s263_s15 }
  0x1e   :  { %p270_p0 = por %p269_p13, %p268_p12 }
  0x20   :  { %p271_p1 = pnand %p270_p0, %p264_p11 }
  0x22   :  { %274 = shalt.err (!%p271_p1)
}
  0x23   :  { %s373_s1 = smov 64   ;;  %s374_s16 = smov 4  }
  0x24   :  { %55 = dma.hbm_to_vmem [thread:$0]  %s496_s3, 256, %s411_s21, [#allocation9], %s373_s1, %s373_s1, %s374_s16  }
  0x25   :  { %s375_s19 = smov [#allocation2]   ;;  %s376_s22 = smov [#allocation7]  }
  0x26   :  { %s20_s20 = sshll.u32 %s375_s19, 4  ;;  %s40_s23 = sshll.u32 %s376_s22, 4  ;;  %s21_s20 = int_to_ptr.vmem [resolvable:$true] %s20_s20  ;;  %s41_s23 = int_to_ptr.vmem [resolvable:$true] %s40_s23 }
  0x27   :  { %s275_s26 = scalar_lea.hbm %s493_s0, 128 }
  0x28   :  { %p276_p2 = scmp.ne.s32.totalorder %s493_s0, %s275_s26  ;;  %p279_p3 = scmp.lt.u32.totalorder %s275_s26, %s493_s0 }
  0x2a   :  { %p281_p4 = pnand %p279_p3, %p276_p2 }
  0x2c   :  { %284 = shalt.err (!%p281_p4)
}
  0x2d   :  { %s285_s3 = scalar_lea.vmem %s21_s20, 128  ;;  %p290_p6 = scmp.lt.s32.totalorder %s21_s20, %s21_s20 }
  0x2e   :  { %p286_p5 = scmp.ne.s32.totalorder %s21_s20, %s285_s3  ;;  %p291_p7 = scmp.lt.s32.totalorder %s285_s3, %s285_s3 }
  0x30   :  { %p292_p8 = por %p291_p7, %p290_p6 }
  0x32   :  { %p293_p9 = pnand %p292_p8, %p286_p5 }
  0x34   :  { %296 = shalt.err (!%p293_p9)
}
  0x35   :  { %23 = dma.hbm_to_vmem [thread:$0]  %s493_s0, 128, %s21_s20, [#allocation3]  }
  0x36   :  { %s297_s9 = scalar_lea.hbm %s495_s2, 16 }
  0x37   :  { %p298_p10 = scmp.ne.s32.totalorder %s495_s2, %s297_s9  ;;  %p301_p11 = scmp.lt.u32.totalorder %s297_s9, %s495_s2 }
  0x39   :  { %p303_p12 = pnand %p301_p11, %p298_p10 }
  0x3b   :  { %306 = shalt.err (!%p303_p12)
}
  0x3c   :  { %s307_s14 = scalar_lea.vmem %s41_s23, 16  ;;  %s311_s15 = scalar_lea.vmem %s41_s23, 32 }
  0x3d   :  { %p308_p13 = scmp.ne.s32.totalorder %s41_s23, %s307_s14  ;;  %p312_p0 = scmp.lt.s32.totalorder %s41_s23, %s41_s23 }
  0x3e   :  { %p313_p1 = scmp.lt.s32.totalorder %s311_s15, %s307_s14 }
  0x40   :  { %p314_p2 = por %p313_p1, %p312_p0 }
  0x42   :  { %p315_p3 = pnand %p314_p2, %p308_p13 }
  0x44   :  { %318 = shalt.err (!%p315_p3)
}
  0x45   :  { %43 = dma.hbm_to_vmem [thread:$0]  %s495_s2, 16, %s41_s23, [#allocation6]  }
  0x46   :  { %s377_s16 = smov [#allocation10]   ;;  %s319_s20 = scalar_lea.hbm %s497_s4, 16 }
  0x47   :  { %s62_s17 = sshll.u32 %s377_s16, 4  ;;  %p320_p4 = scmp.ne.s32.totalorder %s497_s4, %s319_s20  ;;  %s63_s17 = int_to_ptr.vmem [resolvable:$true] %s62_s17 }
  0x48   :  { %p323_p5 = scmp.lt.u32.totalorder %s319_s20, %s497_s4 }
  0x4a   :  { %p325_p6 = pnand %p323_p5, %p320_p4 }
  0x4c   :  { %328 = shalt.err (!%p325_p6)
}
  0x4d   :  { %s329_s27 = scalar_lea.vmem %s63_s17, 16  ;;  %s333_s2 = scalar_lea.vmem %s63_s17, 32 }
  0x4e   :  { %p330_p7 = scmp.ne.s32.totalorder %s63_s17, %s329_s27  ;;  %p334_p8 = scmp.lt.s32.totalorder %s63_s17, %s63_s17 }
  0x4f   :  { %p335_p9 = scmp.lt.s32.totalorder %s333_s2, %s329_s27 }
  0x51   :  { %p336_p10 = por %p335_p9, %p334_p8 }
  0x53   :  { %p337_p11 = pnand %p336_p10, %p330_p7 }
  0x55   :  { %340 = shalt.err (!%p337_p11)
}
  0x56   :  { %65 = dma.hbm_to_vmem [thread:$0]  %s497_s4, 16, %s63_s17, [#allocation9]  }
  0x57   :  { %363 = dma.done.wait [#allocation3], 128  }
  0x58   :  { %364 = vsyncadd [#allocation3], 4294967168 }
  0x59   :  { %365 = dma.done.wait [#allocation6], 32  }
  0x5a   :  { %366 = vsyncadd [#allocation6], 4294967264 }
  0x5b   :  { %367 = dma.done.wait [#allocation9], 272  }
  0x5c   :  { %368 = vsyncadd [#allocation9], 4294967024  ;;  %vm83_vm0 = vcmask 261120   ;;  %v82_v0 = vld [vmem:[#allocation2] sm:$0xff]  ;;  %v227_v7 = vld [vmem:[#allocation8] sm:$0xff]   ;;  %v378_v8 = vmov 0.0  }
  0x5d   :  { %v84_v1 = vsel %vm83_vm0, %v82_v0, 0.0  ;;  %209 = vmatprep.subr.bf16.mxu0 %v378_v8  ;;  %v228_v9 = vld [vmem:[#allocation8 + $0x8] sm:$0xff]   ;;  %vm379_vm1 = vmmov 0   ;;  %v200_v14 = vld [vmem:[#allocation5] ss:$0 sm:$0xff]  ;;  %s380_s4 = smov [#allocation11]  }
  0x5e   :  { %85 = vadd.xlane.f32.xlu0 %v84_v1  ;;  %210 = vmatpush3.bf16.msra.mxu0 %v227_v7  ;;  %v201_v16 = vld [vmem:[#allocation7] ss:$0 sm:$0xff]  ;;  %v202_v20 = vld [vmem:[#allocation10] ss:$0 sm:$0xff]  ;;  %s189_s29 = sshll.u32 %s380_s4, 4  ;;  %vm181_vm2 = vcmask 64512   ;;  %s190_s29 = int_to_ptr.vmem [resolvable:$true] %s189_s29 }
  0x5f   :  { %213 = vmatprep.mubr.msk.bf16.mxu0 %vm379_vm1, %v378_v8  ;;  %211 = vmatprep.subr.bf16.mxu0 %v378_v8  ;;  %s341_s30 = scalar_lea.vmem %s190_s29, 128  ;;  %p346_p13 = scmp.lt.s32.totalorder %s190_s29, %s190_s29 }
  0x60   :  { %p342_p12 = scmp.ne.s32.totalorder %s190_s29, %s341_s30  ;;  %p347_p0 = scmp.lt.s32.totalorder %s341_s30, %s341_s30 }
  0x62   :  { %212 = vmatpush3.bf16.msra.mxu0 %v228_v9  ;;  %p348_p1 = por %p347_p0, %p346_p13 }
  0x64   :  { %p349_p2 = pnand %p348_p1, %p342_p12 }
  0xeb   :  { %v86_v2 = vpop.xlane.xlu0 %85 }
  0xec   :  { %v88_v3 = vmul.f32 0.03125, %v86_v2 }
  0xee   :  { %v89_v4 = vsub.f32 %v82_v0, %v88_v3 }
  0xf0   :  { %v90_v5 = vmul.f32 %v89_v4, %v89_v4 }
  0xf2   :  { %v91_v6 = vsel %vm83_vm0, %v90_v5, 0.0 }
  0xf3   :  { %92 = vadd.xlane.f32.xlu0 %v91_v6 }
 0x180   :  { %v93_v10 = vpop.xlane.xlu0 %92 }
 0x181   :  { %v94_v11 = vmul.f32 0.03125, %v93_v10 }
 0x183   :  { %v95_v12 = vadd.f32 1e-05, %v94_v11 }
 0x185   :  { %229 = vrsqrt.f32 %v95_v12 }
 0x18f   :  { %v230_v13 = vpop.eup %229 }
 0x190   :  { %v97_v15 = vmul.f32 %v230_v13, %v89_v4 }
 0x192   :  { %v105_v17 = vmul.f32 %v200_v14, %v97_v15 }
 0x194   :  { %v113_v18 = vadd.f32 %v201_v16, %v105_v17 }
 0x196   :  { %v114_v19 = vpack.c.bf16 %v113_v18, %v113_v18 }
 0x198   :  { %214 = vmatmul.mubr.msk.bf16.vlgmr.msra.gmra.mrb[0].mxu0 %vm83_vm0, %v114_v19 }
 0x26b   :  { %v175_v21 = vpop.f32.mrb[0].mxu0 }
 0x26c   :  { %v176_v22 = vadd.f32 %v202_v20, %v175_v21  ;;  %v215_v23 = vpop.f32.mrb[1].mxu0 }
 0x26d   :  { %v178_v24 = vpop.f32.mrb[2].mxu0 }
 0x26e   :  { %v216_v25 = vpop.f32.mrb[3].mxu0  ;;  %182 = vst.msk [vmem:[#allocation11] sm:$0xff] %vm181_vm2, %v176_v22 }
 0x26f   :  { %352 = shalt.err (!%p349_p2)
}
 0x270   :  { %s353_s6 = scalar_lea.hbm %s498_s5, 128 }
 0x271   :  { %p354_p3 = scmp.ne.s32.totalorder %s498_s5, %s353_s6  ;;  %p357_p4 = scmp.lt.u32.totalorder %s353_s6, %s498_s5 }
 0x273   :  { %p359_p5 = pnand %p357_p4, %p354_p3 }
 0x275   :  { %362 = shalt.err (!%p359_p5)
}
 0x276   :  { %192 = dma.vmem_to_hbm [thread:$0]  %s190_s29, 128, %s498_s5, [#allocation4]  }
 0x277   :  { %369 = dma.done.wait [#allocation4], 128  }
 0x278   :  { %370 = vsyncadd [#allocation4], 4294967168 }
 0x279   :  { %196 = vsyncpa [#allocation3], 1 }
 0x27a   :  { %197 = vsyncpa [#allocation6], 1 }
 0x27b   :  { %198 = vsyncpa [#allocation9], 1 }
 0x27c   :  { %199 = vsyncpa [#allocation4], 1 }

// kernel: _lambda_.26
= control target key start
LH: loop header
LB: loop body
LE: loop exit
PB: predicated region body
PF: predicated region fallthrough
CT: control target
= control target key end

     0   :  { %8 = vsyncpa [#allocation3], 0  ;;  %s311_s0 = inlined_call_operand.hbm [shape: f32[8,8], index: 0, kind: input, shape index: {}]   ;;  %s312_s1 = inlined_call_operand.hbm [shape: bf16[8,16], index: 1, kind: input, shape index: {}]   ;;  %s313_s2 = inlined_call_operand.hbm [shape: f32[1,16], index: 2, kind: input, shape index: {}]   ;;  %s314_s3 = inlined_call_operand.hbm [shape: f32[8,16], index: 3, kind: output, shape index: {}]  }
   0x1   :  { %9 = vsyncpa [#allocation6], 0 }
   0x2   :  { %10 = vsyncpa [#allocation4], 0  ;;  %s237_s12 = smov [#allocation5]   ;;  %s238_s14 = smov [#allocation2]  }
   0x3   :  { %s27_s13 = sshll.u32 %s237_s12, 4  ;;  %s17_s15 = sshll.u32 %s238_s14, 4  ;;  %s28_s13 = int_to_ptr.vmem [resolvable:$true] %s27_s13  ;;  %s18_s15 = int_to_ptr.vmem [resolvable:$true] %s17_s15 }
   0x4   :  { %s143_s18 = scalar_lea.hbm %s312_s1, 64 }
   0x5   :  { %p144_p0 = scmp.ne.s32.totalorder %s312_s1, %s143_s18  ;;  %p147_p1 = scmp.lt.u32.totalorder %s143_s18, %s312_s1 }
   0x7   :  { %p149_p2 = pnand %p147_p1, %p144_p0 }
   0x9   :  { %152 = shalt.err (!%p149_p2)
}
   0xa   :  { %s153_s23 = scalar_lea.vmem %s28_s13, 64  ;;  %p158_p4 = scmp.lt.s32.totalorder %s28_s13, %s28_s13 }
   0xb   :  { %p154_p3 = scmp.ne.s32.totalorder %s28_s13, %s153_s23  ;;  %p159_p5 = scmp.lt.s32.totalorder %s153_s23, %s153_s23 }
   0xd   :  { %p160_p6 = por %p159_p5, %p158_p4 }
   0xf   :  { %p161_p7 = pnand %p160_p6, %p154_p3 }
  0x11   :  { %164 = shalt.err (!%p161_p7)
}
  0x12   :  { %30 = dma.hbm_to_vmem [thread:$0]  %s312_s1, 64, %s28_s13, [#allocation6]  }
  0x13   :  { %s165_s28 = scalar_lea.hbm %s311_s0, 128 }
  0x14   :  { %p166_p8 = scmp.ne.s32.totalorder %s311_s0, %s165_s28  ;;  %p169_p9 = scmp.lt.u32.totalorder %s165_s28, %s311_s0 }
  0x16   :  { %p171_p10 = pnand %p169_p9, %p166_p8 }
  0x18   :  { %174 = shalt.err (!%p171_p10)
}
  0x19   :  { %s175_s6 = scalar_lea.vmem %s18_s15, 128  ;;  %p180_p12 = scmp.lt.s32.totalorder %s18_s15, %s18_s15 }
  0x1a   :  { %p176_p11 = scmp.ne.s32.totalorder %s18_s15, %s175_s6  ;;  %p181_p13 = scmp.lt.s32.totalorder %s175_s6, %s175_s6 }
  0x1c   :  { %p182_p0 = por %p181_p13, %p180_p12 }
  0x1e   :  { %p183_p1 = pnand %p182_p0, %p176_p11 }
  0x20   :  { %186 = shalt.err (!%p183_p1)
}
  0x21   :  { %20 = dma.hbm_to_vmem [thread:$0]  %s311_s0, 128, %s18_s15, [#allocation3]  }
  0x22   :  { %s239_s8 = smov [#allocation7]   ;;  %s187_s12 = scalar_lea.hbm %s313_s2, 16 }
  0x23   :  { %s37_s9 = sshll.u32 %s239_s8, 4  ;;  %p188_p2 = scmp.ne.s32.totalorder %s313_s2, %s187_s12  ;;  %s38_s9 = int_to_ptr.vmem [resolvable:$true] %s37_s9 }
  0x24   :  { %p191_p3 = scmp.lt.u32.totalorder %s187_s12, %s313_s2 }
  0x26   :  { %p193_p4 = pnand %p191_p3, %p188_p2 }
  0x28   :  { %196 = shalt.err (!%p193_p4)
}
  0x29   :  { %s197_s18 = scalar_lea.vmem %s38_s9, 16  ;;  %s201_s0 = scalar_lea.vmem %s38_s9, 32 }
  0x2a   :  { %p198_p5 = scmp.ne.s32.totalorder %s38_s9, %s197_s18  ;;  %p202_p6 = scmp.lt.s32.totalorder %s38_s9, %s38_s9 }
  0x2b   :  { %p203_p7 = scmp.lt.s32.totalorder %s201_s0, %s197_s18 }
  0x2d   :  { %p204_p8 = por %p203_p7, %p202_p6 }
  0x2f   :  { %p205_p9 = pnand %p204_p8, %p198_p5 }
  0x31   :  { %208 = shalt.err (!%p205_p9)
}
  0x32   :  { %40 = dma.hbm_to_vmem [thread:$0]  %s313_s2, 16, %s38_s9, [#allocation6]  }
  0x33   :  { %231 = dma.done.wait [#allocation3], 128  }
  0x34   :  { %232 = vsyncadd [#allocation3], 4294967168 }
  0x35   :  { %233 = dma.done.wait [#allocation6], 80  }
  0x36   :  { %234 = vsyncadd [#allocation6], 4294967216  ;;  %v240_v0 = vmov 0.0   ;;  %vm241_vm0 = vmmov 0   ;;  %vm65_vm1 = vcmask 1043456   ;;  %v51_v2 = vld [vmem:[#allocation2] sm:$0xff] }
  0x37   :  { %131 = vmatprep.subr.bf16.mxu0 %v240_v0  ;;  %133 = vmatprep.mubr.msk.bf16.mxu0 %vm241_vm0, %v240_v0  ;;  %v53_v1 = vld [vmem:[#allocation5] sm:$0xf]  ;;  %v52_v4 = vpack.c.bf16 %v51_v2, %v51_v2  ;;  %vm61_vm2 = vcmask 64512   ;;  %v127_v5 = vld [vmem:[#allocation7] ss:$0 sm:$0xff]  ;;  %s242_s20 = smov [#allocation8]  }
  0x38   :  { %v67_v3 = vsel %vm65_vm1, %v53_v1, 0  ;;  %s117_s21 = sshll.u32 %s242_s20, 4  ;;  %vm109_vm3 = vcmask 130048   ;;  %s118_s21 = int_to_ptr.vmem [resolvable:$true] %s117_s21 }
  0x39   :  { %132 = vmatpush3.bf16.msra.mxu0 %v67_v3  ;;  %s209_s2 = scalar_lea.vmem %s118_s21, 128  ;;  %p214_p11 = scmp.lt.s32.totalorder %s118_s21, %s118_s21 }
  0x3a   :  { %p210_p10 = scmp.ne.s32.totalorder %s118_s21, %s209_s2  ;;  %p215_p12 = scmp.lt.s32.totalorder %s209_s2, %s209_s2 }
  0x3c   :  { %134 = vmatmul.mubr.msk.bf16.vlgmr.msra.gmra.mrb[0].mxu0 %vm61_vm2, %v52_v4  ;;  %p216_p13 = por %p215_p12, %p214_p11 }
  0x3e   :  { %p217_p0 = pnand %p216_p13, %p210_p10 }
 0x10f   :  { %v103_v6 = vpop.f32.mrb[0].mxu0 }
 0x110   :  { %v104_v7 = vadd.f32 %v127_v5, %v103_v6  ;;  %v135_v8 = vpop.f32.mrb[1].mxu0 }
 0x111   :  { %v106_v9 = vpop.f32.mrb[2].mxu0 }
 0x112   :  { %v136_v10 = vpop.f32.mrb[3].mxu0  ;;  %110 = vst.msk [vmem:[#allocation8] sm:$0xff] %vm109_vm3, %v104_v7 }
 0x113   :  { %220 = shalt.err (!%p217_p0)
}
 0x114   :  { %s221_s24 = scalar_lea.hbm %s314_s3, 128 }
 0x115   :  { %p222_p1 = scmp.ne.s32.totalorder %s314_s3, %s221_s24  ;;  %p225_p2 = scmp.lt.u32.totalorder %s221_s24, %s314_s3 }
 0x117   :  { %p227_p3 = pnand %p225_p2, %p222_p1 }
 0x119   :  { %230 = shalt.err (!%p227_p3)
}
 0x11a   :  { %120 = dma.vmem_to_hbm [thread:$0]  %s118_s21, 128, %s314_s3, [#allocation4]  }
 0x11b   :  { %235 = dma.done.wait [#allocation4], 128  }
 0x11c   :  { %236 = vsyncadd [#allocation4], 4294967168 }
 0x11d   :  { %124 = vsyncpa [#allocation3], 1 }
 0x11e   :  { %125 = vsyncpa [#allocation6], 1 }
 0x11f   :  { %126 = vsyncpa [#allocation4], 1 }

// kernel: _lambda_.27
= control target key start
LH: loop header
LB: loop body
LE: loop exit
PB: predicated region body
PF: predicated region fallthrough
CT: control target
= control target key end

     0   :  { %8 = vsyncpa [#allocation3], 0  ;;  %s321_s0 = inlined_call_operand.hbm [shape: f32[8,16], index: 0, kind: input, shape index: {}]   ;;  %s322_s1 = inlined_call_operand.hbm [shape: bf16[16,16], index: 1, kind: input, shape index: {}]   ;;  %s323_s2 = inlined_call_operand.hbm [shape: f32[1,16], index: 2, kind: input, shape index: {}]   ;;  %s324_s3 = inlined_call_operand.hbm [shape: f32[8,16], index: 3, kind: output, shape index: {}]  }
   0x1   :  { %9 = vsyncpa [#allocation6], 0 }
   0x2   :  { %10 = vsyncpa [#allocation4], 0  ;;  %s245_s12 = smov [#allocation5]   ;;  %s151_s16 = scalar_lea.hbm %s322_s1, 128 }
   0x3   :  { %s26_s13 = sshll.u32 %s245_s12, 4  ;;  %p152_p0 = scmp.ne.s32.totalorder %s322_s1, %s151_s16  ;;  %s27_s13 = int_to_ptr.vmem [resolvable:$true] %s26_s13 }
   0x4   :  { %p155_p1 = scmp.lt.u32.totalorder %s151_s16, %s322_s1 }
   0x6   :  { %p157_p2 = pnand %p155_p1, %p152_p0 }
   0x8   :  { %160 = shalt.err (!%p157_p2)
}
   0x9   :  { %s161_s21 = scalar_lea.vmem %s27_s13, 128  ;;  %p166_p4 = scmp.lt.s32.totalorder %s27_s13, %s27_s13 }
   0xa   :  { %p162_p3 = scmp.ne.s32.totalorder %s27_s13, %s161_s21  ;;  %p167_p5 = scmp.lt.s32.totalorder %s161_s21, %s161_s21 }
   0xc   :  { %p168_p6 = por %p167_p5, %p166_p4 }
   0xe   :  { %p169_p7 = pnand %p168_p6, %p162_p3 }
  0x10   :  { %172 = shalt.err (!%p169_p7)
}
  0x11   :  { %s246_s22 = smov 64   ;;  %s247_s23 = smov 4  }
  0x12   :  { %32 = dma.hbm_to_vmem [thread:$0]  %s322_s1, 128, %s27_s13, [#allocation6], %s246_s22, %s246_s22, %s247_s23  }
  0x13   :  { %s248_s26 = smov [#allocation2]   ;;  %s249_s28 = smov [#allocation7]  }
  0x14   :  { %s17_s27 = sshll.u32 %s248_s26, 4  ;;  %s39_s29 = sshll.u32 %s249_s28, 4  ;;  %s18_s27 = int_to_ptr.vmem [resolvable:$true] %s17_s27  ;;  %s40_s29 = int_to_ptr.vmem [resolvable:$true] %s39_s29 }
  0x15   :  { %s173_s5 = scalar_lea.hbm %s321_s0, 128 }
  0x16   :  { %p174_p8 = scmp.ne.s32.totalorder %s321_s0, %s173_s5  ;;  %p177_p9 = scmp.lt.u32.totalorder %s173_s5, %s321_s0 }
  0x18   :  { %p179_p10 = pnand %p177_p9, %p174_p8 }
  0x1a   :  { %182 = shalt.err (!%p179_p10)
}
  0x1b   :  { %s183_s1 = scalar_lea.vmem %s18_s27, 128  ;;  %p188_p12 = scmp.lt.s32.totalorder %s18_s27, %s18_s27 }
  0x1c   :  { %p184_p11 = scmp.ne.s32.totalorder %s18_s27, %s183_s1  ;;  %p189_p13 = scmp.lt.s32.totalorder %s183_s1, %s183_s1 }
  0x1e   :  { %p190_p0 = por %p189_p13, %p188_p12 }
  0x20   :  { %p191_p1 = pnand %p190_p0, %p184_p11 }
  0x22   :  { %194 = shalt.err (!%p191_p1)
}
  0x23   :  { %20 = dma.hbm_to_vmem [thread:$0]  %s321_s0, 128, %s18_s27, [#allocation3]  }
  0x24   :  { %s195_s14 = scalar_lea.hbm %s323_s2, 16 }
  0x25   :  { %p196_p2 = scmp.ne.s32.totalorder %s323_s2, %s195_s14  ;;  %p199_p3 = scmp.lt.u32.totalorder %s195_s14, %s323_s2 }
  0x27   :  { %p201_p4 = pnand %p199_p3, %p196_p2 }
  0x29   :  { %204 = shalt.err (!%p201_p4)
}
  0x2a   :  { %s205_s19 = scalar_lea.vmem %s40_s29, 16  ;;  %s209_s20 = scalar_lea.vmem %s40_s29, 32 }
  0x2b   :  { %p206_p5 = scmp.ne.s32.totalorder %s40_s29, %s205_s19  ;;  %p210_p6 = scmp.lt.s32.totalorder %s40_s29, %s40_s29 }
  0x2c   :  { %p211_p7 = scmp.lt.s32.totalorder %s209_s20, %s205_s19 }
  0x2e   :  { %p212_p8 = por %p211_p7, %p210_p6 }
  0x30   :  { %p213_p9 = pnand %p212_p8, %p206_p5 }
  0x32   :  { %216 = shalt.err (!%p213_p9)
}
  0x33   :  { %42 = dma.hbm_to_vmem [thread:$0]  %s323_s2, 16, %s40_s29, [#allocation6]  }
  0x34   :  { %239 = dma.done.wait [#allocation3], 128  }
  0x35   :  { %240 = vsyncadd [#allocation3], 4294967168 }
  0x36   :  { %241 = dma.done.wait [#allocation6], 144  }
  0x37   :  { %242 = vsyncadd [#allocation6], 4294967152  ;;  %v250_v0 = vmov 0.0   ;;  %vm251_vm0 = vmmov 0   ;;  %v150_v1 = vld [vmem:[#allocation5] sm:$0xff]   ;;  %v53_v2 = vld [vmem:[#allocation2] sm:$0xff] }
  0x38   :  { %136 = vmatprep.subr.bf16.mxu0 %v250_v0  ;;  %138 = vmatprep.mubr.msk.bf16.mxu0 %vm251_vm0, %v250_v0  ;;  %v54_v3 = vpack.c.bf16 %v53_v2, %v53_v2  ;;  %vm70_vm1 = vcmask 130048   ;;  %v131_v4 = vld [vmem:[#allocation7] ss:$0 sm:$0xff]  ;;  %s252_s22 = smov [#allocation8]  }
  0x39   :  { %137 = vmatpush3.bf16.msra.mxu0 %v150_v1  ;;  %s121_s23 = sshll.u32 %s252_s22, 4  ;;  %s122_s23 = int_to_ptr.vmem [resolvable:$true] %s121_s23 }
  0x3a   :  { %s217_s2 = scalar_lea.vmem %s122_s23, 128  ;;  %p222_p11 = scmp.lt.s32.totalorder %s122_s23, %s122_s23 }
  0x3b   :  { %p218_p10 = scmp.ne.s32.totalorder %s122_s23, %s217_s2  ;;  %p223_p12 = scmp.lt.s32.totalorder %s217_s2, %s217_s2 }
  0x3c   :  { %139 = vmatmul.mubr.msk.bf16.vlgmr.msra.gmra.mrb[0].mxu0 %vm70_vm1, %v54_v3 }
  0x3d   :  { %p224_p13 = por %p223_p12, %p222_p11 }
  0x3f   :  { %p225_p0 = pnand %p224_p13, %p218_p10 }
 0x10f   :  { %v108_v5 = vpop.f32.mrb[0].mxu0 }
 0x110   :  { %v109_v6 = vadd.f32 %v131_v4, %v108_v5  ;;  %v140_v7 = vpop.f32.mrb[1].mxu0 }
 0x111   :  { %v111_v8 = vpop.f32.mrb[2].mxu0 }
 0x112   :  { %114 = vst.msk [vmem:[#allocation8] sm:$0xff] %vm70_vm1, %v109_v6  ;;  %v141_v9 = vpop.f32.mrb[3].mxu0 }
 0x113   :  { %228 = shalt.err (!%p225_p0)
}
 0x114   :  { %s229_s26 = scalar_lea.hbm %s324_s3, 128 }
 0x115   :  { %p230_p1 = scmp.ne.s32.totalorder %s324_s3, %s229_s26  ;;  %p233_p2 = scmp.lt.u32.totalorder %s229_s26, %s324_s3 }
 0x117   :  { %p235_p3 = pnand %p233_p2, %p230_p1 }
 0x119   :  { %238 = shalt.err (!%p235_p3)
}
 0x11a   :  { %124 = dma.vmem_to_hbm [thread:$0]  %s122_s23, 128, %s324_s3, [#allocation4]  }
 0x11b   :  { %243 = dma.done.wait [#allocation4], 128  }
 0x11c   :  { %244 = vsyncadd [#allocation4], 4294967168 }
 0x11d   :  { %128 = vsyncpa [#allocation3], 1 }
 0x11e   :  { %129 = vsyncpa [#allocation6], 1 }
 0x11f   :  { %130 = vsyncpa [#allocation4], 1 }

// kernel: _lambda_.28
= control target key start
LH: loop header
LB: loop body
LE: loop exit
PB: predicated region body
PF: predicated region fallthrough
CT: control target
= control target key end

     0   :  { %8 = vsyncpa [#allocation3], 0  ;;  %s322_s0 = inlined_call_operand.hbm [shape: f32[8,16], index: 0, kind: input, shape index: {}]   ;;  %s323_s1 = inlined_call_operand.hbm [shape: bf16[16,8], index: 1, kind: input, shape index: {}]   ;;  %s324_s2 = inlined_call_operand.hbm [shape: f32[1,8], index: 2, kind: input, shape index: {}]   ;;  %s325_s3 = inlined_call_operand.hbm [shape: f32[8,8], index: 3, kind: output, shape index: {}]  }
   0x1   :  { %9 = vsyncpa [#allocation6], 0 }
   0x2   :  { %10 = vsyncpa [#allocation4], 0  ;;  %s246_s12 = smov [#allocation5]   ;;  %s152_s16 = scalar_lea.hbm %s323_s1, 128 }
   0x3   :  { %s26_s13 = sshll.u32 %s246_s12, 4  ;;  %p153_p0 = scmp.ne.s32.totalorder %s323_s1, %s152_s16  ;;  %s27_s13 = int_to_ptr.vmem [resolvable:$true] %s26_s13 }
   0x4   :  { %p156_p1 = scmp.lt.u32.totalorder %s152_s16, %s323_s1 }
   0x6   :  { %p158_p2 = pnand %p156_p1, %p153_p0 }
   0x8   :  { %161 = shalt.err (!%p158_p2)
}
   0x9   :  { %s162_s21 = scalar_lea.vmem %s27_s13, 128  ;;  %p167_p4 = scmp.lt.s32.totalorder %s27_s13, %s27_s13 }
   0xa   :  { %p163_p3 = scmp.ne.s32.totalorder %s27_s13, %s162_s21  ;;  %p168_p5 = scmp.lt.s32.totalorder %s162_s21, %s162_s21 }
   0xc   :  { %p169_p6 = por %p168_p5, %p167_p4 }
   0xe   :  { %p170_p7 = pnand %p169_p6, %p163_p3 }
  0x10   :  { %173 = shalt.err (!%p170_p7)
}
  0x11   :  { %s247_s22 = smov 64   ;;  %s248_s23 = smov 4  }
  0x12   :  { %32 = dma.hbm_to_vmem [thread:$0]  %s323_s1, 128, %s27_s13, [#allocation6], %s247_s22, %s247_s22, %s248_s23  }
  0x13   :  { %s249_s26 = smov [#allocation2]   ;;  %s250_s28 = smov [#allocation7]  }
  0x14   :  { %s17_s27 = sshll.u32 %s249_s26, 4  ;;  %s39_s29 = sshll.u32 %s250_s28, 4  ;;  %s18_s27 = int_to_ptr.vmem [resolvable:$true] %s17_s27  ;;  %s40_s29 = int_to_ptr.vmem [resolvable:$true] %s39_s29 }
  0x15   :  { %s174_s5 = scalar_lea.hbm %s322_s0, 128 }
  0x16   :  { %p175_p8 = scmp.ne.s32.totalorder %s322_s0, %s174_s5  ;;  %p178_p9 = scmp.lt.u32.totalorder %s174_s5, %s322_s0 }
  0x18   :  { %p180_p10 = pnand %p178_p9, %p175_p8 }
  0x1a   :  { %183 = shalt.err (!%p180_p10)
}
  0x1b   :  { %s184_s1 = scalar_lea.vmem %s18_s27, 128  ;;  %p189_p12 = scmp.lt.s32.totalorder %s18_s27, %s18_s27 }
  0x1c   :  { %p185_p11 = scmp.ne.s32.totalorder %s18_s27, %s184_s1  ;;  %p190_p13 = scmp.lt.s32.totalorder %s184_s1, %s184_s1 }
  0x1e   :  { %p191_p0 = por %p190_p13, %p189_p12 }
  0x20   :  { %p192_p1 = pnand %p191_p0, %p185_p11 }
  0x22   :  { %195 = shalt.err (!%p192_p1)
}
  0x23   :  { %20 = dma.hbm_to_vmem [thread:$0]  %s322_s0, 128, %s18_s27, [#allocation3]  }
  0x24   :  { %s196_s14 = scalar_lea.hbm %s324_s2, 16 }
  0x25   :  { %p197_p2 = scmp.ne.s32.totalorder %s324_s2, %s196_s14  ;;  %p200_p3 = scmp.lt.u32.totalorder %s196_s14, %s324_s2 }
  0x27   :  { %p202_p4 = pnand %p200_p3, %p197_p2 }
  0x29   :  { %205 = shalt.err (!%p202_p4)
}
  0x2a   :  { %s206_s19 = scalar_lea.vmem %s40_s29, 16  ;;  %s210_s20 = scalar_lea.vmem %s40_s29, 32 }
  0x2b   :  { %p207_p5 = scmp.ne.s32.totalorder %s40_s29, %s206_s19  ;;  %p211_p6 = scmp.lt.s32.totalorder %s40_s29, %s40_s29 }
  0x2c   :  { %p212_p7 = scmp.lt.s32.totalorder %s210_s20, %s206_s19 }
  0x2e   :  { %p213_p8 = por %p212_p7, %p211_p6 }
  0x30   :  { %p214_p9 = pnand %p213_p8, %p207_p5 }
  0x32   :  { %217 = shalt.err (!%p214_p9)
}
  0x33   :  { %42 = dma.hbm_to_vmem [thread:$0]  %s324_s2, 16, %s40_s29, [#allocation6]  }
  0x34   :  { %240 = dma.done.wait [#allocation3], 128  }
  0x35   :  { %241 = vsyncadd [#allocation3], 4294967168 }
  0x36   :  { %242 = dma.done.wait [#allocation6], 144  }
  0x37   :  { %243 = vsyncadd [#allocation6], 4294967152  ;;  %v251_v0 = vmov 0.0   ;;  %vm252_vm0 = vmmov 0   ;;  %v151_v1 = vld [vmem:[#allocation5] sm:$0xff]   ;;  %v53_v2 = vld [vmem:[#allocation2] sm:$0xff] }
  0x38   :  { %137 = vmatprep.subr.bf16.mxu0 %v251_v0  ;;  %139 = vmatprep.mubr.msk.bf16.mxu0 %vm252_vm0, %v251_v0  ;;  %v54_v3 = vpack.c.bf16 %v53_v2, %v53_v2  ;;  %vm70_vm1 = vcmask 130048   ;;  %v132_v4 = vld [vmem:[#allocation7] ss:$0 sm:$0xff]  ;;  %s253_s22 = smov [#allocation8]   ;;  %vm114_vm2 = vcmask 64512  }
  0x39   :  { %138 = vmatpush3.bf16.msra.mxu0 %v151_v1  ;;  %s122_s23 = sshll.u32 %s253_s22, 4  ;;  %s123_s23 = int_to_ptr.vmem [resolvable:$true] %s122_s23 }
  0x3a   :  { %s218_s2 = scalar_lea.vmem %s123_s23, 128  ;;  %p223_p11 = scmp.lt.s32.totalorder %s123_s23, %s123_s23 }
  0x3b   :  { %p219_p10 = scmp.ne.s32.totalorder %s123_s23, %s218_s2  ;;  %p224_p12 = scmp.lt.s32.totalorder %s218_s2, %s218_s2 }
  0x3c   :  { %140 = vmatmul.mubr.msk.bf16.vlgmr.msra.gmra.mrb[0].mxu0 %vm70_vm1, %v54_v3 }
  0x3d   :  { %p225_p13 = por %p224_p12, %p223_p11 }
  0x3f   :  { %p226_p0 = pnand %p225_p13, %p219_p10 }
 0x10f   :  { %v108_v5 = vpop.f32.mrb[0].mxu0 }
 0x110   :  { %v109_v6 = vadd.f32 %v132_v4, %v108_v5  ;;  %v141_v7 = vpop.f32.mrb[1].mxu0 }
 0x111   :  { %v111_v8 = vpop.f32.mrb[2].mxu0 }
 0x112   :  { %v142_v9 = vpop.f32.mrb[3].mxu0  ;;  %115 = vst.msk [vmem:[#allocation8] sm:$0xff] %vm114_vm2, %v109_v6 }
 0x113   :  { %229 = shalt.err (!%p226_p0)
}
 0x114   :  { %s230_s26 = scalar_lea.hbm %s325_s3, 128 }
 0x115   :  { %p231_p1 = scmp.ne.s32.totalorder %s325_s3, %s230_s26  ;;  %p234_p2 = scmp.lt.u32.totalorder %s230_s26, %s325_s3 }
 0x117   :  { %p236_p3 = pnand %p234_p2, %p231_p1 }
 0x119   :  { %239 = shalt.err (!%p236_p3)
}
 0x11a   :  { %125 = dma.vmem_to_hbm [thread:$0]  %s123_s23, 128, %s325_s3, [#allocation4]  }
 0x11b   :  { %244 = dma.done.wait [#allocation4], 128  }
 0x11c   :  { %245 = vsyncadd [#allocation4], 4294967168 }
 0x11d   :  { %129 = vsyncpa [#allocation3], 1 }
 0x11e   :  { %130 = vsyncpa [#allocation6], 1 }
 0x11f   :  { %131 = vsyncpa [#allocation4], 1 }

// kernel: _lambda_.29
= control target key start
LH: loop header
LB: loop body
LE: loop exit
PB: predicated region body
PF: predicated region fallthrough
CT: control target
= control target key end

     0   :  { %8 = vsyncpa [#allocation3], 0  ;;  %s310_s0 = inlined_call_operand.hbm [shape: f32[8,8], index: 0, kind: input, shape index: {}]   ;;  %s311_s1 = inlined_call_operand.hbm [shape: bf16[8,8], index: 1, kind: input, shape index: {}]   ;;  %s312_s2 = inlined_call_operand.hbm [shape: f32[1,8], index: 2, kind: input, shape index: {}]   ;;  %s313_s3 = inlined_call_operand.hbm [shape: f32[8,8], index: 3, kind: output, shape index: {}]  }
   0x1   :  { %9 = vsyncpa [#allocation6], 0 }
   0x2   :  { %10 = vsyncpa [#allocation4], 0  ;;  %s236_s12 = smov [#allocation5]   ;;  %s237_s14 = smov [#allocation2]  }
   0x3   :  { %s27_s13 = sshll.u32 %s236_s12, 4  ;;  %s17_s15 = sshll.u32 %s237_s14, 4  ;;  %s28_s13 = int_to_ptr.vmem [resolvable:$true] %s27_s13  ;;  %s18_s15 = int_to_ptr.vmem [resolvable:$true] %s17_s15 }
   0x4   :  { %s142_s18 = scalar_lea.hbm %s311_s1, 64 }
   0x5   :  { %p143_p0 = scmp.ne.s32.totalorder %s311_s1, %s142_s18  ;;  %p146_p1 = scmp.lt.u32.totalorder %s142_s18, %s311_s1 }
   0x7   :  { %p148_p2 = pnand %p146_p1, %p143_p0 }
   0x9   :  { %151 = shalt.err (!%p148_p2)
}
   0xa   :  { %s152_s23 = scalar_lea.vmem %s28_s13, 64  ;;  %p157_p4 = scmp.lt.s32.totalorder %s28_s13, %s28_s13 }
   0xb   :  { %p153_p3 = scmp.ne.s32.totalorder %s28_s13, %s152_s23  ;;  %p158_p5 = scmp.lt.s32.totalorder %s152_s23, %s152_s23 }
   0xd   :  { %p159_p6 = por %p158_p5, %p157_p4 }
   0xf   :  { %p160_p7 = pnand %p159_p6, %p153_p3 }
  0x11   :  { %163 = shalt.err (!%p160_p7)
}
  0x12   :  { %30 = dma.hbm_to_vmem [thread:$0]  %s311_s1, 64, %s28_s13, [#allocation6]  }
  0x13   :  { %s164_s28 = scalar_lea.hbm %s310_s0, 128 }
  0x14   :  { %p165_p8 = scmp.ne.s32.totalorder %s310_s0, %s164_s28  ;;  %p168_p9 = scmp.lt.u32.totalorder %s164_s28, %s310_s0 }
  0x16   :  { %p170_p10 = pnand %p168_p9, %p165_p8 }
  0x18   :  { %173 = shalt.err (!%p170_p10)
}
  0x19   :  { %s174_s6 = scalar_lea.vmem %s18_s15, 128  ;;  %p179_p12 = scmp.lt.s32.totalorder %s18_s15, %s18_s15 }
  0x1a   :  { %p175_p11 = scmp.ne.s32.totalorder %s18_s15, %s174_s6  ;;  %p180_p13 = scmp.lt.s32.totalorder %s174_s6, %s174_s6 }
  0x1c   :  { %p181_p0 = por %p180_p13, %p179_p12 }
  0x1e   :  { %p182_p1 = pnand %p181_p0, %p175_p11 }
  0x20   :  { %185 = shalt.err (!%p182_p1)
}
  0x21   :  { %20 = dma.hbm_to_vmem [thread:$0]  %s310_s0, 128, %s18_s15, [#allocation3]  }
  0x22   :  { %s238_s8 = smov [#allocation7]   ;;  %s186_s12 = scalar_lea.hbm %s312_s2, 16 }
  0x23   :  { %s37_s9 = sshll.u32 %s238_s8, 4  ;;  %p187_p2 = scmp.ne.s32.totalorder %s312_s2, %s186_s12  ;;  %s38_s9 = int_to_ptr.vmem [resolvable:$true] %s37_s9 }
  0x24   :  { %p190_p3 = scmp.lt.u32.totalorder %s186_s12, %s312_s2 }
  0x26   :  { %p192_p4 = pnand %p190_p3, %p187_p2 }
  0x28   :  { %195 = shalt.err (!%p192_p4)
}
  0x29   :  { %s196_s18 = scalar_lea.vmem %s38_s9, 16  ;;  %s200_s0 = scalar_lea.vmem %s38_s9, 32 }
  0x2a   :  { %p197_p5 = scmp.ne.s32.totalorder %s38_s9, %s196_s18  ;;  %p201_p6 = scmp.lt.s32.totalorder %s38_s9, %s38_s9 }
  0x2b   :  { %p202_p7 = scmp.lt.s32.totalorder %s200_s0, %s196_s18 }
  0x2d   :  { %p203_p8 = por %p202_p7, %p201_p6 }
  0x2f   :  { %p204_p9 = pnand %p203_p8, %p197_p5 }
  0x31   :  { %207 = shalt.err (!%p204_p9)
}
  0x32   :  { %40 = dma.hbm_to_vmem [thread:$0]  %s312_s2, 16, %s38_s9, [#allocation6]  }
  0x33   :  { %230 = dma.done.wait [#allocation3], 128  }
  0x34   :  { %231 = vsyncadd [#allocation3], 4294967168 }
  0x35   :  { %232 = dma.done.wait [#allocation6], 80  }
  0x36   :  { %233 = vsyncadd [#allocation6], 4294967216  ;;  %v239_v0 = vmov 0.0   ;;  %vm240_vm0 = vmmov 0   ;;  %vm65_vm1 = vcmask 1043456   ;;  %v51_v2 = vld [vmem:[#allocation2] sm:$0xff] }
  0x37   :  { %130 = vmatprep.subr.bf16.mxu0 %v239_v0  ;;  %132 = vmatprep.mubr.msk.bf16.mxu0 %vm240_vm0, %v239_v0  ;;  %v53_v1 = vld [vmem:[#allocation5] sm:$0xf]  ;;  %v52_v4 = vpack.c.bf16 %v51_v2, %v51_v2  ;;  %vm61_vm2 = vcmask 64512   ;;  %v126_v5 = vld [vmem:[#allocation7] ss:$0 sm:$0xff]  ;;  %s241_s20 = smov [#allocation8]  }
  0x38   :  { %v67_v3 = vsel %vm65_vm1, %v53_v1, 0  ;;  %s116_s21 = sshll.u32 %s241_s20, 4  ;;  %s117_s21 = int_to_ptr.vmem [resolvable:$true] %s116_s21 }
  0x39   :  { %131 = vmatpush3.bf16.msra.mxu0 %v67_v3  ;;  %s208_s2 = scalar_lea.vmem %s117_s21, 128  ;;  %p213_p11 = scmp.lt.s32.totalorder %s117_s21, %s117_s21 }
  0x3a   :  { %p209_p10 = scmp.ne.s32.totalorder %s117_s21, %s208_s2  ;;  %p214_p12 = scmp.lt.s32.totalorder %s208_s2, %s208_s2 }
  0x3c   :  { %133 = vmatmul.mubr.msk.bf16.vlgmr.msra.gmra.mrb[0].mxu0 %vm61_vm2, %v52_v4  ;;  %p215_p13 = por %p214_p12, %p213_p11 }
  0x3e   :  { %p216_p0 = pnand %p215_p13, %p209_p10 }
 0x10f   :  { %v103_v6 = vpop.f32.mrb[0].mxu0 }
 0x110   :  { %v104_v7 = vadd.f32 %v126_v5, %v103_v6  ;;  %v134_v8 = vpop.f32.mrb[1].mxu0 }
 0x111   :  { %v106_v9 = vpop.f32.mrb[2].mxu0 }
 0x112   :  { %109 = vst.msk [vmem:[#allocation8] sm:$0xff] %vm61_vm2, %v104_v7  ;;  %v135_v10 = vpop.f32.mrb[3].mxu0 }
 0x113   :  { %219 = shalt.err (!%p216_p0)
}
 0x114   :  { %s220_s24 = scalar_lea.hbm %s313_s3, 128 }
 0x115   :  { %p221_p1 = scmp.ne.s32.totalorder %s313_s3, %s220_s24  ;;  %p224_p2 = scmp.lt.u32.totalorder %s220_s24, %s313_s3 }
 0x117   :  { %p226_p3 = pnand %p224_p2, %p221_p1 }
 0x119   :  { %229 = shalt.err (!%p226_p3)
}
 0x11a   :  { %119 = dma.vmem_to_hbm [thread:$0]  %s117_s21, 128, %s313_s3, [#allocation4]  }
 0x11b   :  { %234 = dma.done.wait [#allocation4], 128  }
 0x11c   :  { %235 = vsyncadd [#allocation4], 4294967168 }
 0x11d   :  { %123 = vsyncpa [#allocation3], 1 }
 0x11e   :  { %124 = vsyncpa [#allocation6], 1 }
 0x11f   :  { %125 = vsyncpa [#allocation4], 1 }

</bundles_post_ra>
